<compile_context>
chip_gen: v6e
topology: v6e:2x2x1
jax: 0.10.0
libtpu: 0.0.40
codegen_flags: <defaults>
</compile_context>

<pallas_src>
import functools

import jax
import jax.numpy as jnp
from jax.experimental import pallas as pl
from jax.experimental.pallas import tpu as pltpu

LABEL_DIM = 2
INPUT_DIM = 8                     # latent z channels (original uses 100)
OUTPUT_DIM = 3
NUM_FILTERS = [32, 16, 16, 8]     # small-scale analogue of [1024, 512, 256, 128]
KSIZE = 4
BN_EPS = 1e-5


# --------------------------------------------------------------------------
# Fused Pallas kernel: o = act(w @ x + b), channel-major (transposed) layout.
#   w : [Cout, K]  bf16      x : [K, M]  bf16     (M = N*H_out*W_out on lanes)
#   b : [Cout, 1]  f32       gb: [Cout, 2] f32    (gamma | beta)
#   o : [Cout, M]  f32
# --------------------------------------------------------------------------
def _fused_matmul_kernel(w_ref, x_ref, b_ref, gb_ref, o_ref, *, act):
    pre = jnp.dot(w_ref[...], x_ref[...],
                  preferred_element_type=jnp.float32) + b_ref[...]
    if act == "bn_relu":
        # Training-mode BatchNorm2d: biased batch stats over N*H*W per channel
        # (per row here), then affine (gamma, beta) and ReLU.
        mean = jnp.mean(pre, axis=1, keepdims=True)
        var = jnp.mean(jnp.square(pre - mean), axis=1, keepdims=True)
        xhat = (pre - mean) * jax.lax.rsqrt(var + BN_EPS)
        y = xhat * gb_ref[:, 0:1] + gb_ref[:, 1:2]
        o_ref[...] = jnp.maximum(y, 0.0)
    else:  # "tanh"
        o_ref[...] = jnp.tanh(pre)


def _fused_call(w_t, x_t, b_col, gb, act):
    cout, m = w_t.shape[0], x_t.shape[1]
    vmem = pl.BlockSpec(memory_space=pltpu.MemorySpace.VMEM)
    return pl.pallas_call(
        functools.partial(_fused_matmul_kernel, act=act),
        out_shape=jax.ShapeDtypeStruct((cout, m), jnp.float32),
        in_specs=[vmem, vmem, vmem, vmem],
        out_specs=vmem,
    )(w_t, x_t, b_col, gb)


# --------------------------------------------------------------------------
# XLA-side glue: ConvTranspose2d(k=4, s=2, p=1) == conv(k=4, s=1) of the
# zero-inserted (lhs-dilated) and padded input with the spatially flipped,
# Cin/Cout-swapped kernel.
# --------------------------------------------------------------------------
def _tconv_patches_t(x_nchw, dtype):
    """Patch matrix [Cin*16, N*Ho*Wo] (K order = (c, kh, kw), M = raster)."""
    n, c, h, w = x_nchw.shape
    ho, wo = 2 * h, 2 * w
    cfg = [(0, 0, 0), (0, 0, 0), (2, 2, 1), (2, 2, 1)]   # lo, hi, interior
    xp = jax.lax.pad(x_nchw, jnp.array(0.0, x_nchw.dtype), cfg)  # [N,C,2H+3,2W+3]
    cols = [xp[:, :, kh:kh + ho, kw:kw + wo]
            for kh in range(KSIZE) for kw in range(KSIZE)]
    p = jnp.stack(cols, axis=2)                  # [N, C, 16, Ho, Wo]
    p = p.reshape(n, c * KSIZE * KSIZE, ho, wo)  # channel-major (c, kh, kw)
    p = jnp.transpose(p, (1, 0, 2, 3)).reshape(c * KSIZE * KSIZE, n * ho * wo)
    return p.astype(dtype)


def _prep_tconv_weight(w):
    """w: [Cin, Cout, 4, 4] (ConvTranspose2d layout) -> [Cout, Cin*16] bf16."""
    wf = jnp.flip(w, axis=(2, 3))
    cin, cout = w.shape[0], w.shape[1]
    return (jnp.transpose(wf, (1, 0, 2, 3))
            .reshape(cout, cin * KSIZE * KSIZE).astype(jnp.bfloat16))


def _prep_layer1(params):
    """Block-diagonal fusion of input_deconv(z) and label_deconv(c) so that
    deconv+BN+ReLU for both stems and the channel concat run in one kernel."""
    w_z, b_z = params["input_deconv"]
    w_c, b_c = params["label_deconv"]
    a = jnp.transpose(w_z, (0, 2, 3, 1))     # [Cin_z, 4, 4, half]
    b = jnp.transpose(w_c, (0, 2, 3, 1))     # [Cin_c, 4, 4, half]
    top = jnp.concatenate([a, jnp.zeros_like(a)], axis=-1)
    bot = jnp.concatenate([jnp.zeros_like(b), b], axis=-1)
    wfull = jnp.concatenate([top, bot], axis=0)          # [Cin_tot, 4, 4, nf0]
    cin_tot, _, _, nf0 = wfull.shape
    w1_t = jnp.transpose(wfull, (3, 1, 2, 0)).reshape(nf0, KSIZE * KSIZE * cin_tot)
    b1 = jnp.concatenate([b_z, b_c]).reshape(nf0, 1)
    gamma = jnp.concatenate([params["input_bn"][0], params["label_bn"][0]])
    beta = jnp.concatenate([params["input_bn"][1], params["label_bn"][1]])
    gb1 = jnp.stack([gamma, beta], axis=1)               # [nf0, 2]
    return w1_t.astype(jnp.bfloat16), b1, gb1, cin_tot


# --------------------------------------------------------------------------
# Parameters (match PyTorch init: W ~ N(0, 0.02), bias 0, BN gamma=1 beta=0)
# --------------------------------------------------------------------------
def init_params(key):
    def deconv_init(k, cin, cout):
        w = 0.02 * jax.random.normal(k, (cin, cout, KSIZE, KSIZE), jnp.float32)
        return w, jnp.zeros((cout,), jnp.float32)

    def bn_init(c):
        return jnp.ones((c,), jnp.float32), jnp.zeros((c,), jnp.float32)

    half = NUM_FILTERS[0] // 2
    keys = jax.random.split(key, len(NUM_FILTERS) + 2)
    params = {
        "input_deconv": deconv_init(keys[0], INPUT_DIM, half),
        "input_bn": bn_init(half),
        "label_deconv": deconv_init(keys[1], LABEL_DIM, half),
        "label_bn": bn_init(half),
    }
    prev = NUM_FILTERS[0]
    for i in range(1, len(NUM_FILTERS)):
        params[f"deconv{i + 1}"] = deconv_init(keys[1 + i], prev, NUM_FILTERS[i])
        params[f"bn{i + 1}"] = bn_init(NUM_FILTERS[i])
        prev = NUM_FILTERS[i]
    params["out"] = deconv_init(keys[-1], prev, OUTPUT_DIM)
    return params


# --------------------------------------------------------------------------
# Forward pass (NCHW in / NCHW out, like the PyTorch module)
# --------------------------------------------------------------------------
def generator_forward(params, z_nchw, c_nchw):
    n = z_nchw.shape[0]
    nf0 = NUM_FILTERS[0]

    # Layer 1: both 1x1->4x4 deconvs + both BNs + ReLU + channel concat,
    # expressed as one block-diagonal matmul. For a 1x1 input the transposed
    # conv is out[co, kh, kw] = sum_ci z[ci] * W[ci, co, kh, kw] + b[co].
    w1_t, b1, gb1, cin_tot = _prep_layer1(params)
    zc = jnp.concatenate([z_nchw.reshape(n, -1), c_nchw.reshape(n, -1)], axis=1)
    eye = jnp.eye(KSIZE * KSIZE, dtype=zc.dtype)
    rhs = (eye[:, None, None, :] * zc.T[None, :, :, None])      # [16,Cin,N,16]
    rhs = rhs.reshape(KSIZE * KSIZE * cin_tot, n * KSIZE * KSIZE)
    h = _fused_call(w1_t, rhs.astype(jnp.bfloat16), b1, gb1, "bn_relu")
    h = jnp.transpose(h.reshape(nf0, n, KSIZE, KSIZE), (1, 0, 2, 3))  # NCHW

    # Hidden stride-2 deconv + BN + ReLU stages.
    for i in range(1, len(NUM_FILTERS)):
        w, b = params[f"deconv{i + 1}"]
        g, bt = params[f"bn{i + 1}"]
        cout = w.shape[1]
        ho, wo = 2 * h.shape[2], 2 * h.shape[3]
        p_t = _tconv_patches_t(h, jnp.bfloat16)
        o = _fused_call(_prep_tconv_weight(w), p_t, b.reshape(-1, 1),
                        jnp.stack([g, bt], axis=1), "bn_relu")
        h = jnp.transpose(o.reshape(cout, n, ho, wo), (1, 0, 2, 3))

    # Output stride-2 deconv + Tanh.
    w, b = params["out"]
    cout = w.shape[1]
    ho, wo = 2 * h.shape[2], 2 * h.shape[3]
    p_t = _tconv_patches_t(h, jnp.bfloat16)
    o = _fused_call(_prep_tconv_weight(w), p_t, b.reshape(-1, 1),
                    jnp.zeros((cout, 2), jnp.float32), "tanh")
    return jnp.transpose(o.reshape(cout, n, ho, wo), (1, 0, 2, 3))


if __name__ == "__main__":
    key = jax.random.PRNGKey(0)
    kp, kz, kc = jax.random.split(key, 3)
    params = init_params(kp)

    batch = 2
    z = jax.random.normal(kz, (batch, INPUT_DIM, 1, 1), jnp.float32)
    c = jax.random.normal(kc, (batch, LABEL_DIM, 1, 1), jnp.float32)

    out = jax.jit(generator_forward)(params, z, c)
    jax.block_until_ready(out)

    spatial = KSIZE * (2 ** len(NUM_FILTERS))   # 4 -> 8 -> 16 -> 32 -> 64
    assert out.shape == (batch, OUTPUT_DIM, spatial, spatial), out.shape
    assert bool(jnp.all(jnp.isfinite(out)))
    assert bool(jnp.all((out >= -1.0) & (out <= 1.0)))   # tanh range
    print("KERNEL_OK")
</pallas_src>

<mosaic_0001>
module attributes {stable_mosaic.version = 11 : i64} {
  func.func @_fused_matmul_kernel(%arg0: memref<32x160xbf16, #tpu.memory_space<vmem>>, %arg1: memref<160x32xbf16, #tpu.memory_space<vmem>>, %arg2: memref<32x1xf32, #tpu.memory_space<vmem>>, %arg3: memref<32x2xf32, #tpu.memory_space<vmem>>, %arg4: memref<32x32xf32, #tpu.memory_space<vmem>>) attributes {dimension_semantics = [], scalar_prefetch = 0 : i64, scratch_operands = 0 : i64, tpu.core_type = #tpu.core_type<tc>} {
    %c0 = arith.constant 0 : index
    %c0_0 = arith.constant 0 : index
    %0 = vector.load %arg0[%c0, %c0_0] : memref<32x160xbf16, #tpu.memory_space<vmem>>, vector<32x160xbf16>
    %c0_1 = arith.constant 0 : index
    %c0_2 = arith.constant 0 : index
    %1 = vector.load %arg1[%c0_1, %c0_2] : memref<160x32xbf16, #tpu.memory_space<vmem>>, vector<160x32xbf16>
    %cst = arith.constant dense<0.000000e+00> : vector<32x32xf32>
    %2 = tpu.matmul %0, %1, %cst {dimension_numbers = #tpu.dot_dimension_numbers<[1], [0], [0], [1], [0, 0, 1, 1], [], []>} : vector<32x160xbf16>, vector<160x32xbf16>, vector<32x32xf32> -> vector<32x32xf32>
    %c0_3 = arith.constant 0 : index
    %c0_4 = arith.constant 0 : index
    %3 = vector.load %arg2[%c0_3, %c0_4] : memref<32x1xf32, #tpu.memory_space<vmem>>, vector<32x1xf32>
    %4 = vector.broadcast %3 : vector<32x1xf32> to vector<32x32xf32>
    %5 = arith.addf %2, %4 : vector<32x32xf32>
    %cst_5 = arith.constant dense<0.000000e+00> : vector<32xf32>
    %6 = vector.multi_reduction <add>, %5, %cst_5 [1] : vector<32x32xf32> to vector<32xf32>
    %7 = vector.shape_cast %6 : vector<32xf32> to vector<32x1xf32>
    %cst_6 = arith.constant 3.200000e+01 : f32
    %8 = vector.broadcast %cst_6 : f32 to vector<32x1xf32>
    %9 = arith.divf %7, %8 : vector<32x1xf32>
    %10 = vector.broadcast %9 : vector<32x1xf32> to vector<32x32xf32>
    %11 = arith.subf %5, %10 : vector<32x32xf32>
    %12 = arith.mulf %11, %11 : vector<32x32xf32>
    %cst_7 = arith.constant dense<0.000000e+00> : vector<32xf32>
    %13 = vector.multi_reduction <add>, %12, %cst_7 [1] : vector<32x32xf32> to vector<32xf32>
    %14 = vector.shape_cast %13 : vector<32xf32> to vector<32x1xf32>
    %cst_8 = arith.constant 3.200000e+01 : f32
    %15 = vector.broadcast %cst_8 : f32 to vector<32x1xf32>
    %16 = arith.divf %14, %15 : vector<32x1xf32>
    %17 = vector.broadcast %9 : vector<32x1xf32> to vector<32x32xf32>
    %18 = arith.subf %5, %17 : vector<32x32xf32>
    %cst_9 = arith.constant 9.99999974E-6 : f32
    %19 = vector.broadcast %cst_9 : f32 to vector<32x1xf32>
    %20 = arith.addf %16, %19 : vector<32x1xf32>
    %21 = math.rsqrt %20 : vector<32x1xf32>
    %22 = vector.broadcast %21 : vector<32x1xf32> to vector<32x32xf32>
    %23 = arith.mulf %18, %22 : vector<32x32xf32>
    %c0_10 = arith.constant 0 : index
    %c0_11 = arith.constant 0 : index
    %24 = vector.load %arg3[%c0_10, %c0_11] : memref<32x2xf32, #tpu.memory_space<vmem>>, vector<32x1xf32>
    %25 = vector.broadcast %24 : vector<32x1xf32> to vector<32x32xf32>
    %26 = arith.mulf %23, %25 : vector<32x32xf32>
    %c0_12 = arith.constant 0 : index
    %c1 = arith.constant 1 : index
    %27 = vector.load %arg3[%c0_12, %c1] : memref<32x2xf32, #tpu.memory_space<vmem>>, vector<32x1xf32>
    %28 = vector.broadcast %27 : vector<32x1xf32> to vector<32x32xf32>
    %29 = arith.addf %26, %28 : vector<32x32xf32>
    %cst_13 = arith.constant 0.000000e+00 : f32
    %30 = vector.broadcast %cst_13 : f32 to vector<32x32xf32>
    %31 = arith.maximumf %29, %30 : vector<32x32xf32>
    %c0_14 = arith.constant 0 : index
    %c0_15 = arith.constant 0 : index
    %32 = vector.load %arg4[%c0_14, %c0_15] : memref<32x32xf32, #tpu.memory_space<vmem>>, vector<32x32xf32>
    tpu.vector_store %arg4[%c0_14, %c0_15], %31 {strides = array<i32>} : memref<32x32xf32, #tpu.memory_space<vmem>>, vector<32x32xf32>,
    return
  }
}

module attributes {stable_mosaic.version = 11 : i64} {
  func.func @_fused_matmul_kernel(%arg0: memref<16x512xbf16, #tpu.memory_space<vmem>>, %arg1: memref<512x128xbf16, #tpu.memory_space<vmem>>, %arg2: memref<16x1xf32, #tpu.memory_space<vmem>>, %arg3: memref<16x2xf32, #tpu.memory_space<vmem>>, %arg4: memref<16x128xf32, #tpu.memory_space<vmem>>) attributes {dimension_semantics = [], scalar_prefetch = 0 : i64, scratch_operands = 0 : i64, tpu.core_type = #tpu.core_type<tc>} {
    %c0 = arith.constant 0 : index
    %c0_0 = arith.constant 0 : index
    %0 = vector.load %arg0[%c0, %c0_0] : memref<16x512xbf16, #tpu.memory_space<vmem>>, vector<16x512xbf16>
    %c0_1 = arith.constant 0 : index
    %c0_2 = arith.constant 0 : index
    %1 = vector.load %arg1[%c0_1, %c0_2] : memref<512x128xbf16, #tpu.memory_space<vmem>>, vector<512x128xbf16>
    %cst = arith.constant dense<0.000000e+00> : vector<16x128xf32>
    %2 = tpu.matmul %0, %1, %cst {dimension_numbers = #tpu.dot_dimension_numbers<[1], [0], [0], [1], [0, 0, 1, 1], [], []>} : vector<16x512xbf16>, vector<512x128xbf16>, vector<16x128xf32> -> vector<16x128xf32>
    %c0_3 = arith.constant 0 : index
    %c0_4 = arith.constant 0 : index
    %3 = vector.load %arg2[%c0_3, %c0_4] : memref<16x1xf32, #tpu.memory_space<vmem>>, vector<16x1xf32>
    %4 = vector.broadcast %3 : vector<16x1xf32> to vector<16x128xf32>
    %5 = arith.addf %2, %4 : vector<16x128xf32>
    %cst_5 = arith.constant dense<0.000000e+00> : vector<16xf32>
    %6 = vector.multi_reduction <add>, %5, %cst_5 [1] : vector<16x128xf32> to vector<16xf32>
    %7 = vector.shape_cast %6 : vector<16xf32> to vector<16x1xf32>
    %cst_6 = arith.constant 1.280000e+02 : f32
    %8 = vector.broadcast %cst_6 : f32 to vector<16x1xf32>
    %9 = arith.divf %7, %8 : vector<16x1xf32>
    %10 = vector.broadcast %9 : vector<16x1xf32> to vector<16x128xf32>
    %11 = arith.subf %5, %10 : vector<16x128xf32>
    %12 = arith.mulf %11, %11 : vector<16x128xf32>
    %cst_7 = arith.constant dense<0.000000e+00> : vector<16xf32>
    %13 = vector.multi_reduction <add>, %12, %cst_7 [1] : vector<16x128xf32> to vector<16xf32>
    %14 = vector.shape_cast %13 : vector<16xf32> to vector<16x1xf32>
    %cst_8 = arith.constant 1.280000e+02 : f32
    %15 = vector.broadcast %cst_8 : f32 to vector<16x1xf32>
    %16 = arith.divf %14, %15 : vector<16x1xf32>
    %17 = vector.broadcast %9 : vector<16x1xf32> to vector<16x128xf32>
    %18 = arith.subf %5, %17 : vector<16x128xf32>
    %cst_9 = arith.constant 9.99999974E-6 : f32
    %19 = vector.broadcast %cst_9 : f32 to vector<16x1xf32>
    %20 = arith.addf %16, %19 : vector<16x1xf32>
    %21 = math.rsqrt %20 : vector<16x1xf32>
    %22 = vector.broadcast %21 : vector<16x1xf32> to vector<16x128xf32>
    %23 = arith.mulf %18, %22 : vector<16x128xf32>
    %c0_10 = arith.constant 0 : index
    %c0_11 = arith.constant 0 : index
    %24 = vector.load %arg3[%c0_10, %c0_11] : memref<16x2xf32, #tpu.memory_space<vmem>>, vector<16x1xf32>
    %25 = vector.broadcast %24 : vector<16x1xf32> to vector<16x128xf32>
    %26 = arith.mulf %23, %25 : vector<16x128xf32>
    %c0_12 = arith.constant 0 : index
    %c1 = arith.constant 1 : index
    %27 = vector.load %arg3[%c0_12, %c1] : memref<16x2xf32, #tpu.memory_space<vmem>>, vector<16x1xf32>
    %28 = vector.broadcast %27 : vector<16x1xf32> to vector<16x128xf32>
    %29 = arith.addf %26, %28 : vector<16x128xf32>
    %cst_13 = arith.constant 0.000000e+00 : f32
    %30 = vector.broadcast %cst_13 : f32 to vector<16x128xf32>
    %31 = arith.maximumf %29, %30 : vector<16x128xf32>
    %c0_14 = arith.constant 0 : index
    %c0_15 = arith.constant 0 : index
    %32 = vector.load %arg4[%c0_14, %c0_15] : memref<16x128xf32, #tpu.memory_space<vmem>>, vector<16x128xf32>
    tpu.vector_store %arg4[%c0_14, %c0_15], %31 {strides = array<i32>} : memref<16x128xf32, #tpu.memory_space<vmem>>, vector<16x128xf32>,
    return
  }
}

module attributes {stable_mosaic.version = 11 : i64} {
  func.func @_fused_matmul_kernel(%arg0: memref<16x256xbf16, #tpu.memory_space<vmem>>, %arg1: memref<256x512xbf16, #tpu.memory_space<vmem>>, %arg2: memref<16x1xf32, #tpu.memory_space<vmem>>, %arg3: memref<16x2xf32, #tpu.memory_space<vmem>>, %arg4: memref<16x512xf32, #tpu.memory_space<vmem>>) attributes {dimension_semantics = [], scalar_prefetch = 0 : i64, scratch_operands = 0 : i64, tpu.core_type = #tpu.core_type<tc>} {
    %c0 = arith.constant 0 : index
    %c0_0 = arith.constant 0 : index
    %0 = vector.load %arg0[%c0, %c0_0] : memref<16x256xbf16, #tpu.memory_space<vmem>>, vector<16x256xbf16>
    %c0_1 = arith.constant 0 : index
    %c0_2 = arith.constant 0 : index
    %1 = vector.load %arg1[%c0_1, %c0_2] : memref<256x512xbf16, #tpu.memory_space<vmem>>, vector<256x512xbf16>
    %cst = arith.constant dense<0.000000e+00> : vector<16x512xf32>
    %2 = tpu.matmul %0, %1, %cst {dimension_numbers = #tpu.dot_dimension_numbers<[1], [0], [0], [1], [0, 0, 1, 1], [], []>} : vector<16x256xbf16>, vector<256x512xbf16>, vector<16x512xf32> -> vector<16x512xf32>
    %c0_3 = arith.constant 0 : index
    %c0_4 = arith.constant 0 : index
    %3 = vector.load %arg2[%c0_3, %c0_4] : memref<16x1xf32, #tpu.memory_space<vmem>>, vector<16x1xf32>
    %4 = vector.broadcast %3 : vector<16x1xf32> to vector<16x512xf32>
    %5 = arith.addf %2, %4 : vector<16x512xf32>
    %cst_5 = arith.constant dense<0.000000e+00> : vector<16xf32>
    %6 = vector.multi_reduction <add>, %5, %cst_5 [1] : vector<16x512xf32> to vector<16xf32>
    %7 = vector.shape_cast %6 : vector<16xf32> to vector<16x1xf32>
    %cst_6 = arith.constant 5.120000e+02 : f32
    %8 = vector.broadcast %cst_6 : f32 to vector<16x1xf32>
    %9 = arith.divf %7, %8 : vector<16x1xf32>
    %10 = vector.broadcast %9 : vector<16x1xf32> to vector<16x512xf32>
    %11 = arith.subf %5, %10 : vector<16x512xf32>
    %12 = arith.mulf %11, %11 : vector<16x512xf32>
    %cst_7 = arith.constant dense<0.000000e+00> : vector<16xf32>
    %13 = vector.multi_reduction <add>, %12, %cst_7 [1] : vector<16x512xf32> to vector<16xf32>
    %14 = vector.shape_cast %13 : vector<16xf32> to vector<16x1xf32>
    %cst_8 = arith.constant 5.120000e+02 : f32
    %15 = vector.broadcast %cst_8 : f32 to vector<16x1xf32>
    %16 = arith.divf %14, %15 : vector<16x1xf32>
    %17 = vector.broadcast %9 : vector<16x1xf32> to vector<16x512xf32>
    %18 = arith.subf %5, %17 : vector<16x512xf32>
    %cst_9 = arith.constant 9.99999974E-6 : f32
    %19 = vector.broadcast %cst_9 : f32 to vector<16x1xf32>
    %20 = arith.addf %16, %19 : vector<16x1xf32>
    %21 = math.rsqrt %20 : vector<16x1xf32>
    %22 = vector.broadcast %21 : vector<16x1xf32> to vector<16x512xf32>
    %23 = arith.mulf %18, %22 : vector<16x512xf32>
    %c0_10 = arith.constant 0 : index
    %c0_11 = arith.constant 0 : index
    %24 = vector.load %arg3[%c0_10, %c0_11] : memref<16x2xf32, #tpu.memory_space<vmem>>, vector<16x1xf32>
    %25 = vector.broadcast %24 : vector<16x1xf32> to vector<16x512xf32>
    %26 = arith.mulf %23, %25 : vector<16x512xf32>
    %c0_12 = arith.constant 0 : index
    %c1 = arith.constant 1 : index
    %27 = vector.load %arg3[%c0_12, %c1] : memref<16x2xf32, #tpu.memory_space<vmem>>, vector<16x1xf32>
    %28 = vector.broadcast %27 : vector<16x1xf32> to vector<16x512xf32>
    %29 = arith.addf %26, %28 : vector<16x512xf32>
    %cst_13 = arith.constant 0.000000e+00 : f32
    %30 = vector.broadcast %cst_13 : f32 to vector<16x512xf32>
    %31 = arith.maximumf %29, %30 : vector<16x512xf32>
    %c0_14 = arith.constant 0 : index
    %c0_15 = arith.constant 0 : index
    %32 = vector.load %arg4[%c0_14, %c0_15] : memref<16x512xf32, #tpu.memory_space<vmem>>, vector<16x512xf32>
    tpu.vector_store %arg4[%c0_14, %c0_15], %31 {strides = array<i32>} : memref<16x512xf32, #tpu.memory_space<vmem>>, vector<16x512xf32>,
    return
  }
}

module attributes {stable_mosaic.version = 11 : i64} {
  func.func @_fused_matmul_kernel(%arg0: memref<8x256xbf16, #tpu.memory_space<vmem>>, %arg1: memref<256x2048xbf16, #tpu.memory_space<vmem>>, %arg2: memref<8x1xf32, #tpu.memory_space<vmem>>, %arg3: memref<8x2xf32, #tpu.memory_space<vmem>>, %arg4: memref<8x2048xf32, #tpu.memory_space<vmem>>) attributes {dimension_semantics = [], scalar_prefetch = 0 : i64, scratch_operands = 0 : i64, tpu.core_type = #tpu.core_type<tc>} {
    %c0 = arith.constant 0 : index
    %c0_0 = arith.constant 0 : index
    %0 = vector.load %arg0[%c0, %c0_0] : memref<8x256xbf16, #tpu.memory_space<vmem>>, vector<8x256xbf16>
    %c0_1 = arith.constant 0 : index
    %c0_2 = arith.constant 0 : index
    %1 = vector.load %arg1[%c0_1, %c0_2] : memref<256x2048xbf16, #tpu.memory_space<vmem>>, vector<256x2048xbf16>
    %cst = arith.constant dense<0.000000e+00> : vector<8x2048xf32>
    %2 = tpu.matmul %0, %1, %cst {dimension_numbers = #tpu.dot_dimension_numbers<[1], [0], [0], [1], [0, 0, 1, 1], [], []>} : vector<8x256xbf16>, vector<256x2048xbf16>, vector<8x2048xf32> -> vector<8x2048xf32>
    %c0_3 = arith.constant 0 : index
    %c0_4 = arith.constant 0 : index
    %3 = vector.load %arg2[%c0_3, %c0_4] : memref<8x1xf32, #tpu.memory_space<vmem>>, vector<8x1xf32>
    %4 = vector.broadcast %3 : vector<8x1xf32> to vector<8x2048xf32>
    %5 = arith.addf %2, %4 : vector<8x2048xf32>
    %cst_5 = arith.constant dense<0.000000e+00> : vector<8xf32>
    %6 = vector.multi_reduction <add>, %5, %cst_5 [1] : vector<8x2048xf32> to vector<8xf32>
    %7 = vector.shape_cast %6 : vector<8xf32> to vector<8x1xf32>
    %cst_6 = arith.constant 2.048000e+03 : f32
    %8 = vector.broadcast %cst_6 : f32 to vector<8x1xf32>
    %9 = arith.divf %7, %8 : vector<8x1xf32>
    %10 = vector.broadcast %9 : vector<8x1xf32> to vector<8x2048xf32>
    %11 = arith.subf %5, %10 : vector<8x2048xf32>
    %12 = arith.mulf %11, %11 : vector<8x2048xf32>
    %cst_7 = arith.constant dense<0.000000e+00> : vector<8xf32>
    %13 = vector.multi_reduction <add>, %12, %cst_7 [1] : vector<8x2048xf32> to vector<8xf32>
    %14 = vector.shape_cast %13 : vector<8xf32> to vector<8x1xf32>
    %cst_8 = arith.constant 2.048000e+03 : f32
    %15 = vector.broadcast %cst_8 : f32 to vector<8x1xf32>
    %16 = arith.divf %14, %15 : vector<8x1xf32>
    %17 = vector.broadcast %9 : vector<8x1xf32> to vector<8x2048xf32>
    %18 = arith.subf %5, %17 : vector<8x2048xf32>
    %cst_9 = arith.constant 9.99999974E-6 : f32
    %19 = vector.broadcast %cst_9 : f32 to vector<8x1xf32>
    %20 = arith.addf %16, %19 : vector<8x1xf32>
    %21 = math.rsqrt %20 : vector<8x1xf32>
    %22 = vector.broadcast %21 : vector<8x1xf32> to vector<8x2048xf32>
    %23 = arith.mulf %18, %22 : vector<8x2048xf32>
    %c0_10 = arith.constant 0 : index
    %c0_11 = arith.constant 0 : index
    %24 = vector.load %arg3[%c0_10, %c0_11] : memref<8x2xf32, #tpu.memory_space<vmem>>, vector<8x1xf32>
    %25 = vector.broadcast %24 : vector<8x1xf32> to vector<8x2048xf32>
    %26 = arith.mulf %23, %25 : vector<8x2048xf32>
    %c0_12 = arith.constant 0 : index
    %c1 = arith.constant 1 : index
    %27 = vector.load %arg3[%c0_12, %c1] : memref<8x2xf32, #tpu.memory_space<vmem>>, vector<8x1xf32>
    %28 = vector.broadcast %27 : vector<8x1xf32> to vector<8x2048xf32>
    %29 = arith.addf %26, %28 : vector<8x2048xf32>
    %cst_13 = arith.constant 0.000000e+00 : f32
    %30 = vector.broadcast %cst_13 : f32 to vector<8x2048xf32>
    %31 = arith.maximumf %29, %30 : vector<8x2048xf32>
    %c0_14 = arith.constant 0 : index
    %c0_15 = arith.constant 0 : index
    %32 = vector.load %arg4[%c0_14, %c0_15] : memref<8x2048xf32, #tpu.memory_space<vmem>>, vector<8x2048xf32>
    tpu.vector_store %arg4[%c0_14, %c0_15], %31 {strides = array<i32>} : memref<8x2048xf32, #tpu.memory_space<vmem>>, vector<8x2048xf32>,
    return
  }
}

module attributes {stable_mosaic.version = 11 : i64} {
  func.func @_fused_matmul_kernel(%arg0: memref<3x128xbf16, #tpu.memory_space<vmem>>, %arg1: memref<128x8192xbf16, #tpu.memory_space<vmem>>, %arg2: memref<3x1xf32, #tpu.memory_space<vmem>>, %arg3: memref<3x2xf32, #tpu.memory_space<vmem>>, %arg4: memref<3x8192xf32, #tpu.memory_space<vmem>>) attributes {dimension_semantics = [], scalar_prefetch = 0 : i64, scratch_operands = 0 : i64, tpu.core_type = #tpu.core_type<tc>} {
    %c0 = arith.constant 0 : index
    %c0_0 = arith.constant 0 : index
    %0 = vector.load %arg0[%c0, %c0_0] : memref<3x128xbf16, #tpu.memory_space<vmem>>, vector<3x128xbf16>
    %c0_1 = arith.constant 0 : index
    %c0_2 = arith.constant 0 : index
    %1 = vector.load %arg1[%c0_1, %c0_2] : memref<128x8192xbf16, #tpu.memory_space<vmem>>, vector<128x8192xbf16>
    %cst = arith.constant dense<0.000000e+00> : vector<3x8192xf32>
    %2 = tpu.matmul %0, %1, %cst {dimension_numbers = #tpu.dot_dimension_numbers<[1], [0], [0], [1], [0, 0, 1, 1], [], []>} : vector<3x128xbf16>, vector<128x8192xbf16>, vector<3x8192xf32> -> vector<3x8192xf32>
    %c0_3 = arith.constant 0 : index
    %c0_4 = arith.constant 0 : index
    %3 = vector.load %arg2[%c0_3, %c0_4] : memref<3x1xf32, #tpu.memory_space<vmem>>, vector<3x1xf32>
    %4 = vector.broadcast %3 : vector<3x1xf32> to vector<3x8192xf32>
    %5 = arith.addf %2, %4 : vector<3x8192xf32>
    %6 = math.tanh %5 : vector<3x8192xf32>
    %c0_5 = arith.constant 0 : index
    %c0_6 = arith.constant 0 : index
    %7 = vector.load %arg4[%c0_5, %c0_6] : memref<3x8192xf32, #tpu.memory_space<vmem>>, vector<3x8192xf32>
    tpu.vector_store %arg4[%c0_5, %c0_6], %6 {strides = array<i32>} : memref<3x8192xf32, #tpu.memory_space<vmem>>, vector<3x8192xf32>,
    return
  }
}

</mosaic_0001>

<bundles_post_ra>
// kernel: generator_forward.5
= control target key start
LH: loop header
LB: loop body
LE: loop exit
PB: predicated region body
PF: predicated region fallthrough
CT: control target
= control target key end

     0   :  { %v379_v0 = vmov 0   ;;  %vm144_vm0 = vcmask 261120   ;;  %v380_v43 = vmov 1   ;;  %s520_s1 = inlined_call_operand.vmem [shape: bf16[160,32], index: 1, kind: input, shape index: {}]   ;;  %s521_s0 = inlined_call_operand.vmem [shape: bf16[32,160], index: 0, kind: input, shape index: {}]   ;;  %s522_s2 = inlined_call_operand.vmem [shape: f32[32,1], index: 2, kind: input, shape index: {}]   ;;  %s523_s3 = inlined_call_operand.vmem [shape: f32[32,2], index: 3, kind: input, shape index: {}]   ;;  %s524_s4 = inlined_call_operand.vmem [shape: f32[32,32], index: 4, kind: output, shape index: {}]  }
   0x1   :  { %151 = vmatprep.subr.bf16.mxu0 %v379_v0  ;;  %329 = vmatprep.subr.bf16.mxu1 %v379_v0  ;;  %v355_v1 = vld [vmem:[%s520_s1 + $0x38] sm:$0xff]   ;;  %v356_v2 = vld [vmem:[%s520_s1 + $0x30] sm:$0xff]   ;;  %v357_v3 = vld [vmem:[%s520_s1 + $0x28] sm:$0xff]  }
   0x2   :  { %351 = vset.pattern.permute.xlu0 %v379_v0  ;;  %352 = vset.pattern.permute.xlu1 %v379_v0  ;;  %v358_v4 = vld [vmem:[%s520_s1 + $0x20] sm:$0xff]   ;;  %v370_v6 = vld [vmem:[%s521_s0 + $0x14] ss:$8 sps:$4 sm:$0xff]   ;;  %v43_v10 = vld [vmem:[%s522_s2 + $0x8] sm:$0xff] }
   0x3   :  { %152 = vmatpush1.bf16.msra.mxu0 %v355_v1  ;;  %339 = vmatpush1.bf16.msra.mxu1 %v355_v1  ;;  %v367_v5 = vld [vmem:[%s521_s0 + $0x4] ss:$8 sps:$4 sm:$0xff]   ;;  %v44_v8 = vld [vmem:[%s522_s2 + $0x10] sm:$0xff]  ;;  %v359_v9 = vld [vmem:[%s520_s1 + $0x18] sm:$0xff]  }
   0x4   :  { %153 = vmatprep.subr.bf16.mxu0 %v379_v0  ;;  %330 = vmatprep.subr.bf16.mxu1 %v379_v0  ;;  %v42_v7 = vld [vmem:[%s522_s2] sm:$0xff]  ;;  %v45_v11 = vld [vmem:[%s522_s2 + $0x18] sm:$0xff]  ;;  %v360_v12 = vld [vmem:[%s520_s1 + $0x10] sm:$0xff]  }
   0x5   :  { %327 = vmatprep.mubr.msk.bf16.mxu0 %vm144_vm0, %v367_v5  ;;  %48 = vperm.xlu0 %351, %v42_v7   ;;  %v361_v13 = vld [vmem:[%s520_s1 + $0x8] sm:$0xff]   ;;  %v362_v14 = vld [vmem:[%s520_s1] sm:$0xff]   ;;  %v368_v18 = vld [vmem:[%s521_s0 + $0x10] ss:$8 sps:$4 sm:$0xff]  }
   0x6   :  { %328 = vmatprep.mubr.msk.bf16.mxu1 %vm144_vm0, %v370_v6  ;;  %58 = vperm.xlu1 %352, %v44_v8   ;;  %v363_v15 = vld [vmem:[%s520_s1 + $0x48] sm:$0xff]   ;;  %v364_v16 = vld [vmem:[%s520_s1 + $0x40] sm:$0xff]   ;;  %v255_v40 = vld [vmem:[%s523_s3 + $0x10] sm:$0xff] }
   0x7   :  { %154 = vmatpush1.bf16.msra.mxu0 %v356_v2  ;;  %340 = vmatpush1.bf16.msra.mxu1 %v356_v2  ;;  %v365_v17 = vld [vmem:[%s521_s0] ss:$8 sps:$4 sm:$0xff]   ;;  %v256_v41 = vld [vmem:[%s523_s3 + $0x18] sm:$0xff] }
   0x8   :  { %155 = vmatprep.subr.bf16.mxu0 %v379_v0  ;;  %331 = vmatprep.subr.bf16.mxu1 %v379_v0  ;;  %v253_v39 = vld [vmem:[%s523_s3] sm:$0xff]  ;;  %v254_v42 = vld [vmem:[%s523_s3 + $0x8] sm:$0xff] }
   0x9   :  { %53 = vperm.xlu0 %351, %v43_v10  }
   0xa   :  { %63 = vperm.xlu1 %352, %v45_v11  }
   0xb   :  { %156 = vmatpush1.bf16.msra.mxu0 %v357_v3  ;;  %341 = vmatpush1.bf16.msra.mxu1 %v357_v3 }
   0xc   :  { %157 = vmatprep.subr.bf16.mxu0 %v379_v0  ;;  %332 = vmatprep.subr.bf16.mxu1 %v379_v0 }
   0xf   :  { %158 = vmatpush1.bf16.msra.mxu0 %v358_v4  ;;  %342 = vmatpush1.bf16.msra.mxu1 %v358_v4 }
  0x10   :  { %159 = vmatprep.subr.bf16.mxu0 %v379_v0  ;;  %333 = vmatprep.subr.bf16.mxu1 %v379_v0 }
  0x13   :  { %160 = vmatpush1.bf16.msra.mxu0 %v359_v9  ;;  %343 = vmatpush1.bf16.msra.mxu1 %v359_v9 }
  0x14   :  { %161 = vmatprep.subr.bf16.mxu0 %v379_v0  ;;  %334 = vmatprep.subr.bf16.mxu1 %v379_v0 }
  0x17   :  { %162 = vmatpush1.bf16.msra.mxu0 %v360_v12  ;;  %344 = vmatpush1.bf16.msra.mxu1 %v360_v12 }
  0x18   :  { %163 = vmatprep.subr.bf16.mxu0 %v379_v0  ;;  %335 = vmatprep.subr.bf16.mxu1 %v379_v0 }
  0x1b   :  { %164 = vmatpush1.bf16.msra.mxu0 %v361_v13  ;;  %345 = vmatpush1.bf16.msra.mxu1 %v361_v13 }
  0x1c   :  { %165 = vmatprep.subr.bf16.mxu0 %v379_v0  ;;  %336 = vmatprep.subr.bf16.mxu1 %v379_v0 }
  0x1f   :  { %166 = vmatpush1.bf16.msra.mxu0 %v362_v14  ;;  %346 = vmatpush1.bf16.msra.mxu1 %v362_v14 }
  0x20   :  { %179 = vmatprep.subr.bf16.mxu0 %v379_v0  ;;  %337 = vmatprep.subr.bf16.mxu1 %v379_v0 }
  0x23   :  { %180 = vmatpush2.bf16.msra.mxu0 %v363_v15  ;;  %347 = vmatpush2.bf16.msra.mxu1 %v363_v15 }
  0x24   :  { %181 = vmatprep.subr.bf16.mxu0 %v379_v0  ;;  %338 = vmatprep.subr.bf16.mxu1 %v379_v0 }
  0x27   :  { %182 = vmatpush2.bf16.msra.mxu0 %v364_v16  ;;  %348 = vmatpush2.bf16.msra.mxu1 %v364_v16 }
  0x2a   :  { %184 = vmatmul.mubr.bf16.vlgmr.msra.gmra.mxu0 %v365_v17  ;;  %192 = vmatmul.mubr.bf16.vlgmr.msra.gmra.mxu1 %v368_v18 }
  0x80   :  { %v49_v19 = vpop.permute.xlu0 %48 }
  0x81   :  { %v59_v20 = vpop.permute.xlu1 %58 }
  0x84   :  { %v54_v27 = vpop.permute.xlu0 %53 }
  0x85   :  { %v64_v28 = vpop.permute.xlu1 %63 }
  0xea   :  { %v185_v21 = vpop.f32.mrf.mxu0  ;;  %v193_v22 = vpop.f32.mrf.mxu1 }
  0xeb   :  { %v186_v23 = vadd.f32 %v185_v21, %v49_v19  ;;  %v194_v24 = vadd.f32 %v193_v22, %v59_v20 }
  0xec   :  { %v187_v25 = vpop.f32.mrf.mxu0  ;;  %v195_v26 = vpop.f32.mrf.mxu1 }
  0xed   :  { %v200_v29 = vsel %vm144_vm0, %v186_v23, 0.0  ;;  %v206_v33 = vsel %vm144_vm0, %v194_v24, 0.0 }
  0xee   :  { %v188_v30 = vpop.f32.mrf.mxu0  ;;  %v196_v31 = vpop.f32.mrf.mxu1  ;;  %201 = vadd.xlane.f32.xlu0 %v200_v29 }
  0xef   :  { %v189_v32 = vadd.f32 %v188_v30, %v54_v27  ;;  %v197_v36 = vadd.f32 %v196_v31, %v64_v28 }
  0xf0   :  { %v190_v34 = vpop.f32.mrf.mxu0  ;;  %v198_v35 = vpop.f32.mrf.mxu1 }
  0xf1   :  { %v203_v37 = vsel %vm144_vm0, %v189_v32, 0.0  ;;  %v209_v38 = vsel %vm144_vm0, %v197_v36, 0.0 }
  0xf2   :  { %204 = vadd.xlane.f32.xlu1 %v203_v37  ;;  %207 = vadd.xlane.f32.xlu0 %v206_v33 }
  0xf6   :  { %210 = vadd.xlane.f32.xlu0 %v209_v38 }
 0x103   :  { %259 = vperm.xlu1 %352, %v253_v39  }
 0x107   :  { %269 = vperm.xlu1 %352, %v255_v40  }
 0x10b   :  { %274 = vperm.xlu1 %352, %v256_v41  }
 0x10c   :  { %264 = vperm.xlu0 %351, %v254_v42  }
 0x10f   :  { %354 = vset.pattern.permute.xlu1 %v380_v43 }
 0x110   :  { %286 = vperm.xlu1 %354, %v254_v42   ;;  %353 = vset.pattern.permute.xlu0 %v380_v43 }
 0x111   :  { %282 = vperm.xlu0 %353, %v253_v39  }
 0x177   :  { %v202_v44 = vpop.xlane.xlu0 %201 }
 0x178   :  { %v213_v45 = vmul.f32 0.03125, %v202_v44 }
 0x17a   :  { %v217_v46 = vsub.f32 %v186_v23, %v213_v45 }
 0x17b   :  { %v205_v47 = vpop.xlane.xlu1 %204  ;;  %v208_v48 = vpop.xlane.xlu0 %207 }
 0x17c   :  { %v214_v49 = vmul.f32 0.03125, %v205_v47  ;;  %v215_v50 = vmul.f32 0.03125, %v208_v48  ;;  %v221_v51 = vmul.f32 %v217_v46, %v217_v46 }
 0x17e   :  { %v218_v52 = vsub.f32 %v189_v32, %v214_v49  ;;  %v219_v53 = vsub.f32 %v194_v24, %v215_v50  ;;  %v225_v54 = vsel %vm144_vm0, %v221_v51, 0.0 }
 0x17f   :  { %226 = vadd.xlane.f32.xlu1 %v225_v54  ;;  %v211_v55 = vpop.xlane.xlu0 %210  ;;  %v260_v0 = vpop.permute.xlu1 %259 }
 0x180   :  { %v216_v56 = vmul.f32 0.03125, %v211_v55  ;;  %v222_v57 = vmul.f32 %v218_v52, %v218_v52  ;;  %v223_v58 = vmul.f32 %v219_v53, %v219_v53 }
 0x182   :  { %v220_v59 = vsub.f32 %v197_v36, %v216_v56  ;;  %v228_v60 = vsel %vm144_vm0, %v222_v57, 0.0  ;;  %v231_v61 = vsel %vm144_vm0, %v223_v58, 0.0 }
 0x183   :  { %229 = vadd.xlane.f32.xlu0 %v228_v60  ;;  %232 = vadd.xlane.f32.xlu1 %v231_v61  ;;  %v270_v1 = vpop.permute.xlu1 %269 }
 0x184   :  { %v224_v62 = vmul.f32 %v220_v59, %v220_v59 }
 0x186   :  { %v234_v63 = vsel %vm144_vm0, %v224_v62, 0.0 }
 0x187   :  { %235 = vadd.xlane.f32.xlu0 %v234_v63  ;;  %v275_v2 = vpop.permute.xlu1 %274  ;;  %v265_v3 = vpop.permute.xlu0 %264 }
 0x18b   :  { %v287_v4 = vpop.permute.xlu1 %286 }
 0x18c   :  { %v283_v5 = vpop.permute.xlu0 %282 }
 0x194   :  { %290 = vperm.xlu1 %354, %v255_v40  }
 0x19d   :  { %294 = vperm.xlu0 %353, %v256_v41  }
 0x208   :  { %v227_v6 = vpop.xlane.xlu1 %226 }
 0x209   :  { %v237_v7 = vmul.f32 0.03125, %v227_v6 }
 0x20b   :  { %v241_v8 = vadd.f32 1e-05, %v237_v7 }
 0x20c   :  { %v233_v9 = vpop.xlane.xlu1 %232  ;;  %v230_v10 = vpop.xlane.xlu0 %229 }
 0x20d   :  { %371 = vrsqrt.f32 %v241_v8  ;;  %v239_v11 = vmul.f32 0.03125, %v233_v9  ;;  %v238_v12 = vmul.f32 0.03125, %v230_v10 }
 0x20f   :  { %v243_v13 = vadd.f32 1e-05, %v239_v11  ;;  %v242_v14 = vadd.f32 1e-05, %v238_v12 }
 0x210   :  { %v236_v15 = vpop.xlane.xlu0 %235  ;;  %v291_v30 = vpop.permute.xlu1 %290 }
 0x211   :  { %373 = vrsqrt.f32 %v243_v13  ;;  %v240_v16 = vmul.f32 0.03125, %v236_v15 }
 0x212   :  { %375 = vrsqrt.f32 %v242_v14 }
 0x213   :  { %v244_v17 = vadd.f32 1e-05, %v240_v16 }
 0x215   :  { %377 = vrsqrt.f32 %v244_v17 }
 0x218   :  { %v295_v37 = vpop.permute.xlu0 %294 }
 0x21a   :  { %v372_v18 = vpop.eup %371 }
 0x21b   :  { %v249_v19 = vmul.f32 %v372_v18, %v217_v46 }
 0x21d   :  { %v277_v20 = vmul.f32 %v260_v0, %v249_v19 }
 0x21e   :  { %v374_v21 = vpop.eup %373 }
 0x21f   :  { %v376_v22 = vpop.eup %375  ;;  %v251_v23 = vmul.f32 %v374_v21, %v219_v53  ;;  %v297_v24 = vadd.f32 %v283_v5, %v277_v20 }
 0x220   :  { %v250_v25 = vmul.f32 %v376_v22, %v218_v52 }
 0x221   :  { %v279_v26 = vmul.f32 %v270_v1, %v251_v23  ;;  %v301_v27 = vmax.f32 %v297_v24, 0.0 }
 0x222   :  { %v378_v28 = vpop.eup %377  ;;  %v278_v29 = vmul.f32 %v265_v3, %v250_v25 }
 0x223   :  { %v299_v31 = vadd.f32 %v291_v30, %v279_v26  ;;  %305 = vst.msk [vmem:[%s524_s4] sm:$0xff] %vm144_vm0, %v301_v27  ;;  %v252_v32 = vmul.f32 %v378_v28, %v220_v59 }
 0x224   :  { %v298_v33 = vadd.f32 %v287_v4, %v278_v29 }
 0x225   :  { %v303_v34 = vmax.f32 %v299_v31, 0.0  ;;  %v280_v35 = vmul.f32 %v275_v2, %v252_v32 }
 0x226   :  { %v302_v36 = vmax.f32 %v298_v33, 0.0 }
 0x227   :  { %307 = vst.msk [vmem:[%s524_s4 + $0x10] sm:$0xff] %vm144_vm0, %v303_v34  ;;  %v300_v38 = vadd.f32 %v295_v37, %v280_v35 }
 0x228   :  { %306 = vst.msk [vmem:[%s524_s4 + $0x8] sm:$0xff] %vm144_vm0, %v302_v36 }
 0x229   :  { %v304_v39 = vmax.f32 %v300_v38, 0.0 }
 0x22b   :  { %308 = vst.msk [vmem:[%s524_s4 + $0x18] sm:$0xff] %vm144_vm0, %v304_v39 }

// kernel: generator_forward.6
= control target key start
LH: loop header
LB: loop body
LE: loop exit
PB: predicated region body
PF: predicated region fallthrough
CT: control target
= control target key end

     0   :  { %v575_v1 = vmov 0   ;;  %v576_v39 = vmov 1   ;;  %s728_s1 = inlined_call_operand.vmem [shape: bf16[512,128], index: 1, kind: input, shape index: {}]   ;;  %s729_s0 = inlined_call_operand.vmem [shape: bf16[16,512], index: 0, kind: input, shape index: {}]   ;;  %s730_s2 = inlined_call_operand.vmem [shape: f32[16,1], index: 2, kind: input, shape index: {}]   ;;  %s731_s3 = inlined_call_operand.vmem [shape: f32[16,2], index: 3, kind: input, shape index: {}]   ;;  %s732_s4 = inlined_call_operand.vmem [shape: f32[16,128], index: 4, kind: output, shape index: {}]  }
   0x1   :  { %v533_v0 = vld [vmem:[%s728_s1 + $0x78] sm:$0xff]   ;;  %529 = vset.pattern.permute.xlu0 %v575_v1  ;;  %530 = vset.pattern.permute.xlu1 %v575_v1  ;;  %v537_v5 = vld [vmem:[%s728_s1 + $0x70] sm:$0xff]   ;;  %v541_v9 = vld [vmem:[%s728_s1 + $0x68] sm:$0xff]  }
   0x2   :  { %v534_v2 = vld [vmem:[%s728_s1 + $0xf8] sm:$0xff]   ;;  %483 = vmatprep.subr.bf16.mxu0 %v533_v0  ;;  %v538_v6 = vld [vmem:[%s728_s1 + $0xf0] sm:$0xff]   ;;  %v542_v10 = vld [vmem:[%s728_s1 + $0xe8] sm:$0xff]  }
   0x3   :  { %v535_v3 = vld [vmem:[%s728_s1 + $0x38] sm:$0xff]   ;;  %505 = vmatprep.subr.bf16.mxu1 %v534_v2  ;;  %v539_v7 = vld [vmem:[%s728_s1 + $0x30] sm:$0xff]   ;;  %v543_v11 = vld [vmem:[%s728_s1 + $0x28] sm:$0xff]  }
   0x4   :  { %v536_v4 = vld [vmem:[%s728_s1 + $0xb8] sm:$0xff]   ;;  %484 = vmatpush3.bf16.msra.mxu0 %v535_v3  ;;  %v540_v8 = vld [vmem:[%s728_s1 + $0xb0] sm:$0xff]   ;;  %v544_v12 = vld [vmem:[%s728_s1 + $0xa8] sm:$0xff]  }
   0x5   :  { %506 = vmatpush3.bf16.msra.mxu1 %v536_v4  ;;  %485 = vmatprep.subr.bf16.mxu0 %v537_v5  ;;  %v545_v13 = vld [vmem:[%s728_s1 + $0x60] sm:$0xff]   ;;  %v549_v17 = vld [vmem:[%s728_s1 + $0x58] sm:$0xff]   ;;  %v553_v21 = vld [vmem:[%s728_s1 + $0x50] sm:$0xff]  }
   0x6   :  { %507 = vmatprep.subr.bf16.mxu1 %v538_v6  ;;  %v546_v14 = vld [vmem:[%s728_s1 + $0xe0] sm:$0xff]   ;;  %v550_v18 = vld [vmem:[%s728_s1 + $0xd8] sm:$0xff]   ;;  %v554_v22 = vld [vmem:[%s728_s1 + $0xd0] sm:$0xff]  }
   0x7   :  { %v547_v15 = vld [vmem:[%s728_s1 + $0x20] sm:$0xff]   ;;  %v551_v19 = vld [vmem:[%s728_s1 + $0x18] sm:$0xff]   ;;  %v555_v23 = vld [vmem:[%s728_s1 + $0x10] sm:$0xff]  }
   0x8   :  { %486 = vmatpush3.bf16.msra.mxu0 %v539_v7  ;;  %v548_v16 = vld [vmem:[%s728_s1 + $0xa0] sm:$0xff]   ;;  %v552_v20 = vld [vmem:[%s728_s1 + $0x98] sm:$0xff]   ;;  %v556_v24 = vld [vmem:[%s728_s1 + $0x90] sm:$0xff]  }
   0x9   :  { %508 = vmatpush3.bf16.msra.mxu1 %v540_v8  ;;  %487 = vmatprep.subr.bf16.mxu0 %v541_v9  ;;  %v557_v25 = vld [vmem:[%s728_s1 + $0x48] sm:$0xff]   ;;  %v561_v29 = vld [vmem:[%s728_s1 + $0x40] sm:$0xff]  }
   0xa   :  { %509 = vmatprep.subr.bf16.mxu1 %v542_v10  ;;  %v558_v26 = vld [vmem:[%s728_s1 + $0xc8] sm:$0xff]   ;;  %v562_v30 = vld [vmem:[%s728_s1 + $0xc0] sm:$0xff]  }
   0xb   :  { %v559_v27 = vld [vmem:[%s728_s1 + $0x8] sm:$0xff]   ;;  %v563_v31 = vld [vmem:[%s728_s1] sm:$0xff]  }
   0xc   :  { %488 = vmatpush3.bf16.msra.mxu0 %v543_v11  ;;  %v560_v28 = vld [vmem:[%s728_s1 + $0x88] sm:$0xff]   ;;  %v564_v32 = vld [vmem:[%s728_s1 + $0x80] sm:$0xff]  }
   0xd   :  { %510 = vmatpush3.bf16.msra.mxu1 %v544_v12  ;;  %489 = vmatprep.subr.bf16.mxu0 %v545_v13  ;;  %v565_v33 = vld [vmem:[%s729_s0] ss:$16 sps:$4 sm:$0xff]   ;;  %v567_v34 = vld [vmem:[%s729_s0 + $0x4] ss:$16 sps:$4 sm:$0xff]   ;;  %v568_v35 = vld [vmem:[%s729_s0 + $0x8] ss:$16 sps:$4 sm:$0xff]  }
   0xe   :  { %511 = vmatprep.subr.bf16.mxu1 %v546_v14  ;;  %v570_v36 = vld [vmem:[%s729_s0 + $0xc] ss:$16 sps:$4 sm:$0xff]   ;;  %v86_v37 = vld [vmem:[%s730_s2] sm:$0xff]  ;;  %342 = vmatprep.mubr.bf16.mxu0 %v567_v34 }
   0xf   :  { %90 = vperm.xlu0 %529, %v86_v37   ;;  %383 = vmatprep.mubr.bf16.mxu1 %v570_v36  ;;  %v87_v38 = vld [vmem:[%s730_s2 + $0x8] sm:$0xff]  ;;  %v415_v58 = vld [vmem:[%s731_s3] sm:$0xff] }
  0x10   :  { %490 = vmatpush3.bf16.msra.mxu0 %v547_v15  ;;  %v416_v59 = vld [vmem:[%s731_s3 + $0x8] sm:$0xff] }
  0x11   :  { %512 = vmatpush3.bf16.msra.mxu1 %v548_v16  ;;  %491 = vmatprep.subr.bf16.mxu0 %v549_v17 }
  0x12   :  { %513 = vmatprep.subr.bf16.mxu1 %v550_v18 }
  0x13   :  { %95 = vperm.xlu0 %529, %v87_v38  }
  0x14   :  { %492 = vmatpush3.bf16.msra.mxu0 %v551_v19 }
  0x15   :  { %514 = vmatpush3.bf16.msra.mxu1 %v552_v20  ;;  %493 = vmatprep.subr.bf16.mxu0 %v553_v21 }
  0x16   :  { %515 = vmatprep.subr.bf16.mxu1 %v554_v22 }
  0x17   :  { %532 = vset.pattern.permute.xlu0 %v576_v39 }
  0x18   :  { %494 = vmatpush3.bf16.msra.mxu0 %v555_v23 }
  0x19   :  { %516 = vmatpush3.bf16.msra.mxu1 %v556_v24  ;;  %495 = vmatprep.subr.bf16.mxu0 %v557_v25 }
  0x1a   :  { %517 = vmatprep.subr.bf16.mxu1 %v558_v26 }
  0x1c   :  { %496 = vmatpush3.bf16.msra.mxu0 %v559_v27 }
  0x1d   :  { %518 = vmatpush3.bf16.msra.mxu1 %v560_v28  ;;  %497 = vmatprep.subr.bf16.mxu0 %v561_v29 }
  0x1e   :  { %519 = vmatprep.subr.bf16.mxu1 %v562_v30 }
  0x20   :  { %498 = vmatpush3.bf16.msra.mxu0 %v563_v31 }
  0x21   :  { %520 = vmatpush3.bf16.msra.mxu1 %v564_v32 }
  0x23   :  { %343 = vmatmul.mubr.bf16.vlgmr.msra.gmra.mxu0 %v565_v33 }
  0x24   :  { %384 = vmatmul.mubr.bf16.vlgmr.msra.gmra.mxu1 %v568_v35 }
  0x8a   :  { %v91_v42 = vpop.permute.xlu0 %90 }
  0x8e   :  { %v96_v54 = vpop.permute.xlu0 %95 }
  0xe3   :  { %v499_v40 = vpop.f32.mrf.mxu0 }
  0xe4   :  { %v521_v41 = vpop.f32.mrf.mxu1 }
  0xe5   :  { %v500_v43 = vpop.f32.mrf.mxu0 }
  0xe6   :  { %v501_v44 = vadd.f32 %v500_v43, %v499_v40  ;;  %v522_v45 = vpop.f32.mrf.mxu1 }
  0xe7   :  { %v502_v46 = vpop.f32.mrf.mxu0  ;;  %v523_v48 = vadd.f32 %v522_v45, %v521_v41 }
  0xe8   :  { %v345_v47 = vadd.f32 %v501_v44, %v91_v42  ;;  %v524_v49 = vpop.f32.mrf.mxu1 }
  0xe9   :  { %v503_v50 = vpop.f32.mrf.mxu0 }
  0xea   :  { %v504_v51 = vadd.f32 %v503_v50, %v502_v46  ;;  %v525_v52 = vpop.f32.mrf.mxu1  ;;  %v386_v53 = vadd.f32 %v523_v48, %v345_v47 }
  0xeb   :  { %v526_v56 = vadd.f32 %v525_v52, %v524_v49 }
  0xec   :  { %v348_v55 = vadd.f32 %v504_v51, %v96_v54  ;;  %392 = vadd.xlane.f32.xlu1 %v386_v53 }
  0xee   :  { %v389_v57 = vadd.f32 %v526_v56, %v348_v55 }
  0xf0   :  { %394 = vadd.xlane.f32.xlu1 %v389_v57 }
 0x101   :  { %419 = vperm.xlu1 %530, %v415_v58  }
 0x105   :  { %424 = vperm.xlu1 %530, %v416_v59  }
 0x109   :  { %531 = vset.pattern.permute.xlu1 %v576_v39 }
 0x10a   :  { %430 = vperm.xlu1 %531, %v415_v58  }
 0x175   :  { %v393_v60 = vpop.xlane.xlu1 %392 }
 0x176   :  { %v397_v61 = vmul.f32 0.0078125, %v393_v60 }
 0x178   :  { %v399_v62 = vsub.f32 %v386_v53, %v397_v61 }
 0x179   :  { %v395_v63 = vpop.xlane.xlu1 %394 }
 0x17a   :  { %v398_v0 = vmul.f32 0.0078125, %v395_v63  ;;  %v401_v1 = vmul.f32 %v399_v62, %v399_v62 }
 0x17c   :  { %v400_v2 = vsub.f32 %v389_v57, %v398_v0  ;;  %403 = vadd.xlane.f32.xlu0 %v401_v1 }
 0x17d   :  { %v420_v4 = vpop.permute.xlu1 %419 }
 0x17e   :  { %v402_v3 = vmul.f32 %v400_v2, %v400_v2 }
 0x180   :  { %405 = vadd.xlane.f32.xlu1 %v402_v3 }
 0x181   :  { %v425_v5 = vpop.permute.xlu1 %424 }
 0x185   :  { %v431_v6 = vpop.permute.xlu1 %430 }
 0x191   :  { %434 = vperm.xlu1 %531, %v416_v59  }
 0x205   :  { %v404_v7 = vpop.xlane.xlu0 %403 }
 0x206   :  { %v407_v8 = vmul.f32 0.0078125, %v404_v7 }
 0x208   :  { %v409_v9 = vadd.f32 1e-05, %v407_v8 }
 0x209   :  { %v406_v10 = vpop.xlane.xlu1 %405 }
 0x20a   :  { %571 = vrsqrt.f32 %v409_v9  ;;  %v408_v11 = vmul.f32 0.0078125, %v406_v10 }
 0x20c   :  { %v410_v12 = vadd.f32 1e-05, %v408_v11 }
 0x20d   :  { %v435_v21 = vpop.permute.xlu1 %434 }
 0x20e   :  { %573 = vrsqrt.f32 %v410_v12 }
 0x217   :  { %v572_v13 = vpop.eup %571 }
 0x218   :  { %v413_v14 = vmul.f32 %v572_v13, %v399_v62 }
 0x21a   :  { %v427_v15 = vmul.f32 %v420_v4, %v413_v14 }
 0x21b   :  { %v574_v16 = vpop.eup %573 }
 0x21c   :  { %v414_v17 = vmul.f32 %v574_v16, %v400_v2  ;;  %v437_v18 = vadd.f32 %v431_v6, %v427_v15 }
 0x21e   :  { %v428_v19 = vmul.f32 %v425_v5, %v414_v17  ;;  %v439_v20 = vmax.f32 %v437_v18, 0.0 }
 0x220   :  { %441 = vst [vmem:[%s732_s4] sm:$0xff] %v439_v20  ;;  %v438_v22 = vadd.f32 %v435_v21, %v428_v19 }
 0x222   :  { %v440_v23 = vmax.f32 %v438_v22, 0.0 }
 0x224   :  { %442 = vst [vmem:[%s732_s4 + $0x8] sm:$0xff] %v440_v23 }

// kernel: generator_forward.7
= control target key start
LH: loop header
LB: loop body
LE: loop exit
PB: predicated region body
PF: predicated region fallthrough
CT: control target
= control target key end

     0   :  { %v795_v1 = vmov 0   ;;  %s1056_s1 = inlined_call_operand.vmem [shape: bf16[256,512], index: 1, kind: input, shape index: {}]   ;;  %s1057_s0 = inlined_call_operand.vmem [shape: bf16[16,256], index: 0, kind: input, shape index: {}]   ;;  %s1058_s2 = inlined_call_operand.vmem [shape: f32[16,1], index: 2, kind: input, shape index: {}]   ;;  %s1059_s3 = inlined_call_operand.vmem [shape: f32[16,2], index: 3, kind: input, shape index: {}]   ;;  %s1060_s4 = inlined_call_operand.vmem [shape: f32[16,512], index: 4, kind: output, shape index: {}]  }
   0x1   :  { %v692_v0 = vld [vmem:[%s1056_s1 + $0xe4] ss:$16 sps:$4 sm:$0xff]   ;;  %688 = vset.pattern.permute.xlu0 %v795_v1  ;;  %689 = vset.pattern.permute.xlu1 %v795_v1  ;;  %v694_v2 = vld [vmem:[%s1056_s1 + $0xec] ss:$16 sps:$4 sm:$0xff]   ;;  %v696_v3 = vld [vmem:[%s1056_s1 + $0xe0] ss:$16 sps:$4 sm:$0xff]  }
   0x2   :  { %425 = vmatprep.subr.bf16.mxu0 %v692_v0  ;;  %v697_v4 = vld [vmem:[%s1056_s1 + $0xe8] ss:$16 sps:$4 sm:$0xff]   ;;  %468 = vmatprep.subr.bf16.mxu1 %v694_v2  ;;  %v698_v5 = vld [vmem:[%s1056_s1 + $0xc4] ss:$16 sps:$4 sm:$0xff]   ;;  %v700_v6 = vld [vmem:[%s1056_s1 + $0xcc] ss:$16 sps:$4 sm:$0xff]  }
   0x3   :  { %426 = vmatpush1.bf16.msra.mxu0 %v696_v3  ;;  %469 = vmatpush1.bf16.msra.mxu1 %v697_v4  ;;  %v702_v7 = vld [vmem:[%s1056_s1 + $0xc0] ss:$16 sps:$4 sm:$0xff]   ;;  %v703_v8 = vld [vmem:[%s1056_s1 + $0xc8] ss:$16 sps:$4 sm:$0xff]   ;;  %v704_v9 = vld [vmem:[%s1056_s1 + $0xa4] ss:$16 sps:$4 sm:$0xff]  }
   0x4   :  { %427 = vmatprep.subr.bf16.mxu0 %v698_v5  ;;  %470 = vmatprep.subr.bf16.mxu1 %v700_v6  ;;  %v706_v10 = vld [vmem:[%s1056_s1 + $0xac] ss:$16 sps:$4 sm:$0xff]   ;;  %v708_v11 = vld [vmem:[%s1056_s1 + $0xa0] ss:$16 sps:$4 sm:$0xff]   ;;  %v709_v12 = vld [vmem:[%s1056_s1 + $0xa8] ss:$16 sps:$4 sm:$0xff]  }
   0x5   :  { %v710_v13 = vld [vmem:[%s1056_s1 + $0x84] ss:$16 sps:$4 sm:$0xff]   ;;  %v712_v14 = vld [vmem:[%s1056_s1 + $0x8c] ss:$16 sps:$4 sm:$0xff]   ;;  %v714_v15 = vld [vmem:[%s1056_s1 + $0x80] ss:$16 sps:$4 sm:$0xff]  }
   0x6   :  { %v715_v16 = vld [vmem:[%s1056_s1 + $0x88] ss:$16 sps:$4 sm:$0xff]   ;;  %v716_v17 = vld [vmem:[%s1056_s1 + $0x64] ss:$16 sps:$4 sm:$0xff]   ;;  %v718_v18 = vld [vmem:[%s1056_s1 + $0x6c] ss:$16 sps:$4 sm:$0xff]  }
   0x7   :  { %428 = vmatpush1.bf16.msra.mxu0 %v702_v7  ;;  %471 = vmatpush1.bf16.msra.mxu1 %v703_v8  ;;  %v720_v19 = vld [vmem:[%s1056_s1 + $0x60] ss:$16 sps:$4 sm:$0xff]   ;;  %v721_v20 = vld [vmem:[%s1056_s1 + $0x68] ss:$16 sps:$4 sm:$0xff]   ;;  %v722_v21 = vld [vmem:[%s1056_s1 + $0x44] ss:$16 sps:$4 sm:$0xff]  }
   0x8   :  { %429 = vmatprep.subr.bf16.mxu0 %v704_v9  ;;  %472 = vmatprep.subr.bf16.mxu1 %v706_v10  ;;  %v724_v22 = vld [vmem:[%s1056_s1 + $0x4c] ss:$16 sps:$4 sm:$0xff]   ;;  %v726_v23 = vld [vmem:[%s1056_s1 + $0x40] ss:$16 sps:$4 sm:$0xff]   ;;  %v727_v24 = vld [vmem:[%s1056_s1 + $0x48] ss:$16 sps:$4 sm:$0xff]  }
   0x9   :  { %v728_v25 = vld [vmem:[%s1056_s1 + $0x24] ss:$16 sps:$4 sm:$0xff]   ;;  %v730_v26 = vld [vmem:[%s1056_s1 + $0x2c] ss:$16 sps:$4 sm:$0xff]   ;;  %v732_v27 = vld [vmem:[%s1056_s1 + $0x20] ss:$16 sps:$4 sm:$0xff]  }
   0xa   :  { %v733_v28 = vld [vmem:[%s1056_s1 + $0x28] ss:$16 sps:$4 sm:$0xff]   ;;  %v734_v29 = vld [vmem:[%s1056_s1 + $0x4] ss:$16 sps:$4 sm:$0xff]   ;;  %v736_v30 = vld [vmem:[%s1056_s1 + $0xc] ss:$16 sps:$4 sm:$0xff]  }
   0xb   :  { %430 = vmatpush1.bf16.msra.mxu0 %v708_v11  ;;  %473 = vmatpush1.bf16.msra.mxu1 %v709_v12  ;;  %v738_v31 = vld [vmem:[%s1056_s1] ss:$16 sps:$4 sm:$0xff]   ;;  %v739_v32 = vld [vmem:[%s1056_s1 + $0x8] ss:$16 sps:$4 sm:$0xff]   ;;  %v740_v33 = vld [vmem:[%s1056_s1 + $0x1e4] ss:$16 sps:$4 sm:$0xff]  }
   0xc   :  { %431 = vmatprep.subr.bf16.mxu0 %v710_v13  ;;  %474 = vmatprep.subr.bf16.mxu1 %v712_v14  ;;  %v742_v34 = vld [vmem:[%s1056_s1 + $0x1ec] ss:$16 sps:$4 sm:$0xff]   ;;  %v744_v35 = vld [vmem:[%s1056_s1 + $0x1e0] ss:$16 sps:$4 sm:$0xff]   ;;  %v745_v36 = vld [vmem:[%s1056_s1 + $0x1e8] ss:$16 sps:$4 sm:$0xff]  }
   0xd   :  { %v746_v37 = vld [vmem:[%s1056_s1 + $0x1c4] ss:$16 sps:$4 sm:$0xff]   ;;  %v748_v38 = vld [vmem:[%s1056_s1 + $0x1cc] ss:$16 sps:$4 sm:$0xff]   ;;  %v750_v39 = vld [vmem:[%s1056_s1 + $0x1c0] ss:$16 sps:$4 sm:$0xff]  }
   0xe   :  { %v751_v40 = vld [vmem:[%s1056_s1 + $0x1c8] ss:$16 sps:$4 sm:$0xff]   ;;  %v752_v41 = vld [vmem:[%s1056_s1 + $0x1a4] ss:$16 sps:$4 sm:$0xff]   ;;  %v754_v42 = vld [vmem:[%s1056_s1 + $0x1ac] ss:$16 sps:$4 sm:$0xff]  }
   0xf   :  { %432 = vmatpush1.bf16.msra.mxu0 %v714_v15  ;;  %475 = vmatpush1.bf16.msra.mxu1 %v715_v16  ;;  %v756_v43 = vld [vmem:[%s1056_s1 + $0x1a0] ss:$16 sps:$4 sm:$0xff]   ;;  %v757_v44 = vld [vmem:[%s1056_s1 + $0x1a8] ss:$16 sps:$4 sm:$0xff]   ;;  %v758_v45 = vld [vmem:[%s1056_s1 + $0x184] ss:$16 sps:$4 sm:$0xff]  }
  0x10   :  { %433 = vmatprep.subr.bf16.mxu0 %v716_v17  ;;  %476 = vmatprep.subr.bf16.mxu1 %v718_v18  ;;  %v760_v46 = vld [vmem:[%s1056_s1 + $0x18c] ss:$16 sps:$4 sm:$0xff]   ;;  %v762_v48 = vld [vmem:[%s1056_s1 + $0x180] ss:$16 sps:$4 sm:$0xff]   ;;  %v763_v49 = vld [vmem:[%s1056_s1 + $0x188] ss:$16 sps:$4 sm:$0xff]  }
  0x11   :  { %v790_v47 = vld [vmem:[%s1057_s0 + $0x4] ss:$8 sps:$4 sm:$0xff]   ;;  %v768_v53 = vld [vmem:[%s1056_s1 + $0x160] ss:$16 sps:$4 sm:$0xff]   ;;  %v769_v54 = vld [vmem:[%s1056_s1 + $0x168] ss:$16 sps:$4 sm:$0xff]  }
  0x12   :  { %v83_v50 = vld [vmem:[%s1058_s2] sm:$0xff]  ;;  %v766_v52 = vld [vmem:[%s1056_s1 + $0x16c] ss:$16 sps:$4 sm:$0xff]   ;;  %457 = vmatprep.mubr.bf16.mxu0 %v790_v47  ;;  %500 = vmatprep.mubr.bf16.mxu1 %v790_v47  ;;  %v775_v59 = vld [vmem:[%s1056_s1 + $0x148] ss:$16 sps:$4 sm:$0xff]   ;;  %v796_v5 = vmov 1  }
  0x13   :  { %434 = vmatpush1.bf16.msra.mxu0 %v720_v19  ;;  %477 = vmatpush1.bf16.msra.mxu1 %v721_v20  ;;  %v764_v51 = vld [vmem:[%s1056_s1 + $0x164] ss:$16 sps:$4 sm:$0xff]   ;;  %v84_v55 = vld [vmem:[%s1058_s2 + $0x8] sm:$0xff]  ;;  %v774_v58 = vld [vmem:[%s1056_s1 + $0x140] ss:$16 sps:$4 sm:$0xff]  }
  0x14   :  { %435 = vmatprep.subr.bf16.mxu0 %v722_v21  ;;  %478 = vmatprep.subr.bf16.mxu1 %v724_v22  ;;  %v770_v56 = vld [vmem:[%s1056_s1 + $0x144] ss:$16 sps:$4 sm:$0xff]   ;;  %v772_v57 = vld [vmem:[%s1056_s1 + $0x14c] ss:$16 sps:$4 sm:$0xff]   ;;  %v780_v62 = vld [vmem:[%s1056_s1 + $0x120] ss:$16 sps:$4 sm:$0xff]  }
  0x15   :  { %87 = vperm.xlu0 %688, %v83_v50   ;;  %v776_v60 = vld [vmem:[%s1056_s1 + $0x124] ss:$16 sps:$4 sm:$0xff]   ;;  %v778_v61 = vld [vmem:[%s1056_s1 + $0x12c] ss:$16 sps:$4 sm:$0xff]   ;;  %v781_v63 = vld [vmem:[%s1056_s1 + $0x128] ss:$16 sps:$4 sm:$0xff]  }
  0x16   :  { %v782_v0 = vld [vmem:[%s1056_s1 + $0x104] ss:$16 sps:$4 sm:$0xff]   ;;  %v784_v1 = vld [vmem:[%s1056_s1 + $0x10c] ss:$16 sps:$4 sm:$0xff]   ;;  %v786_v2 = vld [vmem:[%s1056_s1 + $0x100] ss:$16 sps:$4 sm:$0xff]  }
  0x17   :  { %436 = vmatpush1.bf16.msra.mxu0 %v726_v23  ;;  %479 = vmatpush1.bf16.msra.mxu1 %v727_v24  ;;  %v787_v3 = vld [vmem:[%s1056_s1 + $0x108] ss:$16 sps:$4 sm:$0xff]  }
  0x18   :  { %437 = vmatprep.subr.bf16.mxu0 %v728_v25  ;;  %480 = vmatprep.subr.bf16.mxu1 %v730_v26  ;;  %v788_v4 = vld [vmem:[%s1057_s0] ss:$8 sps:$4 sm:$0xff]  }
  0x19   :  { %92 = vperm.xlu0 %688, %v84_v55  }
  0x1b   :  { %438 = vmatpush1.bf16.msra.mxu0 %v732_v27  ;;  %481 = vmatpush1.bf16.msra.mxu1 %v733_v28 }
  0x1c   :  { %439 = vmatprep.subr.bf16.mxu0 %v734_v29  ;;  %482 = vmatprep.subr.bf16.mxu1 %v736_v30  ;;  %v564_v30 = vld [vmem:[%s1059_s3] sm:$0xff] }
  0x1d   :  { %691 = vset.pattern.permute.xlu0 %v796_v5 }
  0x1f   :  { %440 = vmatpush1.bf16.msra.mxu0 %v738_v31  ;;  %483 = vmatpush1.bf16.msra.mxu1 %v739_v32  ;;  %v565_v31 = vld [vmem:[%s1059_s3 + $0x8] sm:$0xff] }
  0x20   :  { %441 = vmatprep.subr.bf16.mxu0 %v740_v33  ;;  %484 = vmatprep.subr.bf16.mxu1 %v742_v34 }
  0x23   :  { %442 = vmatpush2.bf16.msra.mxu0 %v744_v35  ;;  %485 = vmatpush2.bf16.msra.mxu1 %v745_v36 }
  0x24   :  { %443 = vmatprep.subr.bf16.mxu0 %v746_v37  ;;  %486 = vmatprep.subr.bf16.mxu1 %v748_v38 }
  0x27   :  { %444 = vmatpush2.bf16.msra.mxu0 %v750_v39  ;;  %487 = vmatpush2.bf16.msra.mxu1 %v751_v40 }
  0x28   :  { %445 = vmatprep.subr.bf16.mxu0 %v752_v41  ;;  %488 = vmatprep.subr.bf16.mxu1 %v754_v42 }
  0x2b   :  { %446 = vmatpush2.bf16.msra.mxu0 %v756_v43  ;;  %489 = vmatpush2.bf16.msra.mxu1 %v757_v44 }
  0x2c   :  { %447 = vmatprep.subr.bf16.mxu0 %v758_v45  ;;  %490 = vmatprep.subr.bf16.mxu1 %v760_v46 }
  0x2f   :  { %448 = vmatpush2.bf16.msra.mxu0 %v762_v48  ;;  %491 = vmatpush2.bf16.msra.mxu1 %v763_v49 }
  0x30   :  { %449 = vmatprep.subr.bf16.mxu0 %v764_v51  ;;  %492 = vmatprep.subr.bf16.mxu1 %v766_v52 }
  0x33   :  { %450 = vmatpush2.bf16.msra.mxu0 %v768_v53  ;;  %493 = vmatpush2.bf16.msra.mxu1 %v769_v54 }
  0x34   :  { %451 = vmatprep.subr.bf16.mxu0 %v770_v56  ;;  %494 = vmatprep.subr.bf16.mxu1 %v772_v57 }
  0x37   :  { %452 = vmatpush2.bf16.msra.mxu0 %v774_v58  ;;  %495 = vmatpush2.bf16.msra.mxu1 %v775_v59 }
  0x38   :  { %453 = vmatprep.subr.bf16.mxu0 %v776_v60  ;;  %496 = vmatprep.subr.bf16.mxu1 %v778_v61 }
  0x3b   :  { %454 = vmatpush2.bf16.msra.mxu0 %v780_v62  ;;  %497 = vmatpush2.bf16.msra.mxu1 %v781_v63 }
  0x3c   :  { %455 = vmatprep.subr.bf16.mxu0 %v782_v0  ;;  %498 = vmatprep.subr.bf16.mxu1 %v784_v1 }
  0x3f   :  { %456 = vmatpush2.bf16.msra.mxu0 %v786_v2  ;;  %499 = vmatpush2.bf16.msra.mxu1 %v787_v3 }
  0x42   :  { %458 = vmatmul.mubr.bf16.vlgmr.msra.gmra.mxu0 %v788_v4  ;;  %501 = vmatmul.mubr.bf16.vlgmr.msra.gmra.mxu1 %v788_v4 }
  0x90   :  { %v88_v6 = vpop.permute.xlu0 %87 }
  0x94   :  { %v93_v17 = vpop.permute.xlu0 %92 }
 0x102   :  { %v459_v7 = vpop.f32.mrf.mxu0  ;;  %v502_v8 = vpop.f32.mrf.mxu1 }
 0x103   :  { %v460_v11 = vadd.f32 %v459_v7, %v88_v6  ;;  %v503_v15 = vadd.f32 %v502_v8, %v88_v6 }
 0x104   :  { %v461_v9 = vpop.f32.mrf.mxu0  ;;  %v504_v10 = vpop.f32.mrf.mxu1 }
 0x105   :  { %v462_v12 = vadd.f32 %v461_v9, %v88_v6  ;;  %v505_v19 = vadd.f32 %v504_v10, %v88_v6 }
 0x106   :  { %v463_v13 = vpop.f32.mrf.mxu0  ;;  %v506_v14 = vpop.f32.mrf.mxu1 }
 0x107   :  { %v511_v16 = vadd.f32 %v462_v12, %v460_v11  ;;  %v464_v20 = vadd.f32 %v463_v13, %v93_v17  ;;  %v507_v24 = vadd.f32 %v506_v14, %v93_v17 }
 0x108   :  { %v465_v18 = vpop.f32.mrf.mxu0  ;;  %v508_v23 = vpop.f32.mrf.mxu1 }
 0x109   :  { %v466_v21 = vadd.f32 %v465_v18, %v93_v17  ;;  %v512_v22 = vadd.f32 %v511_v16, %v503_v15  ;;  %v509_v27 = vadd.f32 %v508_v23, %v93_v17 }
 0x10b   :  { %v516_v25 = vadd.f32 %v466_v21, %v464_v20  ;;  %v513_v26 = vadd.f32 %v512_v22, %v505_v19 }
 0x10d   :  { %514 = vadd.xlane.f32.xlu1 %v513_v26  ;;  %v517_v28 = vadd.f32 %v516_v25, %v507_v24 }
 0x10f   :  { %v518_v29 = vadd.f32 %v517_v28, %v509_v27 }
 0x111   :  { %519 = vadd.xlane.f32.xlu1 %v518_v29 }
 0x122   :  { %568 = vperm.xlu1 %689, %v564_v30  }
 0x126   :  { %573 = vperm.xlu1 %689, %v565_v31  }
 0x12a   :  { %690 = vset.pattern.permute.xlu1 %v796_v5 }
 0x12b   :  { %585 = vperm.xlu1 %690, %v564_v30  }
 0x196   :  { %v515_v32 = vpop.xlane.xlu1 %514 }
 0x197   :  { %v522_v33 = vmul.f32 0.001953125, %v515_v32 }
 0x199   :  { %v524_v34 = vsub.f32 %v460_v11, %v522_v33  ;;  %v525_v35 = vsub.f32 %v462_v12, %v522_v33  ;;  %v526_v36 = vsub.f32 %v503_v15, %v522_v33  ;;  %v527_v38 = vsub.f32 %v505_v19, %v522_v33 }
 0x19a   :  { %v520_v37 = vpop.xlane.xlu1 %519 }
 0x19b   :  { %v523_v39 = vmul.f32 0.001953125, %v520_v37  ;;  %v532_v40 = vmul.f32 %v524_v34, %v524_v34  ;;  %v533_v41 = vmul.f32 %v525_v35, %v525_v35  ;;  %v534_v42 = vmul.f32 %v526_v36, %v526_v36 }
 0x19c   :  { %v535_v47 = vmul.f32 %v527_v38, %v527_v38 }
 0x19d   :  { %v528_v43 = vsub.f32 %v464_v20, %v523_v39  ;;  %v529_v44 = vsub.f32 %v466_v21, %v523_v39  ;;  %v540_v45 = vadd.f32 %v533_v41, %v532_v40  ;;  %v530_v46 = vsub.f32 %v507_v24, %v523_v39 }
 0x19e   :  { %v531_v49 = vsub.f32 %v509_v27, %v523_v39  ;;  %v569_v58 = vpop.permute.xlu1 %568 }
 0x19f   :  { %v541_v48 = vadd.f32 %v540_v45, %v534_v42  ;;  %v536_v50 = vmul.f32 %v528_v43, %v528_v43  ;;  %v537_v51 = vmul.f32 %v529_v44, %v529_v44  ;;  %v538_v53 = vmul.f32 %v530_v46, %v530_v46 }
 0x1a0   :  { %v539_v55 = vmul.f32 %v531_v49, %v531_v49 }
 0x1a1   :  { %v542_v52 = vadd.f32 %v541_v48, %v535_v47  ;;  %v545_v54 = vadd.f32 %v537_v51, %v536_v50 }
 0x1a2   :  { %v574_v59 = vpop.permute.xlu1 %573 }
 0x1a3   :  { %543 = vadd.xlane.f32.xlu0 %v542_v52  ;;  %v546_v56 = vadd.f32 %v545_v54, %v538_v53 }
 0x1a5   :  { %v547_v57 = vadd.f32 %v546_v56, %v539_v55 }
 0x1a6   :  { %v586_v60 = vpop.permute.xlu1 %585 }
 0x1a7   :  { %548 = vadd.xlane.f32.xlu1 %v547_v57 }
 0x1b8   :  { %589 = vperm.xlu1 %690, %v565_v31  }
 0x22c   :  { %v544_v61 = vpop.xlane.xlu0 %543 }
 0x22d   :  { %v550_v62 = vmul.f32 0.001953125, %v544_v61 }
 0x22f   :  { %v552_v63 = vadd.f32 1e-05, %v550_v62 }
 0x230   :  { %v549_v0 = vpop.xlane.xlu1 %548 }
 0x231   :  { %791 = vrsqrt.f32 %v552_v63  ;;  %v551_v1 = vmul.f32 0.001953125, %v549_v0 }
 0x233   :  { %v553_v2 = vadd.f32 1e-05, %v551_v1 }
 0x234   :  { %v590_v29 = vpop.permute.xlu1 %589 }
 0x235   :  { %793 = vrsqrt.f32 %v553_v2 }
 0x23e   :  { %v792_v3 = vpop.eup %791 }
 0x23f   :  { %v556_v4 = vmul.f32 %v792_v3, %v524_v34  ;;  %v557_v5 = vmul.f32 %v792_v3, %v525_v35  ;;  %v558_v6 = vmul.f32 %v792_v3, %v526_v36  ;;  %v559_v7 = vmul.f32 %v792_v3, %v527_v38 }
 0x241   :  { %v576_v8 = vmul.f32 %v569_v58, %v556_v4  ;;  %v577_v9 = vmul.f32 %v569_v58, %v557_v5  ;;  %v578_v10 = vmul.f32 %v569_v58, %v558_v6  ;;  %v579_v11 = vmul.f32 %v569_v58, %v559_v7 }
 0x242   :  { %v794_v12 = vpop.eup %793 }
 0x243   :  { %v560_v13 = vmul.f32 %v794_v12, %v528_v43  ;;  %v561_v14 = vmul.f32 %v794_v12, %v529_v44  ;;  %v562_v15 = vmul.f32 %v794_v12, %v530_v46  ;;  %v563_v16 = vmul.f32 %v794_v12, %v531_v49 }
 0x244   :  { %v592_v17 = vadd.f32 %v586_v60, %v576_v8  ;;  %v593_v18 = vadd.f32 %v586_v60, %v577_v9  ;;  %v594_v19 = vadd.f32 %v586_v60, %v578_v10  ;;  %v595_v20 = vadd.f32 %v586_v60, %v579_v11 }
 0x245   :  { %v580_v21 = vmul.f32 %v574_v59, %v560_v13  ;;  %v581_v22 = vmul.f32 %v574_v59, %v561_v14  ;;  %v582_v23 = vmul.f32 %v574_v59, %v562_v15  ;;  %v583_v24 = vmul.f32 %v574_v59, %v563_v16 }
 0x246   :  { %v600_v25 = vmax.f32 %v592_v17, 0.0  ;;  %v601_v26 = vmax.f32 %v593_v18, 0.0  ;;  %v602_v27 = vmax.f32 %v594_v19, 0.0  ;;  %v603_v28 = vmax.f32 %v595_v20, 0.0 }
 0x247   :  { %v596_v30 = vadd.f32 %v590_v29, %v580_v21  ;;  %v597_v31 = vadd.f32 %v590_v29, %v581_v22  ;;  %v598_v32 = vadd.f32 %v590_v29, %v582_v23  ;;  %v599_v33 = vadd.f32 %v590_v29, %v583_v24 }
 0x248   :  { %608 = vst [vmem:[%s1060_s4] sm:$0xff] %v600_v25  ;;  %609 = vst [vmem:[%s1060_s4 + $0x8] sm:$0xff] %v601_v26 }
 0x249   :  { %610 = vst [vmem:[%s1060_s4 + $0x10] sm:$0xff] %v602_v27  ;;  %611 = vst [vmem:[%s1060_s4 + $0x18] sm:$0xff] %v603_v28  ;;  %v604_v34 = vmax.f32 %v596_v30, 0.0  ;;  %v605_v35 = vmax.f32 %v597_v31, 0.0  ;;  %v606_v36 = vmax.f32 %v598_v32, 0.0  ;;  %v607_v37 = vmax.f32 %v599_v33, 0.0 }
 0x24b   :  { %612 = vst [vmem:[%s1060_s4 + $0x20] sm:$0xff] %v604_v34  ;;  %613 = vst [vmem:[%s1060_s4 + $0x28] sm:$0xff] %v605_v35 }
 0x24c   :  { %614 = vst [vmem:[%s1060_s4 + $0x30] sm:$0xff] %v606_v36  ;;  %615 = vst [vmem:[%s1060_s4 + $0x38] sm:$0xff] %v607_v37 }

// kernel: generator_forward.8
= control target key start
LH: loop header
LB: loop body
LE: loop exit
PB: predicated region body
PF: predicated region fallthrough
CT: control target
= control target key end

     0   :  { %v2328_v34 = vmov 0   ;;  %s3206_s1 = inlined_call_operand.vmem [shape: bf16[256,2048], index: 1, kind: input, shape index: {}]   ;;  %s3207_s0 = inlined_call_operand.vmem [shape: bf16[8,256], index: 0, kind: input, shape index: {}]   ;;  %s3208_s2 = inlined_call_operand.vmem [shape: f32[8,1], index: 2, kind: input, shape index: {}]   ;;  %s3209_s3 = inlined_call_operand.vmem [shape: f32[8,2], index: 3, kind: input, shape index: {}]   ;;  %s3210_s4 = inlined_call_operand.vmem [shape: f32[8,2048], index: 4, kind: output, shape index: {}]  }
   0x1   :  { %v130_v0 = vld [vmem:[%s3206_s1 + $0x380] sm:$0xff]  ;;  %v131_v2 = vld [vmem:[%s3206_s1 + $0x388] sm:$0xff]  ;;  %2320 = vset.pattern.permute.xlu0 %v2328_v34  ;;  %2321 = vset.pattern.permute.xlu1 %v2328_v34 }
   0x2   :  { %v138_v1 = vld [vmem:[%s3206_s1 + $0x3c0] sm:$0xff]  ;;  %v139_v4 = vld [vmem:[%s3206_s1 + $0x3c8] sm:$0xff] }
   0x3   :  { %v2175_v3 = vcombine.high %v130_v0, %v138_v1  ;;  %v2174_v5 = vcombine.low %v130_v0, %v138_v1  ;;  %v114_v6 = vld [vmem:[%s3206_s1 + $0x300] sm:$0xff]  ;;  %v2177_v8 = vcombine.high %v131_v2, %v139_v4  ;;  %v2176_v9 = vcombine.low %v131_v2, %v139_v4  ;;  %v115_v11 = vld [vmem:[%s3206_s1 + $0x308] sm:$0xff] }
   0x4   :  { %v122_v7 = vld [vmem:[%s3206_s1 + $0x340] sm:$0xff]  ;;  %v123_v12 = vld [vmem:[%s3206_s1 + $0x348] sm:$0xff] }
   0x5   :  { %v2159_v10 = vcombine.high %v114_v6, %v122_v7  ;;  %v98_v13 = vld [vmem:[%s3206_s1 + $0x280] sm:$0xff]  ;;  %1567 = vmatprep.subr.bf16.mxu0 %v2175_v3  ;;  %v2161_v14 = vcombine.high %v115_v11, %v123_v12  ;;  %v99_v16 = vld [vmem:[%s3206_s1 + $0x288] sm:$0xff]  ;;  %1608 = vmatprep.subr.bf16.mxu1 %v2177_v8  ;;  %v2158_v18 = vcombine.low %v114_v6, %v122_v7 }
   0x6   :  { %v106_v15 = vld [vmem:[%s3206_s1 + $0x2c0] sm:$0xff]  ;;  %v107_v17 = vld [vmem:[%s3206_s1 + $0x2c8] sm:$0xff]  ;;  %1568 = vmatpush1.bf16.msra.mxu0 %v2174_v5  ;;  %1609 = vmatpush1.bf16.msra.mxu1 %v2176_v9  ;;  %v2160_v19 = vcombine.low %v115_v11, %v123_v12 }
   0x7   :  { %1569 = vmatprep.subr.bf16.mxu0 %v2159_v10  ;;  %v2143_v20 = vcombine.high %v98_v13, %v106_v15  ;;  %1610 = vmatprep.subr.bf16.mxu1 %v2161_v14  ;;  %v2145_v21 = vcombine.high %v99_v16, %v107_v17  ;;  %v82_v22 = vld [vmem:[%s3206_s1 + $0x200] sm:$0xff]  ;;  %v83_v24 = vld [vmem:[%s3206_s1 + $0x208] sm:$0xff]  ;;  %v2142_v26 = vcombine.low %v98_v13, %v106_v15 }
   0x8   :  { %v90_v23 = vld [vmem:[%s3206_s1 + $0x240] sm:$0xff]  ;;  %v91_v25 = vld [vmem:[%s3206_s1 + $0x248] sm:$0xff]  ;;  %v2144_v27 = vcombine.low %v99_v16, %v107_v17 }
   0x9   :  { %v2127_v28 = vcombine.high %v82_v22, %v90_v23  ;;  %v2129_v29 = vcombine.high %v83_v24, %v91_v25  ;;  %v66_v30 = vld [vmem:[%s3206_s1 + $0x180] sm:$0xff]  ;;  %v67_v32 = vld [vmem:[%s3206_s1 + $0x188] sm:$0xff]  ;;  %v2126_v35 = vcombine.low %v82_v22, %v90_v23  ;;  %v2128_v36 = vcombine.low %v83_v24, %v91_v25 }
   0xa   :  { %1570 = vmatpush1.bf16.msra.mxu0 %v2158_v18  ;;  %1611 = vmatpush1.bf16.msra.mxu1 %v2160_v19  ;;  %v74_v31 = vld [vmem:[%s3206_s1 + $0x1c0] sm:$0xff]  ;;  %v75_v33 = vld [vmem:[%s3206_s1 + $0x1c8] sm:$0xff] }
   0xb   :  { %1571 = vmatprep.subr.bf16.mxu0 %v2143_v20  ;;  %1612 = vmatprep.subr.bf16.mxu1 %v2145_v21  ;;  %v2111_v37 = vcombine.high %v66_v30, %v74_v31  ;;  %v2113_v38 = vcombine.high %v67_v32, %v75_v33  ;;  %v50_v39 = vld [vmem:[%s3206_s1 + $0x100] sm:$0xff]  ;;  %v51_v41 = vld [vmem:[%s3206_s1 + $0x108] sm:$0xff]  ;;  %v2110_v43 = vcombine.low %v66_v30, %v74_v31 }
   0xc   :  { %v58_v40 = vld [vmem:[%s3206_s1 + $0x140] sm:$0xff]  ;;  %v59_v42 = vld [vmem:[%s3206_s1 + $0x148] sm:$0xff]  ;;  %v2112_v44 = vcombine.low %v67_v32, %v75_v33 }
   0xd   :  { %v2095_v45 = vcombine.high %v50_v39, %v58_v40  ;;  %v2097_v46 = vcombine.high %v51_v41, %v59_v42  ;;  %v34_v47 = vld [vmem:[%s3206_s1 + $0x80] sm:$0xff]  ;;  %v35_v49 = vld [vmem:[%s3206_s1 + $0x88] sm:$0xff]  ;;  %v2094_v51 = vcombine.low %v50_v39, %v58_v40  ;;  %v2096_v52 = vcombine.low %v51_v41, %v59_v42 }
   0xe   :  { %1572 = vmatpush1.bf16.msra.mxu0 %v2142_v26  ;;  %1613 = vmatpush1.bf16.msra.mxu1 %v2144_v27  ;;  %v42_v48 = vld [vmem:[%s3206_s1 + $0xc0] sm:$0xff]  ;;  %v43_v50 = vld [vmem:[%s3206_s1 + $0xc8] sm:$0xff] }
   0xf   :  { %1573 = vmatprep.subr.bf16.mxu0 %v2127_v28  ;;  %1614 = vmatprep.subr.bf16.mxu1 %v2129_v29  ;;  %v2079_v53 = vcombine.high %v34_v47, %v42_v48  ;;  %v2442_v54 = vld [vmem:[%s3207_s0] sm:$0xff]  ;;  %v2081_v55 = vcombine.high %v35_v49, %v43_v50  ;;  %v19_v59 = vld [vmem:[%s3206_s1 + $0x8] sm:$0xff]  ;;  %v2078_v61 = vcombine.low %v34_v47, %v42_v48 }
  0x10   :  { %v18_v56 = vld [vmem:[%s3206_s1] sm:$0xff]  ;;  %v2452_v58 = vcombine.high %v2442_v54, %v2442_v54  ;;  %v27_v60 = vld [vmem:[%s3206_s1 + $0x48] sm:$0xff]  ;;  %v2080_v62 = vcombine.low %v35_v49, %v43_v50 }
  0x11   :  { %v26_v57 = vld [vmem:[%s3206_s1 + $0x40] sm:$0xff]  ;;  %v2065_v0 = vcombine.high %v19_v59, %v27_v60  ;;  %v259_v3 = vld [vmem:[%s3206_s1 + $0x788] sm:$0xff]  ;;  %v2064_v6 = vcombine.low %v19_v59, %v27_v60 }
  0x12   :  { %1574 = vmatpush1.bf16.msra.mxu0 %v2126_v35  ;;  %1615 = vmatpush1.bf16.msra.mxu1 %v2128_v36  ;;  %v2063_v63 = vcombine.high %v18_v56, %v26_v57  ;;  %v258_v1 = vld [vmem:[%s3206_s1 + $0x780] sm:$0xff]  ;;  %v267_v4 = vld [vmem:[%s3206_s1 + $0x7c8] sm:$0xff]  ;;  %v2062_v5 = vcombine.low %v18_v56, %v26_v57 }
  0x13   :  { %1575 = vmatprep.subr.bf16.mxu0 %v2111_v37  ;;  %1616 = vmatprep.subr.bf16.mxu1 %v2113_v38  ;;  %v266_v2 = vld [vmem:[%s3206_s1 + $0x7c0] sm:$0xff]  ;;  %v2305_v8 = vcombine.high %v259_v3, %v267_v4  ;;  %v243_v11 = vld [vmem:[%s3206_s1 + $0x708] sm:$0xff]  ;;  %v2304_v14 = vcombine.low %v259_v3, %v267_v4  ;;  %v132_v4 = vld [vmem:[%s3206_s1 + $0x390] sm:$0xff] }
  0x14   :  { %1599 = vmatprep.mubr.bf16.mxu0 %v2452_v58  ;;  %1640 = vmatprep.mubr.bf16.mxu1 %v2452_v58  ;;  %v2303_v7 = vcombine.high %v258_v1, %v266_v2  ;;  %v242_v9 = vld [vmem:[%s3206_s1 + $0x700] sm:$0xff]  ;;  %v251_v12 = vld [vmem:[%s3206_s1 + $0x748] sm:$0xff]  ;;  %v2302_v13 = vcombine.low %v258_v1, %v266_v2 }
  0x15   :  { %v250_v10 = vld [vmem:[%s3206_s1 + $0x740] sm:$0xff]  ;;  %v2289_v16 = vcombine.high %v243_v11, %v251_v12  ;;  %v227_v19 = vld [vmem:[%s3206_s1 + $0x688] sm:$0xff]  ;;  %v2288_v22 = vcombine.low %v243_v11, %v251_v12  ;;  %v116_v12 = vld [vmem:[%s3206_s1 + $0x310] sm:$0xff] }
  0x16   :  { %1576 = vmatpush1.bf16.msra.mxu0 %v2110_v43  ;;  %1617 = vmatpush1.bf16.msra.mxu1 %v2112_v44  ;;  %v2287_v15 = vcombine.high %v242_v9, %v250_v10  ;;  %v226_v17 = vld [vmem:[%s3206_s1 + $0x680] sm:$0xff]  ;;  %v235_v20 = vld [vmem:[%s3206_s1 + $0x6c8] sm:$0xff]  ;;  %v2286_v21 = vcombine.low %v242_v9, %v250_v10 }
  0x17   :  { %1577 = vmatprep.subr.bf16.mxu0 %v2095_v45  ;;  %1618 = vmatprep.subr.bf16.mxu1 %v2097_v46  ;;  %v234_v18 = vld [vmem:[%s3206_s1 + $0x6c0] sm:$0xff]  ;;  %v2273_v24 = vcombine.high %v227_v19, %v235_v20  ;;  %v211_v27 = vld [vmem:[%s3206_s1 + $0x608] sm:$0xff]  ;;  %v2272_v30 = vcombine.low %v227_v19, %v235_v20 }
  0x18   :  { %v2271_v23 = vcombine.high %v226_v17, %v234_v18  ;;  %v210_v25 = vld [vmem:[%s3206_s1 + $0x600] sm:$0xff]  ;;  %v219_v28 = vld [vmem:[%s3206_s1 + $0x648] sm:$0xff]  ;;  %v2270_v29 = vcombine.low %v226_v17, %v234_v18 }
  0x19   :  { %v218_v26 = vld [vmem:[%s3206_s1 + $0x640] sm:$0xff]  ;;  %v2257_v32 = vcombine.high %v211_v27, %v219_v28  ;;  %v195_v35 = vld [vmem:[%s3206_s1 + $0x588] sm:$0xff]  ;;  %v2256_v38 = vcombine.low %v211_v27, %v219_v28  ;;  %v84_v28 = vld [vmem:[%s3206_s1 + $0x210] sm:$0xff] }
  0x1a   :  { %1578 = vmatpush1.bf16.msra.mxu0 %v2094_v51  ;;  %1619 = vmatpush1.bf16.msra.mxu1 %v2096_v52  ;;  %v2255_v31 = vcombine.high %v210_v25, %v218_v26  ;;  %v194_v33 = vld [vmem:[%s3206_s1 + $0x580] sm:$0xff]  ;;  %v203_v36 = vld [vmem:[%s3206_s1 + $0x5c8] sm:$0xff]  ;;  %v2254_v37 = vcombine.low %v210_v25, %v218_v26 }
  0x1b   :  { %1579 = vmatprep.subr.bf16.mxu0 %v2079_v53  ;;  %1620 = vmatprep.subr.bf16.mxu1 %v2081_v55  ;;  %v202_v34 = vld [vmem:[%s3206_s1 + $0x5c0] sm:$0xff]  ;;  %v2241_v41 = vcombine.high %v195_v35, %v203_v36  ;;  %v179_v44 = vld [vmem:[%s3206_s1 + $0x508] sm:$0xff]  ;;  %v2240_v47 = vcombine.low %v195_v35, %v203_v36  ;;  %v68_v36 = vld [vmem:[%s3206_s1 + $0x190] sm:$0xff] }
  0x1c   :  { %v2239_v39 = vcombine.high %v194_v33, %v202_v34  ;;  %v274_v40 = vld [vmem:[%s3208_s2] sm:$0xff]  ;;  %v187_v45 = vld [vmem:[%s3206_s1 + $0x548] sm:$0xff]  ;;  %v2238_v46 = vcombine.low %v194_v33, %v202_v34 }
  0x1d   :  { %v178_v42 = vld [vmem:[%s3206_s1 + $0x500] sm:$0xff]  ;;  %277 = vperm.xlu0 %2320, %v274_v40   ;;  %v2225_v49 = vcombine.high %v179_v44, %v187_v45  ;;  %v163_v52 = vld [vmem:[%s3206_s1 + $0x488] sm:$0xff]  ;;  %v2224_v56 = vcombine.low %v179_v44, %v187_v45  ;;  %v52_v44 = vld [vmem:[%s3206_s1 + $0x110] sm:$0xff] }
  0x1e   :  { %1580 = vmatpush1.bf16.msra.mxu0 %v2078_v61  ;;  %1621 = vmatpush1.bf16.msra.mxu1 %v2080_v62  ;;  %v186_v43 = vld [vmem:[%s3206_s1 + $0x540] sm:$0xff]  ;;  %v171_v53 = vld [vmem:[%s3206_s1 + $0x4c8] sm:$0xff]  ;;  %v60_v45 = vld [vmem:[%s3206_s1 + $0x150] sm:$0xff] }
  0x1f   :  { %1581 = vmatprep.subr.bf16.mxu0 %v2063_v63  ;;  %1622 = vmatprep.subr.bf16.mxu1 %v2065_v0  ;;  %v2223_v48 = vcombine.high %v178_v42, %v186_v43  ;;  %v162_v50 = vld [vmem:[%s3206_s1 + $0x480] sm:$0xff]  ;;  %v2222_v55 = vcombine.low %v178_v42, %v186_v43  ;;  %v2209_v59 = vcombine.high %v163_v52, %v171_v53  ;;  %v147_v62 = vld [vmem:[%s3206_s1 + $0x408] sm:$0xff] }
  0x20   :  { %v170_v51 = vld [vmem:[%s3206_s1 + $0x4c0] sm:$0xff]  ;;  %v155_v63 = vld [vmem:[%s3206_s1 + $0x448] sm:$0xff]  ;;  %v2208_v1 = vcombine.low %v163_v52, %v171_v53  ;;  %v36_v52 = vld [vmem:[%s3206_s1 + $0x90] sm:$0xff] }
  0x21   :  { %v2207_v57 = vcombine.high %v162_v50, %v170_v51  ;;  %v146_v60 = vld [vmem:[%s3206_s1 + $0x400] sm:$0xff]  ;;  %v2206_v0 = vcombine.low %v162_v50, %v170_v51  ;;  %v2193_v3 = vcombine.high %v147_v62, %v155_v63  ;;  %v2192_v9 = vcombine.low %v147_v62, %v155_v63  ;;  %v44_v53 = vld [vmem:[%s3206_s1 + $0xd0] sm:$0xff] }
  0x22   :  { %1582 = vmatpush1.bf16.msra.mxu0 %v2062_v5  ;;  %1623 = vmatpush1.bf16.msra.mxu1 %v2064_v6  ;;  %v154_v61 = vld [vmem:[%s3206_s1 + $0x440] sm:$0xff]  ;;  %v140_v5 = vld [vmem:[%s3206_s1 + $0x3d0] sm:$0xff]  ;;  %v133_v6 = vld [vmem:[%s3206_s1 + $0x398] sm:$0xff]  ;;  %v2099_v50 = vcombine.high %v52_v44, %v60_v45 }
  0x23   :  { %1583 = vmatprep.subr.bf16.mxu0 %v2303_v7  ;;  %1624 = vmatprep.subr.bf16.mxu1 %v2305_v8  ;;  %v2191_v2 = vcombine.high %v146_v60, %v154_v61  ;;  %v141_v7 = vld [vmem:[%s3206_s1 + $0x3d8] sm:$0xff]  ;;  %v2190_v8 = vcombine.low %v146_v60, %v154_v61  ;;  %v2179_v10 = vcombine.high %v132_v4, %v140_v5  ;;  %v20_v62 = vld [vmem:[%s3206_s1 + $0x10] sm:$0xff] }
  0x24   :  { %v2181_v11 = vcombine.high %v133_v6, %v141_v7  ;;  %v2178_v17 = vcombine.low %v132_v4, %v140_v5  ;;  %v2180_v18 = vcombine.low %v133_v6, %v141_v7  ;;  %v2083_v60 = vcombine.high %v36_v52, %v44_v53  ;;  %v28_v63 = vld [vmem:[%s3206_s1 + $0x50] sm:$0xff] }
  0x25   :  { %v2067_v4 = vcombine.high %v20_v62, %v28_v63  ;;  %v260_v6 = vld [vmem:[%s3206_s1 + $0x790] sm:$0xff] }
  0x26   :  { %1584 = vmatpush2.bf16.msra.mxu0 %v2302_v13  ;;  %1625 = vmatpush2.bf16.msra.mxu1 %v2304_v14  ;;  %v124_v13 = vld [vmem:[%s3206_s1 + $0x350] sm:$0xff]  ;;  %v2581_v14 = vcombine.low %v2442_v54, %v2442_v54 }
  0x27   :  { %1585 = vmatprep.subr.bf16.mxu0 %v2287_v15  ;;  %1626 = vmatprep.subr.bf16.mxu1 %v2289_v16  ;;  %v117_v15 = vld [vmem:[%s3206_s1 + $0x318] sm:$0xff]  ;;  %v2163_v19 = vcombine.high %v116_v12, %v124_v13  ;;  %v100_v54 = vld [vmem:[%s3206_s1 + $0x290] sm:$0xff] }
  0x28   :  { %v125_v16 = vld [vmem:[%s3206_s1 + $0x358] sm:$0xff]  ;;  %v268_v7 = vld [vmem:[%s3206_s1 + $0x7d0] sm:$0xff] }
  0x29   :  { %v2165_v20 = vcombine.high %v117_v15, %v125_v16  ;;  %v2164_v25 = vcombine.low %v117_v15, %v125_v16  ;;  %v244_v15 = vld [vmem:[%s3206_s1 + $0x710] sm:$0xff] }
  0x2a   :  { %1586 = vmatpush2.bf16.msra.mxu0 %v2286_v21  ;;  %1627 = vmatpush2.bf16.msra.mxu1 %v2288_v22  ;;  %v108_v21 = vld [vmem:[%s3206_s1 + $0x2d0] sm:$0xff]  ;;  %v101_v22 = vld [vmem:[%s3206_s1 + $0x298] sm:$0xff] }
  0x2b   :  { %1587 = vmatprep.subr.bf16.mxu0 %v2271_v23  ;;  %1628 = vmatprep.subr.bf16.mxu1 %v2273_v24  ;;  %v109_v23 = vld [vmem:[%s3206_s1 + $0x2d8] sm:$0xff]  ;;  %v2162_v24 = vcombine.low %v116_v12, %v124_v13  ;;  %v2147_v26 = vcombine.high %v100_v54, %v108_v21  ;;  %v2307_v12 = vcombine.high %v260_v6, %v268_v7  ;;  %v252_v16 = vld [vmem:[%s3206_s1 + $0x750] sm:$0xff] }
  0x2c   :  { %v2149_v27 = vcombine.high %v101_v22, %v109_v23  ;;  %v2148_v33 = vcombine.low %v101_v22, %v109_v23  ;;  %v228_v22 = vld [vmem:[%s3206_s1 + $0x690] sm:$0xff] }
  0x2d   :  { %v236_v23 = vld [vmem:[%s3206_s1 + $0x6d0] sm:$0xff] }
  0x2e   :  { %1588 = vmatpush2.bf16.msra.mxu0 %v2270_v29  ;;  %1629 = vmatpush2.bf16.msra.mxu1 %v2272_v30  ;;  %v92_v29 = vld [vmem:[%s3206_s1 + $0x250] sm:$0xff]  ;;  %v85_v30 = vld [vmem:[%s3206_s1 + $0x218] sm:$0xff] }
  0x2f   :  { %1589 = vmatprep.subr.bf16.mxu0 %v2255_v31  ;;  %1630 = vmatprep.subr.bf16.mxu1 %v2257_v32  ;;  %v93_v31 = vld [vmem:[%s3206_s1 + $0x258] sm:$0xff]  ;;  %v2146_v32 = vcombine.low %v100_v54, %v108_v21  ;;  %v2131_v34 = vcombine.high %v84_v28, %v92_v29  ;;  %v2130_v40 = vcombine.low %v84_v28, %v92_v29 }
  0x30   :  { %v2133_v35 = vcombine.high %v85_v30, %v93_v31  ;;  %v2291_v54 = vcombine.high %v244_v15, %v252_v16  ;;  %v2275_v28 = vcombine.high %v228_v22, %v236_v23 }
  0x32   :  { %1590 = vmatpush2.bf16.msra.mxu0 %v2254_v37  ;;  %1631 = vmatpush2.bf16.msra.mxu1 %v2256_v38  ;;  %v76_v37 = vld [vmem:[%s3206_s1 + $0x1d0] sm:$0xff]  ;;  %v69_v38 = vld [vmem:[%s3206_s1 + $0x198] sm:$0xff] }
  0x33   :  { %1591 = vmatprep.subr.bf16.mxu0 %v2239_v39  ;;  %1632 = vmatprep.subr.bf16.mxu1 %v2241_v41  ;;  %v77_v39 = vld [vmem:[%s3206_s1 + $0x1d8] sm:$0xff]  ;;  %v2132_v41 = vcombine.low %v85_v30, %v93_v31  ;;  %v2115_v42 = vcombine.high %v68_v36, %v76_v37  ;;  %v212_v30 = vld [vmem:[%s3206_s1 + $0x610] sm:$0xff] }
  0x34   :  { %v2117_v43 = vcombine.high %v69_v38, %v77_v39  ;;  %v220_v31 = vld [vmem:[%s3206_s1 + $0x650] sm:$0xff] }
  0x36   :  { %1592 = vmatpush2.bf16.msra.mxu0 %v2238_v46  ;;  %1633 = vmatpush2.bf16.msra.mxu1 %v2240_v47  ;;  %v53_v46 = vld [vmem:[%s3206_s1 + $0x118] sm:$0xff] }
  0x37   :  { %1593 = vmatprep.subr.bf16.mxu0 %v2223_v48  ;;  %1634 = vmatprep.subr.bf16.mxu1 %v2225_v49  ;;  %v61_v47 = vld [vmem:[%s3206_s1 + $0x158] sm:$0xff]  ;;  %v2114_v48 = vcombine.low %v68_v36, %v76_v37  ;;  %v2116_v49 = vcombine.low %v69_v38, %v77_v39  ;;  %v2259_v36 = vcombine.high %v212_v30, %v220_v31  ;;  %v196_v38 = vld [vmem:[%s3206_s1 + $0x590] sm:$0xff] }
  0x38   :  { %v2101_v51 = vcombine.high %v53_v46, %v61_v47  ;;  %v204_v39 = vld [vmem:[%s3206_s1 + $0x5d0] sm:$0xff] }
  0x3a   :  { %1594 = vmatpush2.bf16.msra.mxu0 %v2222_v55  ;;  %1635 = vmatpush2.bf16.msra.mxu1 %v2224_v56  ;;  %v37_v55 = vld [vmem:[%s3206_s1 + $0x98] sm:$0xff] }
  0x3b   :  { %1595 = vmatprep.subr.bf16.mxu0 %v2207_v57  ;;  %1636 = vmatprep.subr.bf16.mxu1 %v2209_v59  ;;  %v45_v56 = vld [vmem:[%s3206_s1 + $0xd8] sm:$0xff]  ;;  %v2098_v57 = vcombine.low %v52_v44, %v60_v45  ;;  %v2100_v59 = vcombine.low %v53_v46, %v61_v47  ;;  %v2243_v44 = vcombine.high %v196_v38, %v204_v39  ;;  %v180_v46 = vld [vmem:[%s3206_s1 + $0x510] sm:$0xff] }
  0x3c   :  { %v2085_v61 = vcombine.high %v37_v55, %v45_v56  ;;  %v188_v47 = vld [vmem:[%s3206_s1 + $0x550] sm:$0xff] }
  0x3e   :  { %1596 = vmatpush2.bf16.msra.mxu0 %v2206_v0  ;;  %1637 = vmatpush2.bf16.msra.mxu1 %v2208_v1  ;;  %v21_v0 = vld [vmem:[%s3206_s1 + $0x18] sm:$0xff] }
  0x3f   :  { %1597 = vmatprep.subr.bf16.mxu0 %v2191_v2  ;;  %1638 = vmatprep.subr.bf16.mxu1 %v2193_v3  ;;  %v29_v1 = vld [vmem:[%s3206_s1 + $0x58] sm:$0xff]  ;;  %v2082_v2 = vcombine.low %v36_v52, %v44_v53  ;;  %v2084_v3 = vcombine.low %v37_v55, %v45_v56  ;;  %v2227_v52 = vcombine.high %v180_v46, %v188_v47  ;;  %v164_v55 = vld [vmem:[%s3206_s1 + $0x490] sm:$0xff] }
  0x40   :  { %v2069_v5 = vcombine.high %v21_v0, %v29_v1  ;;  %v172_v56 = vld [vmem:[%s3206_s1 + $0x4d0] sm:$0xff] }
  0x42   :  { %1598 = vmatpush2.bf16.msra.mxu0 %v2190_v8  ;;  %1639 = vmatpush2.bf16.msra.mxu1 %v2192_v9  ;;  %v261_v8 = vld [vmem:[%s3206_s1 + $0x798] sm:$0xff] }
  0x43   :  { %1649 = vmatprep.subr.bf16.mxu0 %v2179_v10  ;;  %1690 = vmatprep.subr.bf16.mxu1 %v2181_v11  ;;  %v269_v9 = vld [vmem:[%s3206_s1 + $0x7d8] sm:$0xff]  ;;  %v2066_v10 = vcombine.low %v20_v62, %v28_v63  ;;  %v2068_v11 = vcombine.low %v21_v0, %v29_v1  ;;  %v2211_v62 = vcombine.high %v164_v55, %v172_v56  ;;  %v148_v0 = vld [vmem:[%s3206_s1 + $0x410] sm:$0xff] }
  0x44   :  { %v2309_v13 = vcombine.high %v261_v8, %v269_v9  ;;  %v156_v1 = vld [vmem:[%s3206_s1 + $0x450] sm:$0xff] }
  0x45   :  { %1600 = vmatmul.mubr.bf16.vlgmr.msra.gmra.mxu0 %v2581_v14  ;;  %1641 = vmatmul.mubr.bf16.vlgmr.msra.gmra.mxu1 %v2581_v14 }
  0x46   :  { %1650 = vmatpush1.bf16.msra.mxu0 %v2178_v17  ;;  %1691 = vmatpush1.bf16.msra.mxu1 %v2180_v18  ;;  %v245_v17 = vld [vmem:[%s3206_s1 + $0x718] sm:$0xff] }
  0x47   :  { %1651 = vmatprep.subr.bf16.mxu0 %v2163_v19  ;;  %1692 = vmatprep.subr.bf16.mxu1 %v2165_v20  ;;  %v253_v18 = vld [vmem:[%s3206_s1 + $0x758] sm:$0xff]  ;;  %v2306_v19 = vcombine.low %v260_v6, %v268_v7  ;;  %v2308_v20 = vcombine.low %v261_v8, %v269_v9  ;;  %v2195_v6 = vcombine.high %v148_v0, %v156_v1  ;;  %v134_v8 = vld [vmem:[%s3206_s1 + $0x3a0] sm:$0xff] }
  0x48   :  { %1681 = vmatprep.mubr.bf16.mxu0 %v2452_v58  ;;  %1722 = vmatprep.mubr.bf16.mxu1 %v2452_v58  ;;  %v2293_v21 = vcombine.high %v245_v17, %v253_v18  ;;  %v142_v9 = vld [vmem:[%s3206_s1 + $0x3e0] sm:$0xff] }
  0x4a   :  { %1652 = vmatpush1.bf16.msra.mxu0 %v2162_v24  ;;  %1693 = vmatpush1.bf16.msra.mxu1 %v2164_v25  ;;  %v229_v24 = vld [vmem:[%s3206_s1 + $0x698] sm:$0xff] }
  0x4b   :  { %1653 = vmatprep.subr.bf16.mxu0 %v2147_v26  ;;  %1694 = vmatprep.subr.bf16.mxu1 %v2149_v27  ;;  %v237_v25 = vld [vmem:[%s3206_s1 + $0x6d8] sm:$0xff]  ;;  %v2290_v26 = vcombine.low %v244_v15, %v252_v16  ;;  %v2292_v27 = vcombine.low %v245_v17, %v253_v18  ;;  %v2183_v15 = vcombine.high %v134_v8, %v142_v9  ;;  %v118_v17 = vld [vmem:[%s3206_s1 + $0x320] sm:$0xff] }
  0x4c   :  { %v2277_v29 = vcombine.high %v229_v24, %v237_v25  ;;  %v126_v18 = vld [vmem:[%s3206_s1 + $0x360] sm:$0xff] }
  0x4e   :  { %1654 = vmatpush1.bf16.msra.mxu0 %v2146_v32  ;;  %1695 = vmatpush1.bf16.msra.mxu1 %v2148_v33  ;;  %v213_v32 = vld [vmem:[%s3206_s1 + $0x618] sm:$0xff] }
  0x4f   :  { %1655 = vmatprep.subr.bf16.mxu0 %v2131_v34  ;;  %1696 = vmatprep.subr.bf16.mxu1 %v2133_v35  ;;  %v221_v33 = vld [vmem:[%s3206_s1 + $0x658] sm:$0xff]  ;;  %v2274_v34 = vcombine.low %v228_v22, %v236_v23  ;;  %v2276_v35 = vcombine.low %v229_v24, %v237_v25  ;;  %v2167_v22 = vcombine.high %v118_v17, %v126_v18  ;;  %v102_v24 = vld [vmem:[%s3206_s1 + $0x2a0] sm:$0xff] }
  0x50   :  { %v2261_v37 = vcombine.high %v213_v32, %v221_v33  ;;  %v110_v25 = vld [vmem:[%s3206_s1 + $0x2e0] sm:$0xff] }
  0x52   :  { %1656 = vmatpush1.bf16.msra.mxu0 %v2130_v40  ;;  %1697 = vmatpush1.bf16.msra.mxu1 %v2132_v41  ;;  %v197_v40 = vld [vmem:[%s3206_s1 + $0x598] sm:$0xff] }
  0x53   :  { %1657 = vmatprep.subr.bf16.mxu0 %v2115_v42  ;;  %1698 = vmatprep.subr.bf16.mxu1 %v2117_v43  ;;  %v205_v41 = vld [vmem:[%s3206_s1 + $0x5d8] sm:$0xff]  ;;  %v2258_v42 = vcombine.low %v212_v30, %v220_v31  ;;  %v2260_v43 = vcombine.low %v213_v32, %v221_v33  ;;  %v2151_v30 = vcombine.high %v102_v24, %v110_v25  ;;  %v86_v32 = vld [vmem:[%s3206_s1 + $0x220] sm:$0xff] }
  0x54   :  { %v2245_v45 = vcombine.high %v197_v40, %v205_v41  ;;  %v94_v33 = vld [vmem:[%s3206_s1 + $0x260] sm:$0xff] }
  0x56   :  { %1658 = vmatpush1.bf16.msra.mxu0 %v2114_v48  ;;  %1699 = vmatpush1.bf16.msra.mxu1 %v2116_v49  ;;  %v181_v48 = vld [vmem:[%s3206_s1 + $0x518] sm:$0xff] }
  0x57   :  { %1659 = vmatprep.subr.bf16.mxu0 %v2099_v50  ;;  %1700 = vmatprep.subr.bf16.mxu1 %v2101_v51  ;;  %v189_v49 = vld [vmem:[%s3206_s1 + $0x558] sm:$0xff]  ;;  %v2242_v50 = vcombine.low %v196_v38, %v204_v39  ;;  %v2244_v51 = vcombine.low %v197_v40, %v205_v41  ;;  %v2135_v38 = vcombine.high %v86_v32, %v94_v33  ;;  %v70_v40 = vld [vmem:[%s3206_s1 + $0x1a0] sm:$0xff] }
  0x58   :  { %v2229_v53 = vcombine.high %v181_v48, %v189_v49  ;;  %v78_v41 = vld [vmem:[%s3206_s1 + $0x1e0] sm:$0xff] }
  0x5a   :  { %1660 = vmatpush1.bf16.msra.mxu0 %v2098_v57  ;;  %1701 = vmatpush1.bf16.msra.mxu1 %v2100_v59  ;;  %v165_v57 = vld [vmem:[%s3206_s1 + $0x498] sm:$0xff] }
  0x5b   :  { %1661 = vmatprep.subr.bf16.mxu0 %v2083_v60  ;;  %1702 = vmatprep.subr.bf16.mxu1 %v2085_v61  ;;  %v173_v59 = vld [vmem:[%s3206_s1 + $0x4d8] sm:$0xff]  ;;  %v2226_v60 = vcombine.low %v180_v46, %v188_v47  ;;  %v2228_v61 = vcombine.low %v181_v48, %v189_v49  ;;  %v2119_v46 = vcombine.high %v70_v40, %v78_v41  ;;  %v54_v48 = vld [vmem:[%s3206_s1 + $0x120] sm:$0xff] }
  0x5c   :  { %v2213_v63 = vcombine.high %v165_v57, %v173_v59  ;;  %v62_v49 = vld [vmem:[%s3206_s1 + $0x160] sm:$0xff] }
  0x5e   :  { %1662 = vmatpush1.bf16.msra.mxu0 %v2082_v2  ;;  %1703 = vmatpush1.bf16.msra.mxu1 %v2084_v3  ;;  %v149_v2 = vld [vmem:[%s3206_s1 + $0x418] sm:$0xff] }
  0x5f   :  { %1663 = vmatprep.subr.bf16.mxu0 %v2067_v4  ;;  %1704 = vmatprep.subr.bf16.mxu1 %v2069_v5  ;;  %v157_v3 = vld [vmem:[%s3206_s1 + $0x458] sm:$0xff]  ;;  %v2210_v4 = vcombine.low %v164_v55, %v172_v56  ;;  %v2212_v5 = vcombine.low %v165_v57, %v173_v59  ;;  %v2103_v55 = vcombine.high %v54_v48, %v62_v49  ;;  %v38_v57 = vld [vmem:[%s3206_s1 + $0xa0] sm:$0xff] }
  0x60   :  { %v2197_v7 = vcombine.high %v149_v2, %v157_v3  ;;  %v46_v59 = vld [vmem:[%s3206_s1 + $0xe0] sm:$0xff] }
  0x62   :  { %1664 = vmatpush1.bf16.msra.mxu0 %v2066_v10  ;;  %1705 = vmatpush1.bf16.msra.mxu1 %v2068_v11  ;;  %v135_v10 = vld [vmem:[%s3206_s1 + $0x3a8] sm:$0xff] }
  0x63   :  { %1665 = vmatprep.subr.bf16.mxu0 %v2307_v12  ;;  %1706 = vmatprep.subr.bf16.mxu1 %v2309_v13  ;;  %v143_v11 = vld [vmem:[%s3206_s1 + $0x3e8] sm:$0xff]  ;;  %v2194_v12 = vcombine.low %v148_v0, %v156_v1  ;;  %v2196_v13 = vcombine.low %v149_v2, %v157_v3  ;;  %v2087_v0 = vcombine.high %v38_v57, %v46_v59  ;;  %v22_v2 = vld [vmem:[%s3206_s1 + $0x20] sm:$0xff] }
  0x64   :  { %v2185_v16 = vcombine.high %v135_v10, %v143_v11  ;;  %v30_v3 = vld [vmem:[%s3206_s1 + $0x60] sm:$0xff] }
  0x66   :  { %1666 = vmatpush2.bf16.msra.mxu0 %v2306_v19  ;;  %1707 = vmatpush2.bf16.msra.mxu1 %v2308_v20  ;;  %v119_v19 = vld [vmem:[%s3206_s1 + $0x328] sm:$0xff] }
  0x67   :  { %1667 = vmatprep.subr.bf16.mxu0 %v2291_v54  ;;  %1708 = vmatprep.subr.bf16.mxu1 %v2293_v21  ;;  %v127_v20 = vld [vmem:[%s3206_s1 + $0x368] sm:$0xff]  ;;  %v2182_v54 = vcombine.low %v134_v8, %v142_v9  ;;  %v2184_v21 = vcombine.low %v135_v10, %v143_v11  ;;  %v2071_v8 = vcombine.high %v22_v2, %v30_v3  ;;  %v262_v10 = vld [vmem:[%s3206_s1 + $0x7a0] sm:$0xff] }
  0x68   :  { %v2169_v23 = vcombine.high %v119_v19, %v127_v20  ;;  %v270_v11 = vld [vmem:[%s3206_s1 + $0x7e0] sm:$0xff] }
  0x6a   :  { %1668 = vmatpush2.bf16.msra.mxu0 %v2290_v26  ;;  %1709 = vmatpush2.bf16.msra.mxu1 %v2292_v27  ;;  %v103_v26 = vld [vmem:[%s3206_s1 + $0x2a8] sm:$0xff] }
  0x6b   :  { %1669 = vmatprep.subr.bf16.mxu0 %v2275_v28  ;;  %1710 = vmatprep.subr.bf16.mxu1 %v2277_v29  ;;  %v111_v27 = vld [vmem:[%s3206_s1 + $0x2e8] sm:$0xff]  ;;  %v2166_v28 = vcombine.low %v118_v17, %v126_v18  ;;  %v2168_v29 = vcombine.low %v119_v19, %v127_v20  ;;  %v2311_v17 = vcombine.high %v262_v10, %v270_v11  ;;  %v246_v19 = vld [vmem:[%s3206_s1 + $0x720] sm:$0xff] }
  0x6c   :  { %v2153_v31 = vcombine.high %v103_v26, %v111_v27  ;;  %v254_v20 = vld [vmem:[%s3206_s1 + $0x760] sm:$0xff] }
  0x6e   :  { %1670 = vmatpush2.bf16.msra.mxu0 %v2274_v34  ;;  %1711 = vmatpush2.bf16.msra.mxu1 %v2276_v35  ;;  %v87_v34 = vld [vmem:[%s3206_s1 + $0x228] sm:$0xff] }
  0x6f   :  { %1671 = vmatprep.subr.bf16.mxu0 %v2259_v36  ;;  %1712 = vmatprep.subr.bf16.mxu1 %v2261_v37  ;;  %v95_v35 = vld [vmem:[%s3206_s1 + $0x268] sm:$0xff]  ;;  %v2150_v36 = vcombine.low %v102_v24, %v110_v25  ;;  %v2152_v37 = vcombine.low %v103_v26, %v111_v27  ;;  %v2295_v24 = vcombine.high %v246_v19, %v254_v20  ;;  %v230_v26 = vld [vmem:[%s3206_s1 + $0x6a0] sm:$0xff] }
  0x70   :  { %v2137_v39 = vcombine.high %v87_v34, %v95_v35  ;;  %v238_v27 = vld [vmem:[%s3206_s1 + $0x6e0] sm:$0xff] }
  0x72   :  { %1672 = vmatpush2.bf16.msra.mxu0 %v2258_v42  ;;  %1713 = vmatpush2.bf16.msra.mxu1 %v2260_v43  ;;  %v71_v42 = vld [vmem:[%s3206_s1 + $0x1a8] sm:$0xff] }
  0x73   :  { %1673 = vmatprep.subr.bf16.mxu0 %v2243_v44  ;;  %1714 = vmatprep.subr.bf16.mxu1 %v2245_v45  ;;  %v79_v43 = vld [vmem:[%s3206_s1 + $0x1e8] sm:$0xff]  ;;  %v2134_v44 = vcombine.low %v86_v32, %v94_v33  ;;  %v2136_v45 = vcombine.low %v87_v34, %v95_v35  ;;  %v2279_v32 = vcombine.high %v230_v26, %v238_v27  ;;  %v214_v34 = vld [vmem:[%s3206_s1 + $0x620] sm:$0xff] }
  0x74   :  { %v2121_v47 = vcombine.high %v71_v42, %v79_v43  ;;  %v222_v35 = vld [vmem:[%s3206_s1 + $0x660] sm:$0xff] }
  0x76   :  { %1674 = vmatpush2.bf16.msra.mxu0 %v2242_v50  ;;  %1715 = vmatpush2.bf16.msra.mxu1 %v2244_v51  ;;  %v55_v50 = vld [vmem:[%s3206_s1 + $0x128] sm:$0xff] }
  0x77   :  { %1675 = vmatprep.subr.bf16.mxu0 %v2227_v52  ;;  %1716 = vmatprep.subr.bf16.mxu1 %v2229_v53  ;;  %v63_v51 = vld [vmem:[%s3206_s1 + $0x168] sm:$0xff]  ;;  %v2118_v52 = vcombine.low %v70_v40, %v78_v41  ;;  %v2120_v53 = vcombine.low %v71_v42, %v79_v43  ;;  %v2263_v40 = vcombine.high %v214_v34, %v222_v35  ;;  %v198_v42 = vld [vmem:[%s3206_s1 + $0x5a0] sm:$0xff] }
  0x78   :  { %v2105_v56 = vcombine.high %v55_v50, %v63_v51  ;;  %v206_v43 = vld [vmem:[%s3206_s1 + $0x5e0] sm:$0xff] }
  0x7a   :  { %1676 = vmatpush2.bf16.msra.mxu0 %v2226_v60  ;;  %1717 = vmatpush2.bf16.msra.mxu1 %v2228_v61  ;;  %v39_v60 = vld [vmem:[%s3206_s1 + $0xa8] sm:$0xff] }
  0x7b   :  { %1677 = vmatprep.subr.bf16.mxu0 %v2211_v62  ;;  %1718 = vmatprep.subr.bf16.mxu1 %v2213_v63  ;;  %v47_v61 = vld [vmem:[%s3206_s1 + $0xe8] sm:$0xff]  ;;  %v2102_v62 = vcombine.low %v54_v48, %v62_v49  ;;  %v2104_v63 = vcombine.low %v55_v50, %v63_v51  ;;  %v2247_v48 = vcombine.high %v198_v42, %v206_v43  ;;  %v182_v50 = vld [vmem:[%s3206_s1 + $0x520] sm:$0xff] }
  0x7c   :  { %v2089_v1 = vcombine.high %v39_v60, %v47_v61  ;;  %v190_v51 = vld [vmem:[%s3206_s1 + $0x560] sm:$0xff] }
  0x7e   :  { %1678 = vmatpush2.bf16.msra.mxu0 %v2210_v4  ;;  %1719 = vmatpush2.bf16.msra.mxu1 %v2212_v5  ;;  %v23_v4 = vld [vmem:[%s3206_s1 + $0x28] sm:$0xff] }
  0x7f   :  { %1679 = vmatprep.subr.bf16.mxu0 %v2195_v6  ;;  %1720 = vmatprep.subr.bf16.mxu1 %v2197_v7  ;;  %v31_v5 = vld [vmem:[%s3206_s1 + $0x68] sm:$0xff]  ;;  %v2086_v6 = vcombine.low %v38_v57, %v46_v59  ;;  %v2088_v7 = vcombine.low %v39_v60, %v47_v61  ;;  %v2231_v57 = vcombine.high %v182_v50, %v190_v51  ;;  %v166_v60 = vld [vmem:[%s3206_s1 + $0x4a0] sm:$0xff] }
  0x80   :  { %v2073_v9 = vcombine.high %v23_v4, %v31_v5  ;;  %v174_v61 = vld [vmem:[%s3206_s1 + $0x4e0] sm:$0xff] }
  0x82   :  { %1680 = vmatpush2.bf16.msra.mxu0 %v2194_v12  ;;  %1721 = vmatpush2.bf16.msra.mxu1 %v2196_v13  ;;  %v263_v12 = vld [vmem:[%s3206_s1 + $0x7a8] sm:$0xff] }
  0x83   :  { %1731 = vmatprep.subr.bf16.mxu0 %v2183_v15  ;;  %1772 = vmatprep.subr.bf16.mxu1 %v2185_v16  ;;  %v271_v13 = vld [vmem:[%s3206_s1 + $0x7e8] sm:$0xff]  ;;  %v2070_v15 = vcombine.low %v22_v2, %v30_v3  ;;  %v2072_v16 = vcombine.low %v23_v4, %v31_v5  ;;  %v2215_v2 = vcombine.high %v166_v60, %v174_v61  ;;  %v150_v4 = vld [vmem:[%s3206_s1 + $0x420] sm:$0xff] }
  0x84   :  { %v2313_v18 = vcombine.high %v263_v12, %v271_v13  ;;  %v158_v5 = vld [vmem:[%s3206_s1 + $0x460] sm:$0xff] }
  0x85   :  { %1682 = vmatmul.mubr.bf16.vlgmr.msra.gmra.mxu0 %v2581_v14  ;;  %1723 = vmatmul.mubr.bf16.vlgmr.msra.gmra.mxu1 %v2581_v14 }
  0x86   :  { %1732 = vmatpush1.bf16.msra.mxu0 %v2182_v54  ;;  %1773 = vmatpush1.bf16.msra.mxu1 %v2184_v21  ;;  %v247_v54 = vld [vmem:[%s3206_s1 + $0x728] sm:$0xff] }
  0x87   :  { %1733 = vmatprep.subr.bf16.mxu0 %v2167_v22  ;;  %1774 = vmatprep.subr.bf16.mxu1 %v2169_v23  ;;  %v255_v21 = vld [vmem:[%s3206_s1 + $0x768] sm:$0xff]  ;;  %v2310_v22 = vcombine.low %v262_v10, %v270_v11  ;;  %v2312_v23 = vcombine.low %v263_v12, %v271_v13  ;;  %v2199_v10 = vcombine.high %v150_v4, %v158_v5  ;;  %v136_v12 = vld [vmem:[%s3206_s1 + $0x3b0] sm:$0xff] }
  0x88   :  { %1763 = vmatprep.mubr.bf16.mxu0 %v2452_v58  ;;  %1804 = vmatprep.mubr.bf16.mxu1 %v2452_v58  ;;  %v2297_v25 = vcombine.high %v247_v54, %v255_v21  ;;  %v144_v13 = vld [vmem:[%s3206_s1 + $0x3f0] sm:$0xff] }
  0x8a   :  { %1734 = vmatpush1.bf16.msra.mxu0 %v2166_v28  ;;  %1775 = vmatpush1.bf16.msra.mxu1 %v2168_v29  ;;  %v231_v28 = vld [vmem:[%s3206_s1 + $0x6a8] sm:$0xff] }
  0x8b   :  { %1735 = vmatprep.subr.bf16.mxu0 %v2151_v30  ;;  %1776 = vmatprep.subr.bf16.mxu1 %v2153_v31  ;;  %v239_v29 = vld [vmem:[%s3206_s1 + $0x6e8] sm:$0xff]  ;;  %v2294_v30 = vcombine.low %v246_v19, %v254_v20  ;;  %v2296_v31 = vcombine.low %v247_v54, %v255_v21  ;;  %v2187_v19 = vcombine.high %v136_v12, %v144_v13  ;;  %v120_v54 = vld [vmem:[%s3206_s1 + $0x330] sm:$0xff] }
  0x8c   :  { %v2281_v33 = vcombine.high %v231_v28, %v239_v29  ;;  %v128_v21 = vld [vmem:[%s3206_s1 + $0x370] sm:$0xff] }
  0x8e   :  { %1736 = vmatpush1.bf16.msra.mxu0 %v2150_v36  ;;  %1777 = vmatpush1.bf16.msra.mxu1 %v2152_v37  ;;  %v215_v36 = vld [vmem:[%s3206_s1 + $0x628] sm:$0xff] }
  0x8f   :  { %1737 = vmatprep.subr.bf16.mxu0 %v2135_v38  ;;  %1778 = vmatprep.subr.bf16.mxu1 %v2137_v39  ;;  %v223_v37 = vld [vmem:[%s3206_s1 + $0x668] sm:$0xff]  ;;  %v2278_v38 = vcombine.low %v230_v26, %v238_v27  ;;  %v2280_v39 = vcombine.low %v231_v28, %v239_v29  ;;  %v2171_v26 = vcombine.high %v120_v54, %v128_v21  ;;  %v104_v28 = vld [vmem:[%s3206_s1 + $0x2b0] sm:$0xff] }
  0x90   :  { %v2265_v41 = vcombine.high %v215_v36, %v223_v37  ;;  %v112_v29 = vld [vmem:[%s3206_s1 + $0x2f0] sm:$0xff] }
  0x92   :  { %1738 = vmatpush1.bf16.msra.mxu0 %v2134_v44  ;;  %1779 = vmatpush1.bf16.msra.mxu1 %v2136_v45  ;;  %v199_v44 = vld [vmem:[%s3206_s1 + $0x5a8] sm:$0xff] }
  0x93   :  { %1739 = vmatprep.subr.bf16.mxu0 %v2119_v46  ;;  %1780 = vmatprep.subr.bf16.mxu1 %v2121_v47  ;;  %v207_v45 = vld [vmem:[%s3206_s1 + $0x5e8] sm:$0xff]  ;;  %v2262_v46 = vcombine.low %v214_v34, %v222_v35  ;;  %v2264_v47 = vcombine.low %v215_v36, %v223_v37  ;;  %v2155_v34 = vcombine.high %v104_v28, %v112_v29  ;;  %v88_v36 = vld [vmem:[%s3206_s1 + $0x230] sm:$0xff] }
  0x94   :  { %v2249_v49 = vcombine.high %v199_v44, %v207_v45  ;;  %v96_v37 = vld [vmem:[%s3206_s1 + $0x270] sm:$0xff] }
  0x96   :  { %1740 = vmatpush1.bf16.msra.mxu0 %v2118_v52  ;;  %1781 = vmatpush1.bf16.msra.mxu1 %v2120_v53  ;;  %v183_v52 = vld [vmem:[%s3206_s1 + $0x528] sm:$0xff] }
  0x97   :  { %1741 = vmatprep.subr.bf16.mxu0 %v2103_v55  ;;  %1782 = vmatprep.subr.bf16.mxu1 %v2105_v56  ;;  %v191_v53 = vld [vmem:[%s3206_s1 + $0x568] sm:$0xff]  ;;  %v2246_v55 = vcombine.low %v198_v42, %v206_v43  ;;  %v2248_v56 = vcombine.low %v199_v44, %v207_v45  ;;  %v2139_v42 = vcombine.high %v88_v36, %v96_v37  ;;  %v72_v44 = vld [vmem:[%s3206_s1 + $0x1b0] sm:$0xff] }
  0x98   :  { %v2233_v59 = vcombine.high %v183_v52, %v191_v53  ;;  %v80_v45 = vld [vmem:[%s3206_s1 + $0x1f0] sm:$0xff] }
  0x9a   :  { %1742 = vmatpush1.bf16.msra.mxu0 %v2102_v62  ;;  %1783 = vmatpush1.bf16.msra.mxu1 %v2104_v63  ;;  %v167_v62 = vld [vmem:[%s3206_s1 + $0x4a8] sm:$0xff] }
  0x9b   :  { %1743 = vmatprep.subr.bf16.mxu0 %v2087_v0  ;;  %1784 = vmatprep.subr.bf16.mxu1 %v2089_v1  ;;  %v175_v63 = vld [vmem:[%s3206_s1 + $0x4e8] sm:$0xff]  ;;  %v2230_v0 = vcombine.low %v182_v50, %v190_v51  ;;  %v2232_v1 = vcombine.low %v183_v52, %v191_v53  ;;  %v56_v51 = vld [vmem:[%s3206_s1 + $0x130] sm:$0xff]  ;;  %v57_v53 = vld [vmem:[%s3206_s1 + $0x138] sm:$0xff] }
  0x9c   :  { %v2217_v3 = vcombine.high %v167_v62, %v175_v63  ;;  %v64_v52 = vld [vmem:[%s3206_s1 + $0x170] sm:$0xff] }
  0x9e   :  { %1744 = vmatpush1.bf16.msra.mxu0 %v2086_v6  ;;  %1785 = vmatpush1.bf16.msra.mxu1 %v2088_v7  ;;  %v151_v6 = vld [vmem:[%s3206_s1 + $0x428] sm:$0xff] }
  0x9f   :  { %1745 = vmatprep.subr.bf16.mxu0 %v2071_v8  ;;  %1786 = vmatprep.subr.bf16.mxu1 %v2073_v9  ;;  %v159_v7 = vld [vmem:[%s3206_s1 + $0x468] sm:$0xff]  ;;  %v2214_v8 = vcombine.low %v166_v60, %v174_v61  ;;  %v2216_v9 = vcombine.low %v167_v62, %v175_v63  ;;  %v40_v61 = vld [vmem:[%s3206_s1 + $0xb0] sm:$0xff]  ;;  %v41_v63 = vld [vmem:[%s3206_s1 + $0xb8] sm:$0xff] }
  0xa0   :  { %v2201_v11 = vcombine.high %v151_v6, %v159_v7  ;;  %v48_v62 = vld [vmem:[%s3206_s1 + $0xf0] sm:$0xff] }
  0xa2   :  { %1746 = vmatpush1.bf16.msra.mxu0 %v2070_v15  ;;  %1787 = vmatpush1.bf16.msra.mxu1 %v2072_v16  ;;  %v137_v15 = vld [vmem:[%s3206_s1 + $0x3b8] sm:$0xff] }
  0xa3   :  { %1747 = vmatprep.subr.bf16.mxu0 %v2311_v17  ;;  %1788 = vmatprep.subr.bf16.mxu1 %v2313_v18  ;;  %v145_v16 = vld [vmem:[%s3206_s1 + $0x3f8] sm:$0xff]  ;;  %v2198_v17 = vcombine.low %v150_v4, %v158_v5  ;;  %v2200_v18 = vcombine.low %v151_v6, %v159_v7  ;;  %v24_v5 = vld [vmem:[%s3206_s1 + $0x30] sm:$0xff] }
  0xa4   :  { %v2189_v20 = vcombine.high %v137_v15, %v145_v16  ;;  %v32_v6 = vld [vmem:[%s3206_s1 + $0x70] sm:$0xff]  ;;  %v25_v7 = vld [vmem:[%s3206_s1 + $0x38] sm:$0xff] }
  0xa6   :  { %1748 = vmatpush2.bf16.msra.mxu0 %v2310_v22  ;;  %1789 = vmatpush2.bf16.msra.mxu1 %v2312_v23  ;;  %v121_v22 = vld [vmem:[%s3206_s1 + $0x338] sm:$0xff] }
  0xa7   :  { %1749 = vmatprep.subr.bf16.mxu0 %v2295_v24  ;;  %1790 = vmatprep.subr.bf16.mxu1 %v2297_v25  ;;  %v129_v23 = vld [vmem:[%s3206_s1 + $0x378] sm:$0xff]  ;;  %v2186_v24 = vcombine.low %v136_v12, %v144_v13  ;;  %v2188_v25 = vcombine.low %v137_v15, %v145_v16  ;;  %v264_v13 = vld [vmem:[%s3206_s1 + $0x7b0] sm:$0xff] }
  0xa8   :  { %v2173_v27 = vcombine.high %v121_v22, %v129_v23  ;;  %v272_v15 = vld [vmem:[%s3206_s1 + $0x7f0] sm:$0xff]  ;;  %v265_v16 = vld [vmem:[%s3206_s1 + $0x7b8] sm:$0xff] }
  0xaa   :  { %1750 = vmatpush2.bf16.msra.mxu0 %v2294_v30  ;;  %1791 = vmatpush2.bf16.msra.mxu1 %v2296_v31  ;;  %v105_v30 = vld [vmem:[%s3206_s1 + $0x2b8] sm:$0xff] }
  0xab   :  { %1751 = vmatprep.subr.bf16.mxu0 %v2279_v32  ;;  %1792 = vmatprep.subr.bf16.mxu1 %v2281_v33  ;;  %v113_v31 = vld [vmem:[%s3206_s1 + $0x2f8] sm:$0xff]  ;;  %v2170_v32 = vcombine.low %v120_v54, %v128_v21  ;;  %v2172_v33 = vcombine.low %v121_v22, %v129_v23  ;;  %v248_v21 = vld [vmem:[%s3206_s1 + $0x730] sm:$0xff] }
  0xac   :  { %v2157_v35 = vcombine.high %v105_v30, %v113_v31  ;;  %v256_v22 = vld [vmem:[%s3206_s1 + $0x770] sm:$0xff]  ;;  %v249_v23 = vld [vmem:[%s3206_s1 + $0x738] sm:$0xff] }
  0xae   :  { %1752 = vmatpush2.bf16.msra.mxu0 %v2278_v38  ;;  %1793 = vmatpush2.bf16.msra.mxu1 %v2280_v39  ;;  %v89_v38 = vld [vmem:[%s3206_s1 + $0x238] sm:$0xff] }
  0xaf   :  { %1753 = vmatprep.subr.bf16.mxu0 %v2263_v40  ;;  %1794 = vmatprep.subr.bf16.mxu1 %v2265_v41  ;;  %v97_v39 = vld [vmem:[%s3206_s1 + $0x278] sm:$0xff]  ;;  %v2154_v40 = vcombine.low %v104_v28, %v112_v29  ;;  %v2156_v41 = vcombine.low %v105_v30, %v113_v31  ;;  %v232_v29 = vld [vmem:[%s3206_s1 + $0x6b0] sm:$0xff] }
  0xb0   :  { %v2141_v43 = vcombine.high %v89_v38, %v97_v39  ;;  %v240_v30 = vld [vmem:[%s3206_s1 + $0x6f0] sm:$0xff]  ;;  %v233_v31 = vld [vmem:[%s3206_s1 + $0x6b8] sm:$0xff] }
  0xb2   :  { %1754 = vmatpush2.bf16.msra.mxu0 %v2262_v46  ;;  %1795 = vmatpush2.bf16.msra.mxu1 %v2264_v47  ;;  %v81_v46 = vld [vmem:[%s3206_s1 + $0x1f8] sm:$0xff]  ;;  %v2138_v47 = vcombine.low %v88_v36, %v96_v37  ;;  %v216_v37 = vld [vmem:[%s3206_s1 + $0x630] sm:$0xff] }
  0xb3   :  { %1755 = vmatprep.subr.bf16.mxu0 %v2247_v48  ;;  %1796 = vmatprep.subr.bf16.mxu1 %v2249_v49  ;;  %v2140_v48 = vcombine.low %v89_v38, %v97_v39  ;;  %v2123_v49 = vcombine.high %v72_v44, %v80_v45  ;;  %v224_v38 = vld [vmem:[%s3206_s1 + $0x670] sm:$0xff]  ;;  %v217_v39 = vld [vmem:[%s3206_s1 + $0x638] sm:$0xff] }
  0xb6   :  { %1756 = vmatpush2.bf16.msra.mxu0 %v2246_v55  ;;  %1797 = vmatpush2.bf16.msra.mxu1 %v2248_v56  ;;  %v65_v55 = vld [vmem:[%s3206_s1 + $0x178] sm:$0xff]  ;;  %v2122_v56 = vcombine.low %v72_v44, %v80_v45  ;;  %v200_v45 = vld [vmem:[%s3206_s1 + $0x5b0] sm:$0xff] }
  0xb7   :  { %1757 = vmatprep.subr.bf16.mxu0 %v2231_v57  ;;  %1798 = vmatprep.subr.bf16.mxu1 %v2233_v59  ;;  %v2107_v59 = vcombine.high %v56_v51, %v64_v52  ;;  %v2109_v60 = vcombine.high %v57_v53, %v65_v55 }
  0xba   :  { %1758 = vmatpush2.bf16.msra.mxu0 %v2230_v0  ;;  %1799 = vmatpush2.bf16.msra.mxu1 %v2232_v1  ;;  %v49_v0 = vld [vmem:[%s3206_s1 + $0xf8] sm:$0xff]  ;;  %v2106_v1 = vcombine.low %v56_v51, %v64_v52  ;;  %v184_v52 = vld [vmem:[%s3206_s1 + $0x530] sm:$0xff] }
  0xbb   :  { %1759 = vmatprep.subr.bf16.mxu0 %v2215_v2  ;;  %1800 = vmatprep.subr.bf16.mxu1 %v2217_v3  ;;  %v2108_v2 = vcombine.low %v57_v53, %v65_v55  ;;  %v2091_v3 = vcombine.high %v40_v61, %v48_v62  ;;  %v2093_v4 = vcombine.high %v41_v63, %v49_v0  ;;  %v192_v53 = vld [vmem:[%s3206_s1 + $0x570] sm:$0xff]  ;;  %v185_v55 = vld [vmem:[%s3206_s1 + $0x538] sm:$0xff] }
  0xbe   :  { %1760 = vmatpush2.bf16.msra.mxu0 %v2214_v8  ;;  %1801 = vmatpush2.bf16.msra.mxu1 %v2216_v9  ;;  %v33_v8 = vld [vmem:[%s3206_s1 + $0x78] sm:$0xff]  ;;  %v2090_v9 = vcombine.low %v40_v61, %v48_v62  ;;  %v168_v62 = vld [vmem:[%s3206_s1 + $0x4b0] sm:$0xff] }
  0xbf   :  { %1761 = vmatprep.subr.bf16.mxu0 %v2199_v10  ;;  %1802 = vmatprep.subr.bf16.mxu1 %v2201_v11  ;;  %v2092_v10 = vcombine.low %v41_v63, %v49_v0  ;;  %v2075_v11 = vcombine.high %v24_v5, %v32_v6  ;;  %v2077_v12 = vcombine.high %v25_v7, %v33_v8  ;;  %v176_v63 = vld [vmem:[%s3206_s1 + $0x4f0] sm:$0xff]  ;;  %v169_v0 = vld [vmem:[%s3206_s1 + $0x4b8] sm:$0xff] }
  0xc2   :  { %1762 = vmatpush2.bf16.msra.mxu0 %v2198_v17  ;;  %1803 = vmatpush2.bf16.msra.mxu1 %v2200_v18  ;;  %v273_v17 = vld [vmem:[%s3206_s1 + $0x7f8] sm:$0xff]  ;;  %v2074_v18 = vcombine.low %v24_v5, %v32_v6  ;;  %v152_v6 = vld [vmem:[%s3206_s1 + $0x430] sm:$0xff] }
  0xc3   :  { %1813 = vmatprep.subr.bf16.mxu0 %v2187_v19  ;;  %1854 = vmatprep.subr.bf16.mxu1 %v2189_v20  ;;  %v2076_v19 = vcombine.low %v25_v7, %v33_v8  ;;  %v2315_v20 = vcombine.high %v264_v13, %v272_v15  ;;  %v2317_v54 = vcombine.high %v265_v16, %v273_v17  ;;  %v160_v7 = vld [vmem:[%s3206_s1 + $0x470] sm:$0xff]  ;;  %v153_v8 = vld [vmem:[%s3206_s1 + $0x438] sm:$0xff] }
  0xc5   :  { %1764 = vmatmul.mubr.bf16.vlgmr.msra.gmra.mxu0 %v2581_v14  ;;  %1805 = vmatmul.mubr.bf16.vlgmr.msra.gmra.mxu1 %v2581_v14 }
  0xc6   :  { %1814 = vmatpush1.bf16.msra.mxu0 %v2186_v24  ;;  %1855 = vmatpush1.bf16.msra.mxu1 %v2188_v25  ;;  %v257_v24 = vld [vmem:[%s3206_s1 + $0x778] sm:$0xff]  ;;  %v2314_v25 = vcombine.low %v264_v13, %v272_v15  ;;  %v2202_v15 = vcombine.low %v152_v6, %v160_v7 }
  0xc7   :  { %1815 = vmatprep.subr.bf16.mxu0 %v2171_v26  ;;  %1856 = vmatprep.subr.bf16.mxu1 %v2173_v27  ;;  %v2316_v26 = vcombine.low %v265_v16, %v273_v17  ;;  %v2299_v27 = vcombine.high %v248_v21, %v256_v22  ;;  %v2301_v28 = vcombine.high %v249_v23, %v257_v24 }
  0xc8   :  { %1845 = vmatprep.mubr.bf16.mxu0 %v2452_v58  ;;  %1886 = vmatprep.mubr.bf16.mxu1 %v2452_v58  ;;  %v73_v58 = vld [vmem:[%s3206_s1 + $0x1b8] sm:$0xff] }
  0xc9   :  { %v2125_v50 = vcombine.high %v73_v58, %v81_v46  ;;  %v2124_v57 = vcombine.low %v73_v58, %v81_v46  ;;  %v208_v58 = vld [vmem:[%s3206_s1 + $0x5f0] sm:$0xff]  ;;  %v201_v46 = vld [vmem:[%s3206_s1 + $0x5b8] sm:$0xff] }
  0xca   :  { %1816 = vmatpush1.bf16.msra.mxu0 %v2170_v32  ;;  %1857 = vmatpush1.bf16.msra.mxu1 %v2172_v33  ;;  %v241_v32 = vld [vmem:[%s3206_s1 + $0x6f8] sm:$0xff]  ;;  %v2298_v33 = vcombine.low %v248_v21, %v256_v22 }
  0xcb   :  { %1817 = vmatprep.subr.bf16.mxu0 %v2155_v34  ;;  %1858 = vmatprep.subr.bf16.mxu1 %v2157_v35  ;;  %v2300_v34 = vcombine.low %v249_v23, %v257_v24  ;;  %v2283_v35 = vcombine.high %v232_v29, %v240_v30  ;;  %v2285_v36 = vcombine.high %v233_v31, %v241_v32 }
  0xce   :  { %1818 = vmatpush1.bf16.msra.mxu0 %v2154_v40  ;;  %1859 = vmatpush1.bf16.msra.mxu1 %v2156_v41  ;;  %v225_v40 = vld [vmem:[%s3206_s1 + $0x678] sm:$0xff]  ;;  %v2282_v41 = vcombine.low %v232_v29, %v240_v30 }
  0xcf   :  { %1819 = vmatprep.subr.bf16.mxu0 %v2139_v42  ;;  %1860 = vmatprep.subr.bf16.mxu1 %v2141_v43  ;;  %v2284_v42 = vcombine.low %v233_v31, %v241_v32  ;;  %v2267_v43 = vcombine.high %v216_v37, %v224_v38  ;;  %v2269_v44 = vcombine.high %v217_v39, %v225_v40 }
  0xd2   :  { %1820 = vmatpush1.bf16.msra.mxu0 %v2138_v47  ;;  %1861 = vmatpush1.bf16.msra.mxu1 %v2140_v48  ;;  %v209_v47 = vld [vmem:[%s3206_s1 + $0x5f8] sm:$0xff]  ;;  %v2266_v48 = vcombine.low %v216_v37, %v224_v38 }
  0xd3   :  { %1821 = vmatprep.subr.bf16.mxu0 %v2123_v49  ;;  %1862 = vmatprep.subr.bf16.mxu1 %v2125_v50  ;;  %v2268_v49 = vcombine.low %v217_v39, %v225_v40  ;;  %v2251_v50 = vcombine.high %v200_v45, %v208_v58  ;;  %v2253_v51 = vcombine.high %v201_v46, %v209_v47  ;;  %v278_v39 = vpop.permute.xlu0 %277 }
  0xd6   :  { %1822 = vmatpush1.bf16.msra.mxu0 %v2122_v56  ;;  %1863 = vmatpush1.bf16.msra.mxu1 %v2124_v57  ;;  %v193_v56 = vld [vmem:[%s3206_s1 + $0x578] sm:$0xff]  ;;  %v2250_v57 = vcombine.low %v200_v45, %v208_v58 }
  0xd7   :  { %1823 = vmatprep.subr.bf16.mxu0 %v2107_v59  ;;  %1864 = vmatprep.subr.bf16.mxu1 %v2109_v60  ;;  %v2252_v59 = vcombine.low %v201_v46, %v209_v47  ;;  %v2235_v60 = vcombine.high %v184_v52, %v192_v53  ;;  %v2237_v61 = vcombine.high %v185_v55, %v193_v56 }
  0xda   :  { %1824 = vmatpush1.bf16.msra.mxu0 %v2106_v1  ;;  %1865 = vmatpush1.bf16.msra.mxu1 %v2108_v2  ;;  %v177_v1 = vld [vmem:[%s3206_s1 + $0x4f8] sm:$0xff]  ;;  %v2234_v2 = vcombine.low %v184_v52, %v192_v53 }
  0xdb   :  { %1825 = vmatprep.subr.bf16.mxu0 %v2091_v3  ;;  %1866 = vmatprep.subr.bf16.mxu1 %v2093_v4  ;;  %v2236_v3 = vcombine.low %v185_v55, %v193_v56  ;;  %v2219_v4 = vcombine.high %v168_v62, %v176_v63  ;;  %v2221_v5 = vcombine.high %v169_v0, %v177_v1 }
  0xde   :  { %1826 = vmatpush1.bf16.msra.mxu0 %v2090_v9  ;;  %1867 = vmatpush1.bf16.msra.mxu1 %v2092_v10  ;;  %v161_v9 = vld [vmem:[%s3206_s1 + $0x478] sm:$0xff]  ;;  %v2218_v10 = vcombine.low %v168_v62, %v176_v63 }
  0xdf   :  { %1827 = vmatprep.subr.bf16.mxu0 %v2075_v11  ;;  %1868 = vmatprep.subr.bf16.mxu1 %v2077_v12  ;;  %v2220_v11 = vcombine.low %v169_v0, %v177_v1  ;;  %v2203_v12 = vcombine.high %v152_v6, %v160_v7  ;;  %v2205_v13 = vcombine.high %v153_v8, %v161_v9 }
  0xe0   :  { %v2204_v16 = vcombine.low %v153_v8, %v161_v9 }
  0xe2   :  { %1828 = vmatpush1.bf16.msra.mxu0 %v2074_v18  ;;  %1869 = vmatpush1.bf16.msra.mxu1 %v2076_v19 }
  0xe3   :  { %1829 = vmatprep.subr.bf16.mxu0 %v2315_v20  ;;  %1870 = vmatprep.subr.bf16.mxu1 %v2317_v54 }
  0xe6   :  { %1830 = vmatpush2.bf16.msra.mxu0 %v2314_v25  ;;  %1871 = vmatpush2.bf16.msra.mxu1 %v2316_v26 }
  0xe7   :  { %1831 = vmatprep.subr.bf16.mxu0 %v2299_v27  ;;  %1872 = vmatprep.subr.bf16.mxu1 %v2301_v28 }
  0xea   :  { %1832 = vmatpush2.bf16.msra.mxu0 %v2298_v33  ;;  %1873 = vmatpush2.bf16.msra.mxu1 %v2300_v34 }
  0xeb   :  { %1833 = vmatprep.subr.bf16.mxu0 %v2283_v35  ;;  %1874 = vmatprep.subr.bf16.mxu1 %v2285_v36 }
  0xee   :  { %1834 = vmatpush2.bf16.msra.mxu0 %v2282_v41  ;;  %1875 = vmatpush2.bf16.msra.mxu1 %v2284_v42 }
  0xef   :  { %1835 = vmatprep.subr.bf16.mxu0 %v2267_v43  ;;  %1876 = vmatprep.subr.bf16.mxu1 %v2269_v44 }
  0xf2   :  { %1836 = vmatpush2.bf16.msra.mxu0 %v2266_v48  ;;  %1877 = vmatpush2.bf16.msra.mxu1 %v2268_v49 }
  0xf3   :  { %1837 = vmatprep.subr.bf16.mxu0 %v2251_v50  ;;  %1878 = vmatprep.subr.bf16.mxu1 %v2253_v51 }
  0xf6   :  { %1838 = vmatpush2.bf16.msra.mxu0 %v2250_v57  ;;  %1879 = vmatpush2.bf16.msra.mxu1 %v2252_v59 }
  0xf7   :  { %1839 = vmatprep.subr.bf16.mxu0 %v2235_v60  ;;  %1880 = vmatprep.subr.bf16.mxu1 %v2237_v61 }
  0xfa   :  { %1840 = vmatpush2.bf16.msra.mxu0 %v2234_v2  ;;  %1881 = vmatpush2.bf16.msra.mxu1 %v2236_v3 }
  0xfb   :  { %1841 = vmatprep.subr.bf16.mxu0 %v2219_v4  ;;  %1882 = vmatprep.subr.bf16.mxu1 %v2221_v5 }
  0xfe   :  { %1842 = vmatpush2.bf16.msra.mxu0 %v2218_v10  ;;  %1883 = vmatpush2.bf16.msra.mxu1 %v2220_v11 }
  0xff   :  { %1843 = vmatprep.subr.bf16.mxu0 %v2203_v12  ;;  %1884 = vmatprep.subr.bf16.mxu1 %v2205_v13 }
 0x102   :  { %1844 = vmatpush2.bf16.msra.mxu0 %v2202_v15  ;;  %1885 = vmatpush2.bf16.msra.mxu1 %v2204_v16 }
 0x105   :  { %v1601_v17 = vpop.f32.mrf.mxu0  ;;  %1846 = vmatmul.mubr.bf16.vlgmr.msra.gmra.mxu0 %v2581_v14  ;;  %v1642_v18 = vpop.f32.mrf.mxu1  ;;  %1887 = vmatmul.mubr.bf16.vlgmr.msra.gmra.mxu1 %v2581_v14 }
 0x106   :  { %v1602_v40 = vadd.f32 %v1601_v17, %v278_v39  ;;  %v1643_v43 = vadd.f32 %v1642_v18, %v278_v39  ;;  %v1982_v17 = vld [vmem:[%s3209_s3] sm:$0xff]  ;;  %v2329_v18 = vmov 1  }
 0x107   :  { %v1603_v19 = vpop.f32.mrf.mxu0  ;;  %v1644_v20 = vpop.f32.mrf.mxu1  ;;  %1985 = vperm.xlu1 %2321, %v1982_v17   ;;  %2323 = vset.pattern.permute.xlu0 %v2329_v18 }
 0x108   :  { %v1604_v41 = vadd.f32 %v1603_v19, %v278_v39  ;;  %v1645_v44 = vadd.f32 %v1644_v20, %v278_v39 }
 0x109   :  { %v1605_v54 = vpop.f32.mrf.mxu0  ;;  %v1646_v21 = vpop.f32.mrf.mxu1 }
 0x10a   :  { %v1895_v42 = vadd.f32 %v1604_v41, %v1602_v40 }
 0x10b   :  { %v1606_v22 = vpop.f32.mrf.mxu0  ;;  %v1647_v23 = vpop.f32.mrf.mxu1  ;;  %2322 = vset.pattern.permute.xlu1 %v2329_v18 }
 0x10c   :  { %v1896_v45 = vadd.f32 %v1895_v42, %v1643_v43 }
 0x10e   :  { %v1897_v46 = vadd.f32 %v1896_v45, %v1645_v44 }
 0x145   :  { %v1683_v24 = vpop.f32.mrf.mxu0  ;;  %v1724_v25 = vpop.f32.mrf.mxu1 }
 0x146   :  { %v1684_v58 = vadd.f32 %v1683_v24, %v278_v39  ;;  %v1725_v49 = vadd.f32 %v1724_v25, %v278_v39 }
 0x147   :  { %v1685_v26 = vpop.f32.mrf.mxu0  ;;  %v1726_v27 = vpop.f32.mrf.mxu1 }
 0x148   :  { %v1898_v47 = vadd.f32 %v1897_v46, %v1684_v58  ;;  %v1686_v48 = vadd.f32 %v1685_v26, %v278_v39  ;;  %v1727_v51 = vadd.f32 %v1726_v27, %v278_v39 }
 0x149   :  { %v1687_v28 = vpop.f32.mrf.mxu0  ;;  %v1728_v29 = vpop.f32.mrf.mxu1 }
 0x14a   :  { %v1899_v50 = vadd.f32 %v1898_v47, %v1686_v48 }
 0x14b   :  { %v1688_v30 = vpop.f32.mrf.mxu0  ;;  %v1729_v31 = vpop.f32.mrf.mxu1 }
 0x14c   :  { %v1900_v52 = vadd.f32 %v1899_v50, %v1725_v49 }
 0x14e   :  { %v1901_v55 = vadd.f32 %v1900_v52, %v1727_v51 }
 0x185   :  { %v1765_v32 = vpop.f32.mrf.mxu0  ;;  %v1806_v33 = vpop.f32.mrf.mxu1 }
 0x186   :  { %v1766_v53 = vadd.f32 %v1765_v32, %v278_v39  ;;  %v1807_v59 = vadd.f32 %v1806_v33, %v278_v39 }
 0x187   :  { %v1767_v34 = vpop.f32.mrf.mxu0  ;;  %v1808_v35 = vpop.f32.mrf.mxu1 }
 0x188   :  { %v1902_v56 = vadd.f32 %v1901_v55, %v1766_v53  ;;  %v1768_v57 = vadd.f32 %v1767_v34, %v278_v39  ;;  %v1809_v61 = vadd.f32 %v1808_v35, %v278_v39 }
 0x189   :  { %v1769_v36 = vpop.f32.mrf.mxu0  ;;  %v1810_v14 = vpop.f32.mrf.mxu1 }
 0x18a   :  { %v1903_v60 = vadd.f32 %v1902_v56, %v1768_v57 }
 0x18b   :  { %v1770_v37 = vpop.f32.mrf.mxu0  ;;  %v1811_v38 = vpop.f32.mrf.mxu1 }
 0x18c   :  { %v1904_v62 = vadd.f32 %v1903_v60, %v1807_v59 }
 0x18e   :  { %v1905_v0 = vadd.f32 %v1904_v62, %v1809_v61 }
 0x1c5   :  { %v1847_v63 = vpop.f32.mrf.mxu0  ;;  %v1888_v2 = vpop.f32.mrf.mxu1 }
 0x1c6   :  { %v1848_v1 = vadd.f32 %v1847_v63, %v278_v39  ;;  %v1889_v8 = vadd.f32 %v1888_v2, %v278_v39 }
 0x1c7   :  { %v1849_v3 = vpop.f32.mrf.mxu0  ;;  %v1890_v6 = vpop.f32.mrf.mxu1 }
 0x1c8   :  { %v1906_v4 = vadd.f32 %v1905_v0, %v1848_v1  ;;  %v1850_v5 = vadd.f32 %v1849_v3, %v278_v39  ;;  %v1891_v12 = vadd.f32 %v1890_v6, %v278_v39 }
 0x1c9   :  { %v1851_v7 = vpop.f32.mrf.mxu0  ;;  %v1892_v10 = vpop.f32.mrf.mxu1 }
 0x1ca   :  { %v1907_v9 = vadd.f32 %v1906_v4, %v1850_v5 }
 0x1cb   :  { %v1852_v11 = vpop.f32.mrf.mxu0  ;;  %v1893_v13 = vpop.f32.mrf.mxu1 }
 0x1cc   :  { %v1908_v15 = vadd.f32 %v1907_v9, %v1889_v8 }
 0x1ce   :  { %v1909_v16 = vadd.f32 %v1908_v15, %v1891_v12 }
 0x1d0   :  { %1910 = vadd.xlane.f32.xlu0 %v1909_v16 }
 0x259   :  { %v1911_v19 = vpop.xlane.xlu0 %1910 }
 0x25a   :  { %v1913_v20 = vmul.f32 0.00048828125, %v1911_v19 }
 0x25c   :  { %v1914_v54 = vsub.f32 %v1602_v40, %v1913_v20  ;;  %v1915_v21 = vsub.f32 %v1604_v41, %v1913_v20  ;;  %v1916_v22 = vsub.f32 %v1643_v43, %v1913_v20  ;;  %v1917_v25 = vsub.f32 %v1645_v44, %v1913_v20 }
 0x25d   :  { %v1918_v26 = vsub.f32 %v1684_v58, %v1913_v20  ;;  %v1919_v29 = vsub.f32 %v1686_v48, %v1913_v20  ;;  %v1920_v32 = vsub.f32 %v1725_v49, %v1913_v20  ;;  %v1921_v35 = vsub.f32 %v1727_v51, %v1913_v20 }
 0x25e   :  { %v1930_v23 = vmul.f32 %v1914_v54, %v1914_v54  ;;  %v1931_v24 = vmul.f32 %v1915_v21, %v1915_v21  ;;  %v1932_v27 = vmul.f32 %v1916_v22, %v1916_v22  ;;  %v1933_v30 = vmul.f32 %v1917_v25, %v1917_v25 }
 0x25f   :  { %v1934_v33 = vmul.f32 %v1918_v26, %v1918_v26  ;;  %v1935_v36 = vmul.f32 %v1919_v29, %v1919_v29  ;;  %v1922_v37 = vsub.f32 %v1766_v53, %v1913_v20  ;;  %v1936_v38 = vmul.f32 %v1920_v32, %v1920_v32 }
 0x260   :  { %v1946_v28 = vadd.f32 %v1931_v24, %v1930_v23  ;;  %v1923_v40 = vsub.f32 %v1768_v57, %v1913_v20  ;;  %v1937_v41 = vmul.f32 %v1921_v35, %v1921_v35  ;;  %v1924_v43 = vsub.f32 %v1807_v59, %v1913_v20 }
 0x261   :  { %v1938_v44 = vmul.f32 %v1922_v37, %v1922_v37  ;;  %v1925_v58 = vsub.f32 %v1809_v61, %v1913_v20  ;;  %v1926_v48 = vsub.f32 %v1848_v1, %v1913_v20  ;;  %v1927_v52 = vsub.f32 %v1850_v5, %v1913_v20  ;;  %v1986_v61 = vpop.permute.xlu1 %1985 }
 0x262   :  { %v1947_v31 = vadd.f32 %v1946_v28, %v1932_v27  ;;  %v1939_v46 = vmul.f32 %v1923_v40, %v1923_v40  ;;  %v1940_v50 = vmul.f32 %v1924_v43, %v1924_v43  ;;  %v1928_v56 = vsub.f32 %v1889_v8, %v1913_v20 }
 0x263   :  { %v1941_v55 = vmul.f32 %v1925_v58, %v1925_v58  ;;  %v1942_v60 = vmul.f32 %v1926_v48, %v1926_v48  ;;  %v1929_v62 = vsub.f32 %v1891_v12, %v1913_v20  ;;  %v1943_v63 = vmul.f32 %v1927_v52, %v1927_v52 }
 0x264   :  { %v1948_v34 = vadd.f32 %v1947_v31, %v1933_v30  ;;  %v1944_v0 = vmul.f32 %v1928_v56, %v1928_v56 }
 0x265   :  { %v1945_v59 = vmul.f32 %v1929_v62, %v1929_v62 }
 0x266   :  { %v1949_v14 = vadd.f32 %v1948_v34, %v1934_v33 }
 0x268   :  { %v1950_v39 = vadd.f32 %v1949_v14, %v1935_v36 }
 0x26a   :  { %v1951_v42 = vadd.f32 %v1950_v39, %v1936_v38 }
 0x26c   :  { %v1952_v45 = vadd.f32 %v1951_v42, %v1937_v41 }
 0x26e   :  { %v1953_v47 = vadd.f32 %v1952_v45, %v1938_v44 }
 0x270   :  { %v1954_v49 = vadd.f32 %v1953_v47, %v1939_v46 }
 0x272   :  { %v1955_v51 = vadd.f32 %v1954_v49, %v1940_v50 }
 0x274   :  { %v1956_v53 = vadd.f32 %v1955_v51, %v1941_v55 }
 0x276   :  { %v1957_v57 = vadd.f32 %v1956_v53, %v1942_v60 }
 0x278   :  { %v1958_v2 = vadd.f32 %v1957_v57, %v1943_v63 }
 0x27a   :  { %v1959_v3 = vadd.f32 %v1958_v2, %v1944_v0 }
 0x27c   :  { %v1960_v4 = vadd.f32 %v1959_v3, %v1945_v59 }
 0x27e   :  { %1961 = vadd.xlane.f32.xlu1 %v1960_v4 }
 0x28f   :  { %2005 = vperm.xlu1 %2322, %v1982_v17  }
 0x307   :  { %v1962_v1 = vpop.xlane.xlu1 %1961 }
 0x308   :  { %v1963_v6 = vmul.f32 0.00048828125, %v1962_v1 }
 0x30a   :  { %v1964_v7 = vadd.f32 1e-05, %v1963_v6 }
 0x30c   :  { %2326 = vrsqrt.f32 %v1964_v7 }
 0x319   :  { %v2327_v5 = vpop.eup %2326 }
 0x31a   :  { %v1966_v9 = vmul.f32 %v2327_v5, %v1914_v54  ;;  %v1967_v8 = vmul.f32 %v2327_v5, %v1915_v21  ;;  %v1968_v10 = vmul.f32 %v2327_v5, %v1916_v22  ;;  %v1969_v11 = vmul.f32 %v2327_v5, %v1917_v25 }
 0x31b   :  { %v1970_v12 = vmul.f32 %v2327_v5, %v1918_v26  ;;  %v1971_v13 = vmul.f32 %v2327_v5, %v1919_v29  ;;  %v1972_v15 = vmul.f32 %v2327_v5, %v1920_v32  ;;  %v1973_v16 = vmul.f32 %v2327_v5, %v1921_v35  ;;  %v2006_v26 = vpop.permute.xlu1 %2005 }
 0x31c   :  { %v1974_v18 = vmul.f32 %v2327_v5, %v1922_v37  ;;  %v1975_v19 = vmul.f32 %v2327_v5, %v1923_v40  ;;  %v1976_v20 = vmul.f32 %v2327_v5, %v1924_v43  ;;  %v1977_v23 = vmul.f32 %v2327_v5, %v1925_v58 }
 0x31d   :  { %v1978_v24 = vmul.f32 %v2327_v5, %v1926_v48  ;;  %v1979_v17 = vmul.f32 %v2327_v5, %v1927_v52  ;;  %v1980_v27 = vmul.f32 %v2327_v5, %v1928_v56  ;;  %v1981_v28 = vmul.f32 %v2327_v5, %v1929_v62 }
 0x31e   :  { %v1988_v30 = vmul.f32 %v1986_v61, %v1966_v9  ;;  %v1989_v31 = vmul.f32 %v1986_v61, %v1967_v8  ;;  %v1990_v33 = vmul.f32 %v1986_v61, %v1968_v10  ;;  %v1991_v34 = vmul.f32 %v1986_v61, %v1969_v11 }
 0x31f   :  { %v1992_v54 = vmul.f32 %v1986_v61, %v1970_v12  ;;  %v1993_v21 = vmul.f32 %v1986_v61, %v1971_v13  ;;  %v1994_v22 = vmul.f32 %v1986_v61, %v1972_v15  ;;  %v1995_v25 = vmul.f32 %v1986_v61, %v1973_v16 }
 0x320   :  { %v1996_v29 = vmul.f32 %v1986_v61, %v1974_v18  ;;  %v1997_v32 = vmul.f32 %v1986_v61, %v1975_v19  ;;  %v1998_v35 = vmul.f32 %v1986_v61, %v1976_v20  ;;  %v1999_v36 = vmul.f32 %v1986_v61, %v1977_v23 }
 0x321   :  { %v2000_v14 = vmul.f32 %v1986_v61, %v1978_v24  ;;  %v2001_v37 = vmul.f32 %v1986_v61, %v1979_v17  ;;  %v2002_v38 = vmul.f32 %v1986_v61, %v1980_v27  ;;  %v2003_v39 = vmul.f32 %v1986_v61, %v1981_v28 }
 0x322   :  { %v2008_v40 = vadd.f32 %v2006_v26, %v1988_v30  ;;  %v2009_v41 = vadd.f32 %v2006_v26, %v1989_v31  ;;  %v2010_v42 = vadd.f32 %v2006_v26, %v1990_v33  ;;  %v2011_v43 = vadd.f32 %v2006_v26, %v1991_v34 }
 0x323   :  { %v2012_v44 = vadd.f32 %v2006_v26, %v1992_v54  ;;  %v2013_v45 = vadd.f32 %v2006_v26, %v1993_v21  ;;  %v2014_v58 = vadd.f32 %v2006_v26, %v1994_v22  ;;  %v2015_v46 = vadd.f32 %v2006_v26, %v1995_v25 }
 0x324   :  { %v2016_v47 = vadd.f32 %v2006_v26, %v1996_v29  ;;  %v2017_v48 = vadd.f32 %v2006_v26, %v1997_v32  ;;  %v2018_v50 = vadd.f32 %v2006_v26, %v1998_v35  ;;  %v2019_v49 = vadd.f32 %v2006_v26, %v1999_v36 }
 0x325   :  { %v2020_v52 = vadd.f32 %v2006_v26, %v2000_v14  ;;  %v2021_v55 = vadd.f32 %v2006_v26, %v2001_v37  ;;  %v2022_v51 = vadd.f32 %v2006_v26, %v2002_v38  ;;  %v2023_v56 = vadd.f32 %v2006_v26, %v2003_v39 }
 0x326   :  { %v2024_v60 = vmax.f32 %v2008_v40, 0.0  ;;  %v2025_v53 = vmax.f32 %v2009_v41, 0.0  ;;  %v2026_v62 = vmax.f32 %v2010_v42, 0.0  ;;  %v2027_v63 = vmax.f32 %v2011_v43, 0.0 }
 0x327   :  { %v2028_v57 = vmax.f32 %v2012_v44, 0.0  ;;  %v2029_v0 = vmax.f32 %v2013_v45, 0.0  ;;  %v2030_v2 = vmax.f32 %v2014_v58, 0.0  ;;  %v2031_v59 = vmax.f32 %v2015_v46, 0.0 }
 0x328   :  { %v2032_v3 = vmax.f32 %v2016_v47, 0.0  ;;  %v2033_v4 = vmax.f32 %v2017_v48, 0.0  ;;  %v2034_v61 = vmax.f32 %v2018_v50, 0.0  ;;  %v2035_v1 = vmax.f32 %v2019_v49, 0.0  ;;  %2040 = vst [vmem:[%s3210_s4] sm:$0xff] %v2024_v60  ;;  %2041 = vst [vmem:[%s3210_s4 + $0x8] sm:$0xff] %v2025_v53 }
 0x329   :  { %2042 = vst [vmem:[%s3210_s4 + $0x10] sm:$0xff] %v2026_v62  ;;  %2043 = vst [vmem:[%s3210_s4 + $0x18] sm:$0xff] %v2027_v63  ;;  %v2036_v6 = vmax.f32 %v2020_v52, 0.0  ;;  %v2037_v7 = vmax.f32 %v2021_v55, 0.0  ;;  %v2038_v5 = vmax.f32 %v2022_v51, 0.0  ;;  %v2039_v9 = vmax.f32 %v2023_v56, 0.0 }
 0x32a   :  { %2044 = vst [vmem:[%s3210_s4 + $0x20] sm:$0xff] %v2028_v57  ;;  %2045 = vst [vmem:[%s3210_s4 + $0x28] sm:$0xff] %v2029_v0 }
 0x32b   :  { %2046 = vst [vmem:[%s3210_s4 + $0x30] sm:$0xff] %v2030_v2  ;;  %2047 = vst [vmem:[%s3210_s4 + $0x38] sm:$0xff] %v2031_v59 }
 0x32c   :  { %2048 = vst [vmem:[%s3210_s4 + $0x40] sm:$0xff] %v2032_v3  ;;  %2049 = vst [vmem:[%s3210_s4 + $0x48] sm:$0xff] %v2033_v4 }
 0x32d   :  { %2050 = vst [vmem:[%s3210_s4 + $0x50] sm:$0xff] %v2034_v61  ;;  %2051 = vst [vmem:[%s3210_s4 + $0x58] sm:$0xff] %v2035_v1 }
 0x32e   :  { %2052 = vst [vmem:[%s3210_s4 + $0x60] sm:$0xff] %v2036_v6  ;;  %2053 = vst [vmem:[%s3210_s4 + $0x68] sm:$0xff] %v2037_v7 }
 0x32f   :  { %2054 = vst [vmem:[%s3210_s4 + $0x70] sm:$0xff] %v2038_v5  ;;  %2055 = vst [vmem:[%s3210_s4 + $0x78] sm:$0xff] %v2039_v9 }

// kernel: generator_forward.9
= control target key start
LH: loop header
LB: loop body
LE: loop exit
PB: predicated region body
PF: predicated region fallthrough
CT: control target
= control target key end

     0   :  { %v5282_v3 = vmov 0   ;;  %s7090_s1 = inlined_call_operand.vmem [shape: bf16[128,8192], index: 1, kind: input, shape index: {}]   ;;  %s7091_s3 = inlined_call_operand.vmem [shape: f32[3,2], index: 3, kind: input, shape index: {}]   ;;  %s7092_s0 = inlined_call_operand.vmem [shape: bf16[3,128], index: 0, kind: input, shape index: {}]   ;;  %s7093_s2 = inlined_call_operand.vmem [shape: f32[3,1], index: 2, kind: input, shape index: {}]   ;;  %s7094_s4 = inlined_call_operand.vmem [shape: f32[3,8192], index: 4, kind: output, shape index: {}]  }
   0x1   :  { %v467_v0 = vld [vmem:[%s7090_s1 + $0xe00] sm:$0xff]  ;;  %v468_v2 = vld [vmem:[%s7090_s1 + $0xe08] sm:$0xff]  ;;  %3129 = vmatprep.mubr.bf16.mxu0 %v5282_v3  ;;  %3170 = vmatprep.mubr.bf16.mxu1 %v5282_v3  ;;  %v469_v63 = vld [vmem:[%s7090_s1 + $0xe10] sm:$0xff] }
   0x2   :  { %v499_v1 = vld [vmem:[%s7090_s1 + $0xf00] sm:$0xff]  ;;  %v500_v5 = vld [vmem:[%s7090_s1 + $0xf08] sm:$0xff]  ;;  %5150 = vset.pattern.permute.xlu0 %v5282_v3 }
   0x3   :  { %v5086_v4 = vcombine.high %v467_v0, %v499_v1  ;;  %v5085_v6 = vcombine.low %v467_v0, %v499_v1  ;;  %v403_v7 = vld [vmem:[%s7090_s1 + $0xc00] sm:$0xff]  ;;  %v5088_v9 = vcombine.high %v468_v2, %v500_v5  ;;  %v5087_v10 = vcombine.low %v468_v2, %v500_v5  ;;  %v404_v12 = vld [vmem:[%s7090_s1 + $0xc08] sm:$0xff]  ;;  %v501_v0 = vld [vmem:[%s7090_s1 + $0xf10] sm:$0xff] }
   0x4   :  { %v435_v8 = vld [vmem:[%s7090_s1 + $0xd00] sm:$0xff]  ;;  %v436_v13 = vld [vmem:[%s7090_s1 + $0xd08] sm:$0xff]  ;;  %v470_v1 = vld [vmem:[%s7090_s1 + $0xe18] sm:$0xff] }
   0x5   :  { %v5022_v11 = vcombine.high %v403_v7, %v435_v8  ;;  %v339_v14 = vld [vmem:[%s7090_s1 + $0xa00] sm:$0xff]  ;;  %3097 = vmatprep.subr.bf16.mxu0 %v5086_v4  ;;  %v5024_v15 = vcombine.high %v404_v12, %v436_v13  ;;  %v340_v17 = vld [vmem:[%s7090_s1 + $0xa08] sm:$0xff]  ;;  %3138 = vmatprep.subr.bf16.mxu1 %v5088_v9  ;;  %v5021_v19 = vcombine.low %v403_v7, %v435_v8  ;;  %v502_v2 = vld [vmem:[%s7090_s1 + $0xf18] sm:$0xff] }
   0x6   :  { %v371_v16 = vld [vmem:[%s7090_s1 + $0xb00] sm:$0xff]  ;;  %v372_v18 = vld [vmem:[%s7090_s1 + $0xb08] sm:$0xff]  ;;  %3098 = vmatpush1.bf16.msra.mxu0 %v5085_v6  ;;  %3139 = vmatpush1.bf16.msra.mxu1 %v5087_v10  ;;  %v5023_v20 = vcombine.low %v404_v12, %v436_v13  ;;  %v5090_v6 = vcombine.high %v469_v63, %v501_v0  ;;  %v5092_v7 = vcombine.high %v470_v1, %v502_v2  ;;  %v405_v8 = vld [vmem:[%s7090_s1 + $0xc10] sm:$0xff] }
   0x7   :  { %3099 = vmatprep.subr.bf16.mxu0 %v5022_v11  ;;  %v4958_v21 = vcombine.high %v339_v14, %v371_v16  ;;  %3140 = vmatprep.subr.bf16.mxu1 %v5024_v15  ;;  %v4960_v22 = vcombine.high %v340_v17, %v372_v18  ;;  %v275_v23 = vld [vmem:[%s7090_s1 + $0x800] sm:$0xff]  ;;  %v276_v25 = vld [vmem:[%s7090_s1 + $0x808] sm:$0xff]  ;;  %v4957_v27 = vcombine.low %v339_v14, %v371_v16  ;;  %v437_v9 = vld [vmem:[%s7090_s1 + $0xd10] sm:$0xff] }
   0x8   :  { %v307_v24 = vld [vmem:[%s7090_s1 + $0x900] sm:$0xff]  ;;  %v308_v26 = vld [vmem:[%s7090_s1 + $0x908] sm:$0xff]  ;;  %v4959_v28 = vcombine.low %v340_v17, %v372_v18  ;;  %v406_v10 = vld [vmem:[%s7090_s1 + $0xc18] sm:$0xff]  ;;  %v5089_v13 = vcombine.low %v469_v63, %v501_v0  ;;  %v5091_v14 = vcombine.low %v470_v1, %v502_v2  ;;  %v5026_v15 = vcombine.high %v405_v8, %v437_v9 }
   0x9   :  { %v4894_v29 = vcombine.high %v275_v23, %v307_v24  ;;  %v4896_v30 = vcombine.high %v276_v25, %v308_v26  ;;  %v211_v31 = vld [vmem:[%s7090_s1 + $0x600] sm:$0xff]  ;;  %v212_v33 = vld [vmem:[%s7090_s1 + $0x608] sm:$0xff]  ;;  %v4893_v35 = vcombine.low %v275_v23, %v307_v24  ;;  %v4895_v36 = vcombine.low %v276_v25, %v308_v26  ;;  %v438_v11 = vld [vmem:[%s7090_s1 + $0xd18] sm:$0xff] }
   0xa   :  { %3100 = vmatpush1.bf16.msra.mxu0 %v5021_v19  ;;  %3141 = vmatpush1.bf16.msra.mxu1 %v5023_v20  ;;  %v243_v32 = vld [vmem:[%s7090_s1 + $0x700] sm:$0xff]  ;;  %v244_v34 = vld [vmem:[%s7090_s1 + $0x708] sm:$0xff]  ;;  %v5028_v16 = vcombine.high %v406_v10, %v438_v11  ;;  %v341_v17 = vld [vmem:[%s7090_s1 + $0xa10] sm:$0xff]  ;;  %v5027_v23 = vcombine.low %v406_v10, %v438_v11 }
   0xb   :  { %3101 = vmatprep.subr.bf16.mxu0 %v4958_v21  ;;  %3142 = vmatprep.subr.bf16.mxu1 %v4960_v22  ;;  %v4830_v37 = vcombine.high %v211_v31, %v243_v32  ;;  %v4832_v38 = vcombine.high %v212_v33, %v244_v34  ;;  %v147_v39 = vld [vmem:[%s7090_s1 + $0x400] sm:$0xff]  ;;  %v148_v41 = vld [vmem:[%s7090_s1 + $0x408] sm:$0xff]  ;;  %v4829_v43 = vcombine.low %v211_v31, %v243_v32  ;;  %v373_v18 = vld [vmem:[%s7090_s1 + $0xb10] sm:$0xff] }
   0xc   :  { %v179_v40 = vld [vmem:[%s7090_s1 + $0x500] sm:$0xff]  ;;  %v180_v42 = vld [vmem:[%s7090_s1 + $0x508] sm:$0xff]  ;;  %v4831_v44 = vcombine.low %v212_v33, %v244_v34  ;;  %v342_v19 = vld [vmem:[%s7090_s1 + $0xa18] sm:$0xff]  ;;  %v5025_v21 = vcombine.low %v405_v8, %v437_v9  ;;  %v4962_v24 = vcombine.high %v341_v17, %v373_v18 }
   0xd   :  { %v4766_v45 = vcombine.high %v147_v39, %v179_v40  ;;  %v4768_v46 = vcombine.high %v148_v41, %v180_v42  ;;  %v83_v47 = vld [vmem:[%s7090_s1 + $0x200] sm:$0xff]  ;;  %v84_v49 = vld [vmem:[%s7090_s1 + $0x208] sm:$0xff]  ;;  %v4765_v51 = vcombine.low %v147_v39, %v179_v40  ;;  %v4767_v52 = vcombine.low %v148_v41, %v180_v42  ;;  %v374_v20 = vld [vmem:[%s7090_s1 + $0xb18] sm:$0xff] }
   0xe   :  { %3102 = vmatpush1.bf16.msra.mxu0 %v4957_v27  ;;  %3143 = vmatpush1.bf16.msra.mxu1 %v4959_v28  ;;  %v115_v48 = vld [vmem:[%s7090_s1 + $0x300] sm:$0xff]  ;;  %v116_v50 = vld [vmem:[%s7090_s1 + $0x308] sm:$0xff]  ;;  %v4964_v25 = vcombine.high %v342_v19, %v374_v20  ;;  %v277_v26 = vld [vmem:[%s7090_s1 + $0x810] sm:$0xff]  ;;  %v4963_v31 = vcombine.low %v342_v19, %v374_v20 }
   0xf   :  { %3103 = vmatprep.subr.bf16.mxu0 %v4894_v29  ;;  %3144 = vmatprep.subr.bf16.mxu1 %v4896_v30  ;;  %v4702_v53 = vcombine.high %v83_v47, %v115_v48  ;;  %v4704_v54 = vcombine.high %v84_v49, %v116_v50  ;;  %v19_v55 = vld [vmem:[%s7090_s1] sm:$0xff]  ;;  %v20_v57 = vld [vmem:[%s7090_s1 + $0x8] sm:$0xff]  ;;  %v4701_v59 = vcombine.low %v83_v47, %v115_v48  ;;  %v309_v27 = vld [vmem:[%s7090_s1 + $0x910] sm:$0xff] }
  0x10   :  { %v51_v56 = vld [vmem:[%s7090_s1 + $0x100] sm:$0xff]  ;;  %v52_v58 = vld [vmem:[%s7090_s1 + $0x108] sm:$0xff]  ;;  %v4703_v60 = vcombine.low %v84_v49, %v116_v50  ;;  %v278_v28 = vld [vmem:[%s7090_s1 + $0x818] sm:$0xff]  ;;  %v4961_v30 = vcombine.low %v341_v17, %v373_v18  ;;  %v4898_v32 = vcombine.high %v277_v26, %v309_v27 }
  0x11   :  { %v4638_v61 = vcombine.high %v19_v55, %v51_v56  ;;  %v4640_v62 = vcombine.high %v20_v57, %v52_v58  ;;  %v4637_v4 = vcombine.low %v19_v55, %v51_v56  ;;  %v4639_v5 = vcombine.low %v20_v57, %v52_v58  ;;  %v5434_v12 = vld [vmem:[%s7092_s0] sm:$0x3]  ;;  %v310_v29 = vld [vmem:[%s7090_s1 + $0x918] sm:$0xff]  ;;  %v213_v34 = vld [vmem:[%s7090_s1 + $0x610] sm:$0xff] }
  0x12   :  { %3104 = vmatpush1.bf16.msra.mxu0 %v4893_v35  ;;  %3145 = vmatpush1.bf16.msra.mxu1 %v4895_v36  ;;  %v531_v22 = vld [vmem:[%s7093_s2] sm:$0x7]  ;;  %v4900_v33 = vcombine.high %v278_v28, %v310_v29  ;;  %v245_v35 = vld [vmem:[%s7090_s1 + $0x710] sm:$0xff]  ;;  %v214_v36 = vld [vmem:[%s7090_s1 + $0x618] sm:$0xff]  ;;  %v4899_v39 = vcombine.low %v278_v28, %v310_v29 }
  0x13   :  { %3105 = vmatprep.subr.bf16.mxu0 %v4830_v37  ;;  %3146 = vmatprep.subr.bf16.mxu1 %v4832_v38  ;;  %v246_v37 = vld [vmem:[%s7090_s1 + $0x718] sm:$0xff]  ;;  %v4897_v38 = vcombine.low %v277_v26, %v309_v27  ;;  %v4834_v40 = vcombine.high %v213_v34, %v245_v35  ;;  %v149_v42 = vld [vmem:[%s7090_s1 + $0x410] sm:$0xff]  ;;  %v471_v2 = vld [vmem:[%s7090_s1 + $0xe20] sm:$0xff] }
  0x14   :  { %534 = vperm.xlu0 %5150, %v531_v22   ;;  %v4836_v41 = vcombine.high %v214_v36, %v246_v37  ;;  %v4835_v47 = vcombine.low %v214_v36, %v246_v37  ;;  %v85_v50 = vld [vmem:[%s7090_s1 + $0x210] sm:$0xff]  ;;  %v407_v11 = vld [vmem:[%s7090_s1 + $0xc20] sm:$0xff]  ;;  %v344_v22 = vld [vmem:[%s7090_s1 + $0xa28] sm:$0xff] }
  0x15   :  { %v21_v58 = vld [vmem:[%s7090_s1 + $0x10] sm:$0xff]  ;;  %v343_v20 = vld [vmem:[%s7090_s1 + $0xa20] sm:$0xff] }
  0x16   :  { %3106 = vmatpush1.bf16.msra.mxu0 %v4829_v43  ;;  %3147 = vmatpush1.bf16.msra.mxu1 %v4831_v44  ;;  %v181_v43 = vld [vmem:[%s7090_s1 + $0x510] sm:$0xff]  ;;  %v150_v44 = vld [vmem:[%s7090_s1 + $0x418] sm:$0xff]  ;;  %v279_v28 = vld [vmem:[%s7090_s1 + $0x820] sm:$0xff] }
  0x17   :  { %3107 = vmatprep.subr.bf16.mxu0 %v4766_v45  ;;  %3148 = vmatprep.subr.bf16.mxu1 %v4768_v46  ;;  %v182_v45 = vld [vmem:[%s7090_s1 + $0x518] sm:$0xff]  ;;  %v4833_v46 = vcombine.low %v213_v34, %v245_v35  ;;  %v4770_v48 = vcombine.high %v149_v42, %v181_v43  ;;  %v311_v29 = vld [vmem:[%s7090_s1 + $0x920] sm:$0xff] }
  0x18   :  { %v4772_v49 = vcombine.high %v150_v44, %v182_v45  ;;  %v4771_v55 = vcombine.low %v150_v44, %v182_v45  ;;  %v4902_v34 = vcombine.high %v279_v28, %v311_v29  ;;  %v215_v36 = vld [vmem:[%s7090_s1 + $0x620] sm:$0xff] }
  0x19   :  { %v247_v37 = vld [vmem:[%s7090_s1 + $0x720] sm:$0xff] }
  0x1a   :  { %3108 = vmatpush1.bf16.msra.mxu0 %v4765_v51  ;;  %3149 = vmatpush1.bf16.msra.mxu1 %v4767_v52  ;;  %v117_v51 = vld [vmem:[%s7090_s1 + $0x310] sm:$0xff]  ;;  %v86_v52 = vld [vmem:[%s7090_s1 + $0x218] sm:$0xff]  ;;  %v151_v44 = vld [vmem:[%s7090_s1 + $0x420] sm:$0xff] }
  0x1b   :  { %3109 = vmatprep.subr.bf16.mxu0 %v4702_v53  ;;  %3150 = vmatprep.subr.bf16.mxu1 %v4704_v54  ;;  %v118_v53 = vld [vmem:[%s7090_s1 + $0x318] sm:$0xff]  ;;  %v4769_v54 = vcombine.low %v149_v42, %v181_v43  ;;  %v4706_v56 = vcombine.high %v85_v50, %v117_v51  ;;  %v4838_v42 = vcombine.high %v215_v36, %v247_v37  ;;  %v183_v45 = vld [vmem:[%s7090_s1 + $0x520] sm:$0xff] }
  0x1c   :  { %v4708_v57 = vcombine.high %v86_v52, %v118_v53  ;;  %v4707_v63 = vcombine.low %v86_v52, %v118_v53  ;;  %v87_v52 = vld [vmem:[%s7090_s1 + $0x220] sm:$0xff] }
  0x1d   :  { %v119_v53 = vld [vmem:[%s7090_s1 + $0x320] sm:$0xff] }
  0x1e   :  { %3110 = vmatpush1.bf16.msra.mxu0 %v4701_v59  ;;  %3151 = vmatpush1.bf16.msra.mxu1 %v4703_v60  ;;  %v53_v59 = vld [vmem:[%s7090_s1 + $0x110] sm:$0xff]  ;;  %v22_v60 = vld [vmem:[%s7090_s1 + $0x18] sm:$0xff] }
  0x1f   :  { %3111 = vmatprep.subr.bf16.mxu0 %v4638_v61  ;;  %3152 = vmatprep.subr.bf16.mxu1 %v4640_v62  ;;  %v54_v61 = vld [vmem:[%s7090_s1 + $0x118] sm:$0xff]  ;;  %v4705_v62 = vcombine.low %v85_v50, %v117_v51  ;;  %v4642_v0 = vcombine.high %v21_v58, %v53_v59  ;;  %v4774_v50 = vcombine.high %v151_v44, %v183_v45 }
  0x20   :  { %v4644_v1 = vcombine.high %v22_v60, %v54_v61  ;;  %v4643_v8 = vcombine.low %v22_v60, %v54_v61  ;;  %v23_v60 = vld [vmem:[%s7090_s1 + $0x20] sm:$0xff] }
  0x21   :  { %v55_v61 = vld [vmem:[%s7090_s1 + $0x120] sm:$0xff] }
  0x22   :  { %3112 = vmatpush1.bf16.msra.mxu0 %v4637_v4  ;;  %3153 = vmatpush1.bf16.msra.mxu1 %v4639_v5  ;;  %v503_v4 = vld [vmem:[%s7090_s1 + $0xf20] sm:$0xff]  ;;  %v472_v5 = vld [vmem:[%s7090_s1 + $0xe28] sm:$0xff] }
  0x23   :  { %3179 = vmatprep.subr.bf16.mxu0 %v5090_v6  ;;  %3220 = vmatprep.subr.bf16.mxu1 %v5092_v7  ;;  %v504_v6 = vld [vmem:[%s7090_s1 + $0xf28] sm:$0xff]  ;;  %v4641_v7 = vcombine.low %v21_v58, %v53_v59  ;;  %v5094_v9 = vcombine.high %v471_v2, %v503_v4  ;;  %v4710_v58 = vcombine.high %v87_v52, %v119_v53 }
  0x24   :  { %v5096_v10 = vcombine.high %v472_v5, %v504_v6  ;;  %v5095_v17 = vcombine.low %v472_v5, %v504_v6  ;;  %v473_v5 = vld [vmem:[%s7090_s1 + $0xe30] sm:$0xff] }
  0x25   :  { %3130 = vmatmul.mubr.bf16.vlgmr.msra.gmra.mxu0 %v5434_v12  ;;  %3171 = vmatmul.mubr.bf16.vlgmr.msra.gmra.mxu1 %v5434_v12  ;;  %v505_v6 = vld [vmem:[%s7090_s1 + $0xf30] sm:$0xff] }
  0x26   :  { %3180 = vmatpush1.bf16.msra.mxu0 %v5089_v13  ;;  %3221 = vmatpush1.bf16.msra.mxu1 %v5091_v14  ;;  %v439_v13 = vld [vmem:[%s7090_s1 + $0xd20] sm:$0xff]  ;;  %v408_v14 = vld [vmem:[%s7090_s1 + $0xc28] sm:$0xff] }
  0x27   :  { %3181 = vmatprep.subr.bf16.mxu0 %v5026_v15  ;;  %3222 = vmatprep.subr.bf16.mxu1 %v5028_v16  ;;  %v440_v15 = vld [vmem:[%s7090_s1 + $0xd28] sm:$0xff]  ;;  %v5093_v16 = vcombine.low %v471_v2, %v503_v4  ;;  %v5030_v18 = vcombine.high %v407_v11, %v439_v13  ;;  %v4646_v2 = vcombine.high %v23_v60, %v55_v61 }
  0x28   :  { %3211 = vmatprep.mubr.bf16.mxu0 %v5282_v3  ;;  %3252 = vmatprep.mubr.bf16.mxu1 %v5282_v3  ;;  %v5032_v19 = vcombine.high %v408_v14, %v440_v15 }
  0x2a   :  { %3182 = vmatpush1.bf16.msra.mxu0 %v5025_v21  ;;  %3223 = vmatpush1.bf16.msra.mxu1 %v5027_v23  ;;  %v375_v21 = vld [vmem:[%s7090_s1 + $0xb20] sm:$0xff]  ;;  %v376_v23 = vld [vmem:[%s7090_s1 + $0xb28] sm:$0xff] }
  0x2b   :  { %3183 = vmatprep.subr.bf16.mxu0 %v4962_v24  ;;  %3224 = vmatprep.subr.bf16.mxu1 %v4964_v25  ;;  %v5029_v24 = vcombine.low %v407_v11, %v439_v13  ;;  %v5031_v25 = vcombine.low %v408_v14, %v440_v15  ;;  %v4966_v26 = vcombine.high %v343_v20, %v375_v21  ;;  %v409_v14 = vld [vmem:[%s7090_s1 + $0xc30] sm:$0xff] }
  0x2c   :  { %v4968_v27 = vcombine.high %v344_v22, %v376_v23  ;;  %v5098_v11 = vcombine.high %v473_v5, %v505_v6  ;;  %v441_v15 = vld [vmem:[%s7090_s1 + $0xd30] sm:$0xff] }
  0x2e   :  { %3184 = vmatpush1.bf16.msra.mxu0 %v4961_v30  ;;  %3225 = vmatpush1.bf16.msra.mxu1 %v4963_v31  ;;  %v280_v30 = vld [vmem:[%s7090_s1 + $0x828] sm:$0xff] }
  0x2f   :  { %3185 = vmatprep.subr.bf16.mxu0 %v4898_v32  ;;  %3226 = vmatprep.subr.bf16.mxu1 %v4900_v33  ;;  %v312_v31 = vld [vmem:[%s7090_s1 + $0x928] sm:$0xff]  ;;  %v4965_v32 = vcombine.low %v343_v20, %v375_v21  ;;  %v4967_v33 = vcombine.low %v344_v22, %v376_v23  ;;  %v5034_v20 = vcombine.high %v409_v14, %v441_v15  ;;  %v345_v22 = vld [vmem:[%s7090_s1 + $0xa30] sm:$0xff] }
  0x30   :  { %v4904_v35 = vcombine.high %v280_v30, %v312_v31  ;;  %v377_v23 = vld [vmem:[%s7090_s1 + $0xb30] sm:$0xff] }
  0x32   :  { %3186 = vmatpush1.bf16.msra.mxu0 %v4897_v38  ;;  %3227 = vmatpush1.bf16.msra.mxu1 %v4899_v39  ;;  %v216_v38 = vld [vmem:[%s7090_s1 + $0x628] sm:$0xff] }
  0x33   :  { %3187 = vmatprep.subr.bf16.mxu0 %v4834_v40  ;;  %3228 = vmatprep.subr.bf16.mxu1 %v4836_v41  ;;  %v248_v39 = vld [vmem:[%s7090_s1 + $0x728] sm:$0xff]  ;;  %v4901_v40 = vcombine.low %v279_v28, %v311_v29  ;;  %v4903_v41 = vcombine.low %v280_v30, %v312_v31  ;;  %v4970_v28 = vcombine.high %v345_v22, %v377_v23  ;;  %v281_v30 = vld [vmem:[%s7090_s1 + $0x830] sm:$0xff] }
  0x34   :  { %v4840_v43 = vcombine.high %v216_v38, %v248_v39  ;;  %v313_v31 = vld [vmem:[%s7090_s1 + $0x930] sm:$0xff] }
  0x36   :  { %3188 = vmatpush1.bf16.msra.mxu0 %v4833_v46  ;;  %3229 = vmatpush1.bf16.msra.mxu1 %v4835_v47  ;;  %v152_v46 = vld [vmem:[%s7090_s1 + $0x428] sm:$0xff] }
  0x37   :  { %3189 = vmatprep.subr.bf16.mxu0 %v4770_v48  ;;  %3230 = vmatprep.subr.bf16.mxu1 %v4772_v49  ;;  %v184_v47 = vld [vmem:[%s7090_s1 + $0x528] sm:$0xff]  ;;  %v4837_v48 = vcombine.low %v215_v36, %v247_v37  ;;  %v4839_v49 = vcombine.low %v216_v38, %v248_v39  ;;  %v4906_v36 = vcombine.high %v281_v30, %v313_v31  ;;  %v217_v38 = vld [vmem:[%s7090_s1 + $0x630] sm:$0xff] }
  0x38   :  { %v4776_v51 = vcombine.high %v152_v46, %v184_v47  ;;  %v249_v39 = vld [vmem:[%s7090_s1 + $0x730] sm:$0xff] }
  0x3a   :  { %3190 = vmatpush1.bf16.msra.mxu0 %v4769_v54  ;;  %3231 = vmatpush1.bf16.msra.mxu1 %v4771_v55  ;;  %v88_v54 = vld [vmem:[%s7090_s1 + $0x228] sm:$0xff] }
  0x3b   :  { %3191 = vmatprep.subr.bf16.mxu0 %v4706_v56  ;;  %3232 = vmatprep.subr.bf16.mxu1 %v4708_v57  ;;  %v120_v55 = vld [vmem:[%s7090_s1 + $0x328] sm:$0xff]  ;;  %v4773_v56 = vcombine.low %v151_v44, %v183_v45  ;;  %v4775_v57 = vcombine.low %v152_v46, %v184_v47  ;;  %v4842_v44 = vcombine.high %v217_v38, %v249_v39  ;;  %v153_v46 = vld [vmem:[%s7090_s1 + $0x430] sm:$0xff] }
  0x3c   :  { %v4712_v59 = vcombine.high %v88_v54, %v120_v55  ;;  %v185_v47 = vld [vmem:[%s7090_s1 + $0x530] sm:$0xff] }
  0x3e   :  { %3192 = vmatpush1.bf16.msra.mxu0 %v4705_v62  ;;  %3233 = vmatpush1.bf16.msra.mxu1 %v4707_v63  ;;  %v24_v62 = vld [vmem:[%s7090_s1 + $0x28] sm:$0xff] }
  0x3f   :  { %3193 = vmatprep.subr.bf16.mxu0 %v4642_v0  ;;  %3234 = vmatprep.subr.bf16.mxu1 %v4644_v1  ;;  %v56_v63 = vld [vmem:[%s7090_s1 + $0x128] sm:$0xff]  ;;  %v4709_v0 = vcombine.low %v87_v52, %v119_v53  ;;  %v4711_v1 = vcombine.low %v88_v54, %v120_v55  ;;  %v4778_v52 = vcombine.high %v153_v46, %v185_v47  ;;  %v89_v54 = vld [vmem:[%s7090_s1 + $0x230] sm:$0xff] }
  0x40   :  { %v4648_v4 = vcombine.high %v24_v62, %v56_v63  ;;  %v121_v55 = vld [vmem:[%s7090_s1 + $0x330] sm:$0xff] }
  0x42   :  { %3194 = vmatpush1.bf16.msra.mxu0 %v4641_v7  ;;  %3235 = vmatpush1.bf16.msra.mxu1 %v4643_v8  ;;  %v474_v7 = vld [vmem:[%s7090_s1 + $0xe38] sm:$0xff] }
  0x43   :  { %3261 = vmatprep.subr.bf16.mxu0 %v5094_v9  ;;  %3302 = vmatprep.subr.bf16.mxu1 %v5096_v10  ;;  %v506_v8 = vld [vmem:[%s7090_s1 + $0xf38] sm:$0xff]  ;;  %v4645_v9 = vcombine.low %v23_v60, %v55_v61  ;;  %v4647_v10 = vcombine.low %v24_v62, %v56_v63  ;;  %v4714_v60 = vcombine.high %v89_v54, %v121_v55  ;;  %v25_v62 = vld [vmem:[%s7090_s1 + $0x30] sm:$0xff] }
  0x44   :  { %v5100_v13 = vcombine.high %v474_v7, %v506_v8  ;;  %v57_v63 = vld [vmem:[%s7090_s1 + $0x130] sm:$0xff] }
  0x45   :  { %3212 = vmatmul.mubr.bf16.vlgmr.msra.gmra.mxu0 %v5434_v12  ;;  %3253 = vmatmul.mubr.bf16.vlgmr.msra.gmra.mxu1 %v5434_v12 }
  0x46   :  { %3262 = vmatpush1.bf16.msra.mxu0 %v5093_v16  ;;  %3303 = vmatpush1.bf16.msra.mxu1 %v5095_v17  ;;  %v410_v16 = vld [vmem:[%s7090_s1 + $0xc38] sm:$0xff] }
  0x47   :  { %3263 = vmatprep.subr.bf16.mxu0 %v5030_v18  ;;  %3304 = vmatprep.subr.bf16.mxu1 %v5032_v19  ;;  %v442_v17 = vld [vmem:[%s7090_s1 + $0xd38] sm:$0xff]  ;;  %v5097_v18 = vcombine.low %v473_v5, %v505_v6  ;;  %v5099_v19 = vcombine.low %v474_v7, %v506_v8  ;;  %v4650_v5 = vcombine.high %v25_v62, %v57_v63  ;;  %v475_v7 = vld [vmem:[%s7090_s1 + $0xe40] sm:$0xff] }
  0x48   :  { %3293 = vmatprep.mubr.bf16.mxu0 %v5282_v3  ;;  %3334 = vmatprep.mubr.bf16.mxu1 %v5282_v3  ;;  %v5036_v21 = vcombine.high %v410_v16, %v442_v17  ;;  %v507_v8 = vld [vmem:[%s7090_s1 + $0xf40] sm:$0xff] }
  0x4a   :  { %3264 = vmatpush1.bf16.msra.mxu0 %v5029_v24  ;;  %3305 = vmatpush1.bf16.msra.mxu1 %v5031_v25  ;;  %v346_v24 = vld [vmem:[%s7090_s1 + $0xa38] sm:$0xff] }
  0x4b   :  { %3265 = vmatprep.subr.bf16.mxu0 %v4966_v26  ;;  %3306 = vmatprep.subr.bf16.mxu1 %v4968_v27  ;;  %v378_v25 = vld [vmem:[%s7090_s1 + $0xb38] sm:$0xff]  ;;  %v5033_v26 = vcombine.low %v409_v14, %v441_v15  ;;  %v5035_v27 = vcombine.low %v410_v16, %v442_v17  ;;  %v5102_v14 = vcombine.high %v475_v7, %v507_v8  ;;  %v411_v16 = vld [vmem:[%s7090_s1 + $0xc40] sm:$0xff] }
  0x4c   :  { %v4972_v29 = vcombine.high %v346_v24, %v378_v25  ;;  %v443_v17 = vld [vmem:[%s7090_s1 + $0xd40] sm:$0xff] }
  0x4e   :  { %3266 = vmatpush1.bf16.msra.mxu0 %v4965_v32  ;;  %3307 = vmatpush1.bf16.msra.mxu1 %v4967_v33  ;;  %v282_v32 = vld [vmem:[%s7090_s1 + $0x838] sm:$0xff] }
  0x4f   :  { %3267 = vmatprep.subr.bf16.mxu0 %v4902_v34  ;;  %3308 = vmatprep.subr.bf16.mxu1 %v4904_v35  ;;  %v314_v33 = vld [vmem:[%s7090_s1 + $0x938] sm:$0xff]  ;;  %v4969_v34 = vcombine.low %v345_v22, %v377_v23  ;;  %v4971_v35 = vcombine.low %v346_v24, %v378_v25  ;;  %v5038_v22 = vcombine.high %v411_v16, %v443_v17  ;;  %v347_v24 = vld [vmem:[%s7090_s1 + $0xa40] sm:$0xff] }
  0x50   :  { %v4908_v37 = vcombine.high %v282_v32, %v314_v33  ;;  %v379_v25 = vld [vmem:[%s7090_s1 + $0xb40] sm:$0xff] }
  0x52   :  { %3268 = vmatpush1.bf16.msra.mxu0 %v4901_v40  ;;  %3309 = vmatpush1.bf16.msra.mxu1 %v4903_v41  ;;  %v218_v40 = vld [vmem:[%s7090_s1 + $0x638] sm:$0xff] }
  0x53   :  { %3269 = vmatprep.subr.bf16.mxu0 %v4838_v42  ;;  %3310 = vmatprep.subr.bf16.mxu1 %v4840_v43  ;;  %v250_v41 = vld [vmem:[%s7090_s1 + $0x738] sm:$0xff]  ;;  %v4905_v42 = vcombine.low %v281_v30, %v313_v31  ;;  %v4907_v43 = vcombine.low %v282_v32, %v314_v33  ;;  %v4974_v30 = vcombine.high %v347_v24, %v379_v25  ;;  %v283_v32 = vld [vmem:[%s7090_s1 + $0x840] sm:$0xff] }
  0x54   :  { %v4844_v45 = vcombine.high %v218_v40, %v250_v41  ;;  %v315_v33 = vld [vmem:[%s7090_s1 + $0x940] sm:$0xff] }
  0x56   :  { %3270 = vmatpush1.bf16.msra.mxu0 %v4837_v48  ;;  %3311 = vmatpush1.bf16.msra.mxu1 %v4839_v49  ;;  %v154_v48 = vld [vmem:[%s7090_s1 + $0x438] sm:$0xff] }
  0x57   :  { %3271 = vmatprep.subr.bf16.mxu0 %v4774_v50  ;;  %3312 = vmatprep.subr.bf16.mxu1 %v4776_v51  ;;  %v186_v49 = vld [vmem:[%s7090_s1 + $0x538] sm:$0xff]  ;;  %v4841_v50 = vcombine.low %v217_v38, %v249_v39  ;;  %v4843_v51 = vcombine.low %v218_v40, %v250_v41  ;;  %v4910_v38 = vcombine.high %v283_v32, %v315_v33  ;;  %v219_v40 = vld [vmem:[%s7090_s1 + $0x640] sm:$0xff] }
  0x58   :  { %v4780_v53 = vcombine.high %v154_v48, %v186_v49  ;;  %v251_v41 = vld [vmem:[%s7090_s1 + $0x740] sm:$0xff] }
  0x5a   :  { %3272 = vmatpush1.bf16.msra.mxu0 %v4773_v56  ;;  %3313 = vmatpush1.bf16.msra.mxu1 %v4775_v57  ;;  %v90_v56 = vld [vmem:[%s7090_s1 + $0x238] sm:$0xff] }
  0x5b   :  { %3273 = vmatprep.subr.bf16.mxu0 %v4710_v58  ;;  %3314 = vmatprep.subr.bf16.mxu1 %v4712_v59  ;;  %v122_v57 = vld [vmem:[%s7090_s1 + $0x338] sm:$0xff]  ;;  %v4777_v58 = vcombine.low %v153_v46, %v185_v47  ;;  %v4779_v59 = vcombine.low %v154_v48, %v186_v49  ;;  %v4846_v46 = vcombine.high %v219_v40, %v251_v41  ;;  %v155_v48 = vld [vmem:[%s7090_s1 + $0x440] sm:$0xff] }
  0x5c   :  { %v4716_v61 = vcombine.high %v90_v56, %v122_v57  ;;  %v187_v49 = vld [vmem:[%s7090_s1 + $0x540] sm:$0xff] }
  0x5e   :  { %3274 = vmatpush1.bf16.msra.mxu0 %v4709_v0  ;;  %3315 = vmatpush1.bf16.msra.mxu1 %v4711_v1  ;;  %v26_v0 = vld [vmem:[%s7090_s1 + $0x38] sm:$0xff] }
  0x5f   :  { %3275 = vmatprep.subr.bf16.mxu0 %v4646_v2  ;;  %3316 = vmatprep.subr.bf16.mxu1 %v4648_v4  ;;  %v58_v1 = vld [vmem:[%s7090_s1 + $0x138] sm:$0xff]  ;;  %v4713_v2 = vcombine.low %v89_v54, %v121_v55  ;;  %v4715_v4 = vcombine.low %v90_v56, %v122_v57  ;;  %v4782_v54 = vcombine.high %v155_v48, %v187_v49  ;;  %v91_v56 = vld [vmem:[%s7090_s1 + $0x240] sm:$0xff] }
  0x60   :  { %v4652_v6 = vcombine.high %v26_v0, %v58_v1  ;;  %v123_v57 = vld [vmem:[%s7090_s1 + $0x340] sm:$0xff] }
  0x62   :  { %3276 = vmatpush1.bf16.msra.mxu0 %v4645_v9  ;;  %3317 = vmatpush1.bf16.msra.mxu1 %v4647_v10  ;;  %v476_v9 = vld [vmem:[%s7090_s1 + $0xe48] sm:$0xff] }
  0x63   :  { %3343 = vmatprep.subr.bf16.mxu0 %v5098_v11  ;;  %3384 = vmatprep.subr.bf16.mxu1 %v5100_v13  ;;  %v508_v10 = vld [vmem:[%s7090_s1 + $0xf48] sm:$0xff]  ;;  %v4649_v11 = vcombine.low %v25_v62, %v57_v63  ;;  %v4651_v13 = vcombine.low %v26_v0, %v58_v1  ;;  %v4718_v62 = vcombine.high %v91_v56, %v123_v57  ;;  %v27_v0 = vld [vmem:[%s7090_s1 + $0x40] sm:$0xff] }
  0x64   :  { %v5104_v15 = vcombine.high %v476_v9, %v508_v10  ;;  %v59_v1 = vld [vmem:[%s7090_s1 + $0x140] sm:$0xff] }
  0x65   :  { %3294 = vmatmul.mubr.bf16.vlgmr.msra.gmra.mxu0 %v5434_v12  ;;  %3335 = vmatmul.mubr.bf16.vlgmr.msra.gmra.mxu1 %v5434_v12 }
  0x66   :  { %3344 = vmatpush1.bf16.msra.mxu0 %v5097_v18  ;;  %3385 = vmatpush1.bf16.msra.mxu1 %v5099_v19  ;;  %v412_v18 = vld [vmem:[%s7090_s1 + $0xc48] sm:$0xff] }
  0x67   :  { %3345 = vmatprep.subr.bf16.mxu0 %v5034_v20  ;;  %3386 = vmatprep.subr.bf16.mxu1 %v5036_v21  ;;  %v444_v19 = vld [vmem:[%s7090_s1 + $0xd48] sm:$0xff]  ;;  %v5101_v20 = vcombine.low %v475_v7, %v507_v8  ;;  %v5103_v21 = vcombine.low %v476_v9, %v508_v10  ;;  %v4654_v7 = vcombine.high %v27_v0, %v59_v1  ;;  %v477_v9 = vld [vmem:[%s7090_s1 + $0xe50] sm:$0xff] }
  0x68   :  { %3375 = vmatprep.mubr.bf16.mxu0 %v5282_v3  ;;  %3416 = vmatprep.mubr.bf16.mxu1 %v5282_v3  ;;  %v5040_v23 = vcombine.high %v412_v18, %v444_v19  ;;  %v509_v10 = vld [vmem:[%s7090_s1 + $0xf50] sm:$0xff] }
  0x6a   :  { %3346 = vmatpush1.bf16.msra.mxu0 %v5033_v26  ;;  %3387 = vmatpush1.bf16.msra.mxu1 %v5035_v27  ;;  %v348_v26 = vld [vmem:[%s7090_s1 + $0xa48] sm:$0xff] }
  0x6b   :  { %3347 = vmatprep.subr.bf16.mxu0 %v4970_v28  ;;  %3388 = vmatprep.subr.bf16.mxu1 %v4972_v29  ;;  %v380_v27 = vld [vmem:[%s7090_s1 + $0xb48] sm:$0xff]  ;;  %v5037_v28 = vcombine.low %v411_v16, %v443_v17  ;;  %v5039_v29 = vcombine.low %v412_v18, %v444_v19  ;;  %v5106_v16 = vcombine.high %v477_v9, %v509_v10  ;;  %v413_v18 = vld [vmem:[%s7090_s1 + $0xc50] sm:$0xff] }
  0x6c   :  { %v4976_v31 = vcombine.high %v348_v26, %v380_v27  ;;  %v445_v19 = vld [vmem:[%s7090_s1 + $0xd50] sm:$0xff] }
  0x6e   :  { %3348 = vmatpush1.bf16.msra.mxu0 %v4969_v34  ;;  %3389 = vmatpush1.bf16.msra.mxu1 %v4971_v35  ;;  %v284_v34 = vld [vmem:[%s7090_s1 + $0x848] sm:$0xff] }
  0x6f   :  { %3349 = vmatprep.subr.bf16.mxu0 %v4906_v36  ;;  %3390 = vmatprep.subr.bf16.mxu1 %v4908_v37  ;;  %v316_v35 = vld [vmem:[%s7090_s1 + $0x948] sm:$0xff]  ;;  %v4973_v36 = vcombine.low %v347_v24, %v379_v25  ;;  %v4975_v37 = vcombine.low %v348_v26, %v380_v27  ;;  %v5042_v24 = vcombine.high %v413_v18, %v445_v19  ;;  %v349_v26 = vld [vmem:[%s7090_s1 + $0xa50] sm:$0xff] }
  0x70   :  { %v4912_v39 = vcombine.high %v284_v34, %v316_v35  ;;  %v381_v27 = vld [vmem:[%s7090_s1 + $0xb50] sm:$0xff] }
  0x72   :  { %3350 = vmatpush1.bf16.msra.mxu0 %v4905_v42  ;;  %3391 = vmatpush1.bf16.msra.mxu1 %v4907_v43  ;;  %v220_v42 = vld [vmem:[%s7090_s1 + $0x648] sm:$0xff] }
  0x73   :  { %3351 = vmatprep.subr.bf16.mxu0 %v4842_v44  ;;  %3392 = vmatprep.subr.bf16.mxu1 %v4844_v45  ;;  %v252_v43 = vld [vmem:[%s7090_s1 + $0x748] sm:$0xff]  ;;  %v4909_v44 = vcombine.low %v283_v32, %v315_v33  ;;  %v4911_v45 = vcombine.low %v284_v34, %v316_v35  ;;  %v4978_v32 = vcombine.high %v349_v26, %v381_v27  ;;  %v285_v34 = vld [vmem:[%s7090_s1 + $0x850] sm:$0xff] }
  0x74   :  { %v4848_v47 = vcombine.high %v220_v42, %v252_v43  ;;  %v317_v35 = vld [vmem:[%s7090_s1 + $0x950] sm:$0xff] }
  0x76   :  { %3352 = vmatpush1.bf16.msra.mxu0 %v4841_v50  ;;  %3393 = vmatpush1.bf16.msra.mxu1 %v4843_v51  ;;  %v156_v50 = vld [vmem:[%s7090_s1 + $0x448] sm:$0xff] }
  0x77   :  { %3353 = vmatprep.subr.bf16.mxu0 %v4778_v52  ;;  %3394 = vmatprep.subr.bf16.mxu1 %v4780_v53  ;;  %v188_v51 = vld [vmem:[%s7090_s1 + $0x548] sm:$0xff]  ;;  %v4845_v52 = vcombine.low %v219_v40, %v251_v41  ;;  %v4847_v53 = vcombine.low %v220_v42, %v252_v43  ;;  %v221_v41 = vld [vmem:[%s7090_s1 + $0x650] sm:$0xff]  ;;  %v222_v43 = vld [vmem:[%s7090_s1 + $0x658] sm:$0xff] }
  0x78   :  { %v4784_v55 = vcombine.high %v156_v50, %v188_v51  ;;  %v253_v42 = vld [vmem:[%s7090_s1 + $0x750] sm:$0xff] }
  0x7a   :  { %3354 = vmatpush1.bf16.msra.mxu0 %v4777_v58  ;;  %3395 = vmatpush1.bf16.msra.mxu1 %v4779_v59  ;;  %v92_v58 = vld [vmem:[%s7090_s1 + $0x248] sm:$0xff] }
  0x7b   :  { %3355 = vmatprep.subr.bf16.mxu0 %v4714_v60  ;;  %3396 = vmatprep.subr.bf16.mxu1 %v4716_v61  ;;  %v124_v59 = vld [vmem:[%s7090_s1 + $0x348] sm:$0xff]  ;;  %v4781_v60 = vcombine.low %v155_v48, %v187_v49  ;;  %v4783_v61 = vcombine.low %v156_v50, %v188_v51  ;;  %v157_v49 = vld [vmem:[%s7090_s1 + $0x450] sm:$0xff]  ;;  %v158_v51 = vld [vmem:[%s7090_s1 + $0x458] sm:$0xff] }
  0x7c   :  { %v4720_v63 = vcombine.high %v92_v58, %v124_v59  ;;  %v189_v50 = vld [vmem:[%s7090_s1 + $0x550] sm:$0xff] }
  0x7e   :  { %3356 = vmatpush1.bf16.msra.mxu0 %v4713_v2  ;;  %3397 = vmatpush1.bf16.msra.mxu1 %v4715_v4  ;;  %v28_v2 = vld [vmem:[%s7090_s1 + $0x48] sm:$0xff] }
  0x7f   :  { %3357 = vmatprep.subr.bf16.mxu0 %v4650_v5  ;;  %3398 = vmatprep.subr.bf16.mxu1 %v4652_v6  ;;  %v60_v4 = vld [vmem:[%s7090_s1 + $0x148] sm:$0xff]  ;;  %v4717_v5 = vcombine.low %v91_v56, %v123_v57  ;;  %v4719_v6 = vcombine.low %v92_v58, %v124_v59  ;;  %v93_v57 = vld [vmem:[%s7090_s1 + $0x250] sm:$0xff]  ;;  %v94_v59 = vld [vmem:[%s7090_s1 + $0x258] sm:$0xff] }
  0x80   :  { %v4656_v8 = vcombine.high %v28_v2, %v60_v4  ;;  %v125_v58 = vld [vmem:[%s7090_s1 + $0x350] sm:$0xff] }
  0x82   :  { %3358 = vmatpush1.bf16.msra.mxu0 %v4649_v11  ;;  %3399 = vmatpush1.bf16.msra.mxu1 %v4651_v13  ;;  %v478_v11 = vld [vmem:[%s7090_s1 + $0xe58] sm:$0xff] }
  0x83   :  { %3425 = vmatprep.subr.bf16.mxu0 %v5102_v14  ;;  %3466 = vmatprep.subr.bf16.mxu1 %v5104_v15  ;;  %v510_v13 = vld [vmem:[%s7090_s1 + $0xf58] sm:$0xff]  ;;  %v4653_v14 = vcombine.low %v27_v0, %v59_v1  ;;  %v4655_v15 = vcombine.low %v28_v2, %v60_v4  ;;  %v29_v1 = vld [vmem:[%s7090_s1 + $0x50] sm:$0xff] }
  0x84   :  { %v5108_v17 = vcombine.high %v478_v11, %v510_v13  ;;  %v61_v2 = vld [vmem:[%s7090_s1 + $0x150] sm:$0xff]  ;;  %v30_v4 = vld [vmem:[%s7090_s1 + $0x58] sm:$0xff] }
  0x85   :  { %3376 = vmatmul.mubr.bf16.vlgmr.msra.gmra.mxu0 %v5434_v12  ;;  %3417 = vmatmul.mubr.bf16.vlgmr.msra.gmra.mxu1 %v5434_v12 }
  0x86   :  { %3426 = vmatpush1.bf16.msra.mxu0 %v5101_v20  ;;  %3467 = vmatpush1.bf16.msra.mxu1 %v5103_v21  ;;  %v414_v20 = vld [vmem:[%s7090_s1 + $0xc58] sm:$0xff] }
  0x87   :  { %3427 = vmatprep.subr.bf16.mxu0 %v5038_v22  ;;  %3468 = vmatprep.subr.bf16.mxu1 %v5040_v23  ;;  %v446_v21 = vld [vmem:[%s7090_s1 + $0xd58] sm:$0xff]  ;;  %v5105_v22 = vcombine.low %v477_v9, %v509_v10  ;;  %v5107_v23 = vcombine.low %v478_v11, %v510_v13  ;;  %v479_v10 = vld [vmem:[%s7090_s1 + $0xe60] sm:$0xff]  ;;  %v480_v13 = vld [vmem:[%s7090_s1 + $0xe68] sm:$0xff] }
  0x88   :  { %3457 = vmatprep.mubr.bf16.mxu0 %v5282_v3  ;;  %3498 = vmatprep.mubr.bf16.mxu1 %v5282_v3  ;;  %v5044_v25 = vcombine.high %v414_v20, %v446_v21  ;;  %v511_v11 = vld [vmem:[%s7090_s1 + $0xf60] sm:$0xff] }
  0x8a   :  { %3428 = vmatpush1.bf16.msra.mxu0 %v5037_v28  ;;  %3469 = vmatpush1.bf16.msra.mxu1 %v5039_v29  ;;  %v350_v28 = vld [vmem:[%s7090_s1 + $0xa58] sm:$0xff] }
  0x8b   :  { %3429 = vmatprep.subr.bf16.mxu0 %v4974_v30  ;;  %3470 = vmatprep.subr.bf16.mxu1 %v4976_v31  ;;  %v382_v29 = vld [vmem:[%s7090_s1 + $0xb58] sm:$0xff]  ;;  %v5041_v30 = vcombine.low %v413_v18, %v445_v19  ;;  %v5043_v31 = vcombine.low %v414_v20, %v446_v21  ;;  %v415_v19 = vld [vmem:[%s7090_s1 + $0xc60] sm:$0xff]  ;;  %v416_v21 = vld [vmem:[%s7090_s1 + $0xc68] sm:$0xff] }
  0x8c   :  { %v4980_v33 = vcombine.high %v350_v28, %v382_v29  ;;  %v447_v20 = vld [vmem:[%s7090_s1 + $0xd60] sm:$0xff] }
  0x8e   :  { %3430 = vmatpush1.bf16.msra.mxu0 %v4973_v36  ;;  %3471 = vmatpush1.bf16.msra.mxu1 %v4975_v37  ;;  %v318_v36 = vld [vmem:[%s7090_s1 + $0x958] sm:$0xff]  ;;  %v4977_v37 = vcombine.low %v349_v26, %v381_v27  ;;  %v351_v27 = vld [vmem:[%s7090_s1 + $0xa60] sm:$0xff] }
  0x8f   :  { %3431 = vmatprep.subr.bf16.mxu0 %v4910_v38  ;;  %3472 = vmatprep.subr.bf16.mxu1 %v4912_v39  ;;  %v4979_v38 = vcombine.low %v350_v28, %v382_v29  ;;  %v4914_v39 = vcombine.high %v285_v34, %v317_v35  ;;  %v383_v28 = vld [vmem:[%s7090_s1 + $0xb60] sm:$0xff] }
  0x90   :  { %v5948_v29 = vld [vmem:[%s7092_s0] sm:$0x3] }
  0x92   :  { %3432 = vmatpush1.bf16.msra.mxu0 %v4909_v44  ;;  %3473 = vmatpush1.bf16.msra.mxu1 %v4911_v45  ;;  %v254_v44 = vld [vmem:[%s7090_s1 + $0x758] sm:$0xff]  ;;  %v4913_v45 = vcombine.low %v285_v34, %v317_v35  ;;  %v4982_v34 = vcombine.high %v351_v27, %v383_v28 }
  0x93   :  { %3433 = vmatprep.subr.bf16.mxu0 %v4846_v46  ;;  %3474 = vmatprep.subr.bf16.mxu1 %v4848_v47  ;;  %v4850_v47 = vcombine.high %v221_v41, %v253_v42  ;;  %v4852_v48 = vcombine.high %v222_v43, %v254_v44 }
  0x96   :  { %3434 = vmatpush1.bf16.msra.mxu0 %v4845_v52  ;;  %3475 = vmatpush1.bf16.msra.mxu1 %v4847_v53  ;;  %v190_v52 = vld [vmem:[%s7090_s1 + $0x558] sm:$0xff]  ;;  %v4849_v53 = vcombine.low %v221_v41, %v253_v42 }
  0x97   :  { %3435 = vmatprep.subr.bf16.mxu0 %v4782_v54  ;;  %3476 = vmatprep.subr.bf16.mxu1 %v4784_v55  ;;  %v4851_v54 = vcombine.low %v222_v43, %v254_v44  ;;  %v4786_v55 = vcombine.high %v157_v49, %v189_v50  ;;  %v4788_v56 = vcombine.high %v158_v51, %v190_v52  ;;  %v223_v43 = vld [vmem:[%s7090_s1 + $0x660] sm:$0xff] }
  0x98   :  { %v255_v44 = vld [vmem:[%s7090_s1 + $0x760] sm:$0xff] }
  0x9a   :  { %3436 = vmatpush1.bf16.msra.mxu0 %v4781_v60  ;;  %3477 = vmatpush1.bf16.msra.mxu1 %v4783_v61  ;;  %v126_v60 = vld [vmem:[%s7090_s1 + $0x358] sm:$0xff]  ;;  %v4785_v61 = vcombine.low %v157_v49, %v189_v50  ;;  %v4854_v49 = vcombine.high %v223_v43, %v255_v44 }
  0x9b   :  { %3437 = vmatprep.subr.bf16.mxu0 %v4718_v62  ;;  %3478 = vmatprep.subr.bf16.mxu1 %v4720_v63  ;;  %v4787_v62 = vcombine.low %v158_v51, %v190_v52  ;;  %v4722_v63 = vcombine.high %v93_v57, %v125_v58  ;;  %v4724_v0 = vcombine.high %v94_v59, %v126_v60  ;;  %v159_v51 = vld [vmem:[%s7090_s1 + $0x460] sm:$0xff] }
  0x9c   :  { %v191_v52 = vld [vmem:[%s7090_s1 + $0x560] sm:$0xff] }
  0x9e   :  { %3438 = vmatpush1.bf16.msra.mxu0 %v4717_v5  ;;  %3479 = vmatpush1.bf16.msra.mxu1 %v4719_v6  ;;  %v62_v5 = vld [vmem:[%s7090_s1 + $0x158] sm:$0xff]  ;;  %v4721_v6 = vcombine.low %v93_v57, %v125_v58  ;;  %v4790_v57 = vcombine.high %v159_v51, %v191_v52 }
  0x9f   :  { %3439 = vmatprep.subr.bf16.mxu0 %v4654_v7  ;;  %3480 = vmatprep.subr.bf16.mxu1 %v4656_v8  ;;  %v4723_v7 = vcombine.low %v94_v59, %v126_v60  ;;  %v4658_v8 = vcombine.high %v29_v1, %v61_v2  ;;  %v4660_v9 = vcombine.high %v30_v4, %v62_v5  ;;  %v95_v59 = vld [vmem:[%s7090_s1 + $0x260] sm:$0xff] }
  0xa0   :  { %v127_v60 = vld [vmem:[%s7090_s1 + $0x360] sm:$0xff] }
  0xa2   :  { %3440 = vmatpush1.bf16.msra.mxu0 %v4653_v14  ;;  %3481 = vmatpush1.bf16.msra.mxu1 %v4655_v15  ;;  %v512_v14 = vld [vmem:[%s7090_s1 + $0xf68] sm:$0xff]  ;;  %v4657_v15 = vcombine.low %v29_v1, %v61_v2  ;;  %v4726_v1 = vcombine.high %v95_v59, %v127_v60 }
  0xa3   :  { %3507 = vmatprep.subr.bf16.mxu0 %v5106_v16  ;;  %3548 = vmatprep.subr.bf16.mxu1 %v5108_v17  ;;  %v4659_v16 = vcombine.low %v30_v4, %v62_v5  ;;  %v5110_v17 = vcombine.high %v479_v10, %v511_v11  ;;  %v5112_v18 = vcombine.high %v480_v13, %v512_v14  ;;  %v31_v4 = vld [vmem:[%s7090_s1 + $0x60] sm:$0xff] }
  0xa4   :  { %v63_v5 = vld [vmem:[%s7090_s1 + $0x160] sm:$0xff] }
  0xa5   :  { %3458 = vmatmul.mubr.bf16.vlgmr.msra.gmra.mxu0 %v5434_v12  ;;  %3499 = vmatmul.mubr.bf16.vlgmr.msra.gmra.mxu1 %v5434_v12  ;;  %v286_v12 = vld [vmem:[%s7090_s1 + $0x858] sm:$0xff] }
  0xa6   :  { %3508 = vmatpush1.bf16.msra.mxu0 %v5105_v22  ;;  %3549 = vmatpush1.bf16.msra.mxu1 %v5107_v23  ;;  %v4916_v40 = vcombine.high %v286_v12, %v318_v36  ;;  %v4915_v46 = vcombine.low %v286_v12, %v318_v36  ;;  %v448_v22 = vld [vmem:[%s7090_s1 + $0xd68] sm:$0xff]  ;;  %v5109_v23 = vcombine.low %v479_v10, %v511_v11  ;;  %v287_v12 = vld [vmem:[%s7090_s1 + $0x860] sm:$0xff] }
  0xa7   :  { %3509 = vmatprep.subr.bf16.mxu0 %v5042_v24  ;;  %3550 = vmatprep.subr.bf16.mxu1 %v5044_v25  ;;  %v5111_v24 = vcombine.low %v480_v13, %v512_v14  ;;  %v5046_v25 = vcombine.high %v415_v19, %v447_v20  ;;  %v5048_v26 = vcombine.high %v416_v21, %v448_v22  ;;  %v319_v36 = vld [vmem:[%s7090_s1 + $0x960] sm:$0xff]  ;;  %v481_v13 = vld [vmem:[%s7090_s1 + $0xe70] sm:$0xff] }
  0xa8   :  { %3539 = vmatprep.mubr.bf16.mxu0 %v5282_v3  ;;  %3580 = vmatprep.mubr.bf16.mxu1 %v5282_v3  ;;  %v4918_v41 = vcombine.high %v287_v12, %v319_v36  ;;  %v4662_v10 = vcombine.high %v31_v4, %v63_v5  ;;  %v513_v14 = vld [vmem:[%s7090_s1 + $0xf70] sm:$0xff] }
  0xaa   :  { %3510 = vmatpush1.bf16.msra.mxu0 %v5041_v30  ;;  %3551 = vmatpush1.bf16.msra.mxu1 %v5043_v31  ;;  %v352_v30 = vld [vmem:[%s7090_s1 + $0xa68] sm:$0xff] }
  0xab   :  { %3511 = vmatprep.subr.bf16.mxu0 %v4978_v32  ;;  %3552 = vmatprep.subr.bf16.mxu1 %v4980_v33  ;;  %v384_v31 = vld [vmem:[%s7090_s1 + $0xb68] sm:$0xff]  ;;  %v5045_v32 = vcombine.low %v415_v19, %v447_v20  ;;  %v5047_v33 = vcombine.low %v416_v21, %v448_v22  ;;  %v5114_v19 = vcombine.high %v481_v13, %v513_v14  ;;  %v417_v21 = vld [vmem:[%s7090_s1 + $0xc70] sm:$0xff] }
  0xac   :  { %v4984_v35 = vcombine.high %v352_v30, %v384_v31  ;;  %v449_v22 = vld [vmem:[%s7090_s1 + $0xd70] sm:$0xff] }
  0xae   :  { %3512 = vmatpush1.bf16.msra.mxu0 %v4977_v37  ;;  %3553 = vmatpush1.bf16.msra.mxu1 %v4979_v38  ;;  %v288_v37 = vld [vmem:[%s7090_s1 + $0x868] sm:$0xff] }
  0xaf   :  { %3513 = vmatprep.subr.bf16.mxu0 %v4914_v39  ;;  %3554 = vmatprep.subr.bf16.mxu1 %v4916_v40  ;;  %v320_v38 = vld [vmem:[%s7090_s1 + $0x968] sm:$0xff]  ;;  %v4981_v39 = vcombine.low %v351_v27, %v383_v28  ;;  %v4983_v40 = vcombine.low %v352_v30, %v384_v31  ;;  %v6044_v27 = vpop.permute.xlu0 %534  ;;  %v5050_v28 = vcombine.high %v417_v21, %v449_v22  ;;  %v353_v31 = vld [vmem:[%s7090_s1 + $0xa70] sm:$0xff] }
  0xb0   :  { %v4920_v42 = vcombine.high %v288_v37, %v320_v38 }
  0xb2   :  { %3514 = vmatpush1.bf16.msra.mxu0 %v4913_v45  ;;  %3555 = vmatpush1.bf16.msra.mxu1 %v4915_v46  ;;  %v224_v45 = vld [vmem:[%s7090_s1 + $0x668] sm:$0xff] }
  0xb3   :  { %3515 = vmatprep.subr.bf16.mxu0 %v4850_v47  ;;  %3556 = vmatprep.subr.bf16.mxu1 %v4852_v48  ;;  %v256_v46 = vld [vmem:[%s7090_s1 + $0x768] sm:$0xff]  ;;  %v4917_v47 = vcombine.low %v287_v12, %v319_v36  ;;  %v4919_v48 = vcombine.low %v288_v37, %v320_v38  ;;  %v5049_v37 = vcombine.low %v417_v21, %v449_v22 }
  0xb4   :  { %v4856_v50 = vcombine.high %v224_v45, %v256_v46 }
  0xb6   :  { %3516 = vmatpush1.bf16.msra.mxu0 %v4849_v53  ;;  %3557 = vmatpush1.bf16.msra.mxu1 %v4851_v54  ;;  %v160_v53 = vld [vmem:[%s7090_s1 + $0x468] sm:$0xff] }
  0xb7   :  { %3517 = vmatprep.subr.bf16.mxu0 %v4786_v55  ;;  %3558 = vmatprep.subr.bf16.mxu1 %v4788_v56  ;;  %v192_v54 = vld [vmem:[%s7090_s1 + $0x568] sm:$0xff]  ;;  %v4853_v55 = vcombine.low %v223_v43, %v255_v44  ;;  %v4855_v56 = vcombine.low %v224_v45, %v256_v46  ;;  %v289_v45 = vld [vmem:[%s7090_s1 + $0x870] sm:$0xff] }
  0xb8   :  { %v4792_v58 = vcombine.high %v160_v53, %v192_v54  ;;  %v321_v46 = vld [vmem:[%s7090_s1 + $0x970] sm:$0xff] }
  0xba   :  { %3518 = vmatpush1.bf16.msra.mxu0 %v4785_v61  ;;  %3559 = vmatpush1.bf16.msra.mxu1 %v4787_v62  ;;  %v96_v61 = vld [vmem:[%s7090_s1 + $0x268] sm:$0xff] }
  0xbb   :  { %3519 = vmatprep.subr.bf16.mxu0 %v4722_v63  ;;  %3560 = vmatprep.subr.bf16.mxu1 %v4724_v0  ;;  %v128_v62 = vld [vmem:[%s7090_s1 + $0x368] sm:$0xff]  ;;  %v4789_v63 = vcombine.low %v159_v51, %v191_v52  ;;  %v4791_v0 = vcombine.low %v160_v53, %v192_v54 }
  0xbc   :  { %v4728_v2 = vcombine.high %v96_v61, %v128_v62 }
  0xbe   :  { %3520 = vmatpush1.bf16.msra.mxu0 %v4721_v6  ;;  %3561 = vmatpush1.bf16.msra.mxu1 %v4723_v7  ;;  %v32_v6 = vld [vmem:[%s7090_s1 + $0x68] sm:$0xff] }
  0xbf   :  { %3521 = vmatprep.subr.bf16.mxu0 %v4658_v8  ;;  %3562 = vmatprep.subr.bf16.mxu1 %v4660_v9  ;;  %v64_v7 = vld [vmem:[%s7090_s1 + $0x168] sm:$0xff]  ;;  %v4725_v8 = vcombine.low %v95_v59, %v127_v60  ;;  %v4727_v9 = vcombine.low %v96_v61, %v128_v62  ;;  %v257_v59 = vld [vmem:[%s7090_s1 + $0x770] sm:$0xff]  ;;  %v226_v60 = vld [vmem:[%s7090_s1 + $0x678] sm:$0xff]  ;;  %v4921_v62 = vcombine.low %v289_v45, %v321_v46 }
  0xc0   :  { %v4664_v11 = vcombine.high %v32_v6, %v64_v7  ;;  %v258_v61 = vld [vmem:[%s7090_s1 + $0x778] sm:$0xff] }
  0xc2   :  { %3522 = vmatpush1.bf16.msra.mxu0 %v4657_v15  ;;  %3563 = vmatpush1.bf16.msra.mxu1 %v4659_v16  ;;  %v482_v15 = vld [vmem:[%s7090_s1 + $0xe78] sm:$0xff] }
  0xc3   :  { %3589 = vmatprep.subr.bf16.mxu0 %v5110_v17  ;;  %3630 = vmatprep.subr.bf16.mxu1 %v5112_v18  ;;  %v514_v16 = vld [vmem:[%s7090_s1 + $0xf78] sm:$0xff]  ;;  %v4661_v17 = vcombine.low %v31_v4, %v63_v5  ;;  %v4663_v18 = vcombine.low %v32_v6, %v64_v7  ;;  %v193_v4 = vld [vmem:[%s7090_s1 + $0x570] sm:$0xff] }
  0xc4   :  { %v5116_v20 = vcombine.high %v482_v15, %v514_v16  ;;  %v162_v5 = vld [vmem:[%s7090_s1 + $0x478] sm:$0xff] }
  0xc5   :  { %3540 = vmatmul.mubr.bf16.vlgmr.msra.gmra.mxu0 %v5948_v29  ;;  %3581 = vmatmul.mubr.bf16.vlgmr.msra.gmra.mxu1 %v5948_v29  ;;  %v194_v6 = vld [vmem:[%s7090_s1 + $0x578] sm:$0xff] }
  0xc6   :  { %3590 = vmatpush1.bf16.msra.mxu0 %v5109_v23  ;;  %3631 = vmatpush1.bf16.msra.mxu1 %v5111_v24  ;;  %v418_v23 = vld [vmem:[%s7090_s1 + $0xc78] sm:$0xff] }
  0xc7   :  { %3591 = vmatprep.subr.bf16.mxu0 %v5046_v25  ;;  %3632 = vmatprep.subr.bf16.mxu1 %v5048_v26  ;;  %v450_v24 = vld [vmem:[%s7090_s1 + $0xd78] sm:$0xff]  ;;  %v5113_v25 = vcombine.low %v481_v13, %v513_v14  ;;  %v5115_v26 = vcombine.low %v482_v15, %v514_v16  ;;  %v129_v13 = vld [vmem:[%s7090_s1 + $0x370] sm:$0xff] }
  0xc8   :  { %3621 = vmatprep.mubr.bf16.mxu0 %v5282_v3  ;;  %3662 = vmatprep.mubr.bf16.mxu1 %v5282_v3  ;;  %v5052_v30 = vcombine.high %v418_v23, %v450_v24  ;;  %v98_v15 = vld [vmem:[%s7090_s1 + $0x278] sm:$0xff] }
  0xc9   :  { %v130_v16 = vld [vmem:[%s7090_s1 + $0x378] sm:$0xff] }
  0xca   :  { %3592 = vmatpush1.bf16.msra.mxu0 %v5045_v32  ;;  %3633 = vmatpush1.bf16.msra.mxu1 %v5047_v33  ;;  %v385_v32 = vld [vmem:[%s7090_s1 + $0xb70] sm:$0xff] }
  0xcb   :  { %3593 = vmatprep.subr.bf16.mxu0 %v4982_v34  ;;  %3634 = vmatprep.subr.bf16.mxu1 %v4984_v35  ;;  %v354_v34 = vld [vmem:[%s7090_s1 + $0xa78] sm:$0xff]  ;;  %v4985_v52 = vcombine.low %v353_v31, %v385_v32 }
  0xcc   :  { %v386_v35 = vld [vmem:[%s7090_s1 + $0xb78] sm:$0xff] }
  0xcd   :  { %v4988_v44 = vcombine.high %v354_v34, %v386_v35  ;;  %v4987_v54 = vcombine.low %v354_v34, %v386_v35 }
  0xce   :  { %3594 = vmatpush1.bf16.msra.mxu0 %v4981_v39  ;;  %3635 = vmatpush1.bf16.msra.mxu1 %v4983_v40  ;;  %v5051_v40 = vcombine.low %v418_v23, %v450_v24  ;;  %v4732_v24 = vcombine.high %v98_v15, %v130_v16 }
  0xcf   :  { %3595 = vmatprep.subr.bf16.mxu0 %v4918_v41  ;;  %3636 = vmatprep.subr.bf16.mxu1 %v4920_v42  ;;  %v4986_v41 = vcombine.high %v353_v31, %v385_v32  ;;  %v66_v31 = vld [vmem:[%s7090_s1 + $0x178] sm:$0xff] }
  0xd2   :  { %3596 = vmatpush1.bf16.msra.mxu0 %v4917_v47  ;;  %3637 = vmatpush1.bf16.msra.mxu1 %v4919_v48 }
  0xd3   :  { %3597 = vmatprep.subr.bf16.mxu0 %v4854_v49  ;;  %3638 = vmatprep.subr.bf16.mxu1 %v4856_v50  ;;  %v290_v49 = vld [vmem:[%s7090_s1 + $0x878] sm:$0xff] }
  0xd4   :  { %v322_v50 = vld [vmem:[%s7090_s1 + $0x978] sm:$0xff] }
  0xd6   :  { %3598 = vmatpush1.bf16.msra.mxu0 %v4853_v55  ;;  %3639 = vmatpush1.bf16.msra.mxu1 %v4855_v56  ;;  %v4922_v55 = vcombine.high %v289_v45, %v321_v46  ;;  %v420_v45 = vld [vmem:[%s7090_s1 + $0xc88] sm:$0xff] }
  0xd7   :  { %3599 = vmatprep.subr.bf16.mxu0 %v4790_v57  ;;  %3640 = vmatprep.subr.bf16.mxu1 %v4792_v58  ;;  %v4924_v57 = vcombine.high %v290_v49, %v322_v50  ;;  %v225_v58 = vld [vmem:[%s7090_s1 + $0x670] sm:$0xff]  ;;  %v452_v46 = vld [vmem:[%s7090_s1 + $0xd88] sm:$0xff] }
  0xd8   :  { %v4857_v7 = vcombine.low %v225_v58, %v257_v59 }
  0xda   :  { %3600 = vmatpush1.bf16.msra.mxu0 %v4789_v63  ;;  %3641 = vmatpush1.bf16.msra.mxu1 %v4791_v0  ;;  %v4923_v63 = vcombine.low %v290_v49, %v322_v50  ;;  %v4858_v0 = vcombine.high %v225_v58, %v257_v59  ;;  %v5056_v50 = vcombine.high %v420_v45, %v452_v46 }
  0xdb   :  { %3601 = vmatprep.subr.bf16.mxu0 %v4726_v1  ;;  %3642 = vmatprep.subr.bf16.mxu1 %v4728_v2  ;;  %v4860_v1 = vcombine.high %v226_v60, %v258_v61  ;;  %v161_v2 = vld [vmem:[%s7090_s1 + $0x470] sm:$0xff] }
  0xde   :  { %3602 = vmatpush1.bf16.msra.mxu0 %v4725_v8  ;;  %3643 = vmatpush1.bf16.msra.mxu1 %v4727_v9  ;;  %v4859_v8 = vcombine.low %v226_v60, %v258_v61  ;;  %v4794_v9 = vcombine.high %v161_v2, %v193_v4  ;;  %v5055_v61 = vcombine.low %v420_v45, %v452_v46 }
  0xdf   :  { %3603 = vmatprep.subr.bf16.mxu0 %v4662_v10  ;;  %3644 = vmatprep.subr.bf16.mxu1 %v4664_v11  ;;  %v4796_v10 = vcombine.high %v162_v5, %v194_v6  ;;  %v97_v11 = vld [vmem:[%s7090_s1 + $0x270] sm:$0xff] }
  0xe0   :  { %v4730_v21 = vcombine.high %v97_v11, %v129_v13  ;;  %v4729_v32 = vcombine.low %v97_v11, %v129_v13 }
  0xe2   :  { %3604 = vmatpush1.bf16.msra.mxu0 %v4661_v17  ;;  %3645 = vmatpush1.bf16.msra.mxu1 %v4663_v18  ;;  %v4793_v18 = vcombine.low %v161_v2, %v193_v4  ;;  %v291_v2 = vld [vmem:[%s7090_s1 + $0x880] sm:$0xff] }
  0xe3   :  { %3671 = vmatprep.subr.bf16.mxu0 %v5114_v19  ;;  %3712 = vmatprep.subr.bf16.mxu1 %v5116_v20  ;;  %v4795_v20 = vcombine.low %v162_v5, %v194_v6  ;;  %v323_v4 = vld [vmem:[%s7090_s1 + $0x980] sm:$0xff] }
  0xe5   :  { %v3131_v33 = vpop.f32.mrf.mxu0  ;;  %3622 = vmatmul.mubr.bf16.vlgmr.msra.gmra.mxu0 %v5948_v29  ;;  %v3172_v12 = vpop.f32.mrf.mxu1  ;;  %3663 = vmatmul.mubr.bf16.vlgmr.msra.gmra.mxu1 %v5948_v29 }
  0xe6   :  { %3672 = vmatpush1.bf16.msra.mxu0 %v5113_v25  ;;  %v3132_v36 = vadd.f32 %v3131_v33, %v6044_v27  ;;  %3713 = vmatpush1.bf16.msra.mxu1 %v5115_v26  ;;  %v3173_v39 = vadd.f32 %v3172_v12, %v6044_v27  ;;  %v33_v25 = vld [vmem:[%s7090_s1 + $0x70] sm:$0xff]  ;;  %v4731_v33 = vcombine.low %v98_v15, %v130_v16  ;;  %v483_v12 = vld [vmem:[%s7090_s1 + $0xe80] sm:$0xff] }
  0xe7   :  { %v3133_v38 = vpop.f32.mrf.mxu0  ;;  %3673 = vmatprep.subr.bf16.mxu0 %v5050_v28  ;;  %v3174_v43 = vpop.f32.mrf.mxu1  ;;  %3714 = vmatprep.subr.bf16.mxu1 %v5052_v30  ;;  %v65_v26 = vld [vmem:[%s7090_s1 + $0x170] sm:$0xff]  ;;  %v34_v30 = vld [vmem:[%s7090_s1 + $0x78] sm:$0xff] }
  0xe8   :  { %v3134_v42 = vadd.f32 %v3133_v38, %v6044_v27  ;;  %5151 = vtanh.f32 %v3132_v36  ;;  %3703 = vmatprep.mubr.bf16.mxu0 %v5282_v3  ;;  %v3175_v47 = vadd.f32 %v3174_v43, %v6044_v27  ;;  %3744 = vmatprep.mubr.bf16.mxu1 %v5282_v3  ;;  %v4666_v34 = vcombine.high %v33_v25, %v65_v26  ;;  %v515_v36 = vld [vmem:[%s7090_s1 + $0xf80] sm:$0xff]  ;;  %v516_v38 = vld [vmem:[%s7090_s1 + $0xf88] sm:$0xff] }
  0xe9   :  { %5153 = vtanh.f32 %v3173_v39  ;;  %v3135_v48 = vpop.f32.mrf.mxu0  ;;  %v3176_v51 = vpop.f32.mrf.mxu1  ;;  %v4668_v35 = vcombine.high %v34_v30, %v66_v31  ;;  %v4665_v39 = vcombine.low %v33_v25, %v65_v26  ;;  %v419_v43 = vld [vmem:[%s7090_s1 + $0xc80] sm:$0xff] }
  0xea   :  { %5155 = vtanh.f32 %v3134_v42  ;;  %3674 = vmatpush1.bf16.msra.mxu0 %v5049_v37  ;;  %3715 = vmatpush1.bf16.msra.mxu1 %v5051_v40  ;;  %v484_v37 = vld [vmem:[%s7090_s1 + $0xe88] sm:$0xff]  ;;  %v4667_v40 = vcombine.low %v34_v30, %v66_v31  ;;  %v355_v51 = vld [vmem:[%s7090_s1 + $0xa80] sm:$0xff] }
  0xeb   :  { %5157 = vtanh.f32 %v3175_v47  ;;  %v3136_v53 = vpop.f32.mrf.mxu0  ;;  %3675 = vmatprep.subr.bf16.mxu0 %v4986_v41  ;;  %v3177_v56 = vpop.f32.mrf.mxu1  ;;  %3716 = vmatprep.subr.bf16.mxu1 %v4988_v44  ;;  %v5118_v41 = vcombine.high %v483_v12, %v515_v36  ;;  %v5120_v42 = vcombine.high %v484_v37, %v516_v38  ;;  %v451_v44 = vld [vmem:[%s7090_s1 + $0xd80] sm:$0xff]  ;;  %v5117_v47 = vcombine.low %v483_v12, %v515_v36  ;;  %v196_v30 = vld [vmem:[%s7090_s1 + $0x588] sm:$0xff] }
  0xec   :  { %v5119_v48 = vcombine.low %v484_v37, %v516_v38  ;;  %v5054_v49 = vcombine.high %v419_v43, %v451_v44  ;;  %v5053_v58 = vcombine.low %v419_v43, %v451_v44  ;;  %v163_v25 = vld [vmem:[%s7090_s1 + $0x480] sm:$0xff]  ;;  %v100_v37 = vld [vmem:[%s7090_s1 + $0x288] sm:$0xff] }
  0xed   :  { %v195_v26 = vld [vmem:[%s7090_s1 + $0x580] sm:$0xff]  ;;  %v132_v38 = vld [vmem:[%s7090_s1 + $0x388] sm:$0xff] }
  0xee   :  { %3676 = vmatpush1.bf16.msra.mxu0 %v4985_v52  ;;  %3717 = vmatpush1.bf16.msra.mxu1 %v4987_v54  ;;  %v387_v52 = vld [vmem:[%s7090_s1 + $0xb80] sm:$0xff]  ;;  %v356_v54 = vld [vmem:[%s7090_s1 + $0xa88] sm:$0xff]  ;;  %v4736_v46 = vcombine.high %v100_v37, %v132_v38 }
  0xef   :  { %3677 = vmatprep.subr.bf16.mxu0 %v4922_v55  ;;  %3718 = vmatprep.subr.bf16.mxu1 %v4924_v57  ;;  %v388_v55 = vld [vmem:[%s7090_s1 + $0xb88] sm:$0xff]  ;;  %v131_v12 = vld [vmem:[%s7090_s1 + $0x380] sm:$0xff] }
  0xf0   :  { %v4991_v13 = vcombine.low %v356_v54, %v388_v55 }
  0xf2   :  { %3678 = vmatpush1.bf16.msra.mxu0 %v4921_v62  ;;  %3719 = vmatpush1.bf16.msra.mxu1 %v4923_v63  ;;  %v4990_v62 = vcombine.high %v355_v51, %v387_v52 }
  0xf3   :  { %3679 = vmatprep.subr.bf16.mxu0 %v4858_v0  ;;  %3720 = vmatprep.subr.bf16.mxu1 %v4860_v1  ;;  %v4992_v1 = vcombine.high %v356_v54, %v388_v55 }
  0xf5   :  { %v5152_v14 = vpop.eup %5151 }
  0xf6   :  { %v5154_v17 = vpop.eup %5153  ;;  %3680 = vmatpush1.bf16.msra.mxu0 %v4857_v7  ;;  %3721 = vmatpush1.bf16.msra.mxu1 %v4859_v8  ;;  %v292_v7 = vld [vmem:[%s7090_s1 + $0x888] sm:$0xff] }
  0xf7   :  { %v5156_v19 = vpop.eup %5155  ;;  %3681 = vmatprep.subr.bf16.mxu0 %v4794_v9  ;;  %3722 = vmatprep.subr.bf16.mxu1 %v4796_v10  ;;  %v324_v8 = vld [vmem:[%s7090_s1 + $0x988] sm:$0xff]  ;;  %v4989_v10 = vcombine.low %v355_v51, %v387_v52 }
  0xf8   :  { %v5158_v22 = vpop.eup %5157  ;;  %v4537_v23 = vcombine.low %v5152_v14, %v5156_v19  ;;  %v4926_v14 = vcombine.high %v291_v2, %v323_v4  ;;  %v4928_v16 = vcombine.high %v292_v7, %v324_v8  ;;  %v228_v19 = vld [vmem:[%s7090_s1 + $0x688] sm:$0xff] }
  0xf9   :  { %v4538_v28 = vcombine.low %v5154_v17, %v5158_v22  ;;  %v227_v17 = vld [vmem:[%s7090_s1 + $0x680] sm:$0xff]  ;;  %v4927_v22 = vcombine.low %v292_v7, %v324_v8  ;;  %v68_v51 = vld [vmem:[%s7090_s1 + $0x188] sm:$0xff] }
  0xfa   :  { %4601 = vst [vmem:[%s7094_s4] sm:$0x77] %v4537_v23  ;;  %3682 = vmatpush1.bf16.msra.mxu0 %v4793_v18  ;;  %3723 = vmatpush1.bf16.msra.mxu1 %v4795_v20  ;;  %v259_v18 = vld [vmem:[%s7090_s1 + $0x780] sm:$0xff]  ;;  %v260_v20 = vld [vmem:[%s7090_s1 + $0x788] sm:$0xff] }
  0xfb   :  { %4602 = vst [vmem:[%s7094_s4 + $0x8] sm:$0x77] %v4538_v28  ;;  %3683 = vmatprep.subr.bf16.mxu0 %v4730_v21  ;;  %3724 = vmatprep.subr.bf16.mxu1 %v4732_v24  ;;  %v4925_v21 = vcombine.low %v291_v2, %v323_v4  ;;  %v4862_v23 = vcombine.high %v227_v17, %v259_v18  ;;  %v164_v28 = vld [vmem:[%s7090_s1 + $0x488] sm:$0xff]  ;;  %v422_v2 = vld [vmem:[%s7090_s1 + $0xc98] sm:$0xff] }
  0xfc   :  { %v4864_v24 = vcombine.high %v228_v19, %v260_v20  ;;  %v4861_v31 = vcombine.low %v227_v17, %v259_v18  ;;  %v454_v4 = vld [vmem:[%s7090_s1 + $0xd98] sm:$0xff] }
  0xfd   :  { %v5060_v8 = vcombine.high %v422_v2, %v454_v4 }
  0xfe   :  { %3684 = vmatpush1.bf16.msra.mxu0 %v4729_v32  ;;  %3725 = vmatpush1.bf16.msra.mxu1 %v4731_v33  ;;  %v4863_v32 = vcombine.low %v228_v19, %v260_v20  ;;  %v4798_v33 = vcombine.high %v163_v25, %v195_v26  ;;  %v5059_v20 = vcombine.low %v422_v2, %v454_v4 }
  0xff   :  { %3685 = vmatprep.subr.bf16.mxu0 %v4666_v34  ;;  %3726 = vmatprep.subr.bf16.mxu1 %v4668_v35  ;;  %v4800_v34 = vcombine.high %v164_v28, %v196_v30  ;;  %v99_v35 = vld [vmem:[%s7090_s1 + $0x280] sm:$0xff] }
 0x100   :  { %v4734_v43 = vcombine.high %v99_v35, %v131_v12  ;;  %v4733_v52 = vcombine.low %v99_v35, %v131_v12 }
 0x102   :  { %3686 = vmatpush1.bf16.msra.mxu0 %v4665_v39  ;;  %3727 = vmatpush1.bf16.msra.mxu1 %v4667_v40  ;;  %v4797_v40 = vcombine.low %v163_v25, %v195_v26  ;;  %v293_v25 = vld [vmem:[%s7090_s1 + $0x890] sm:$0xff] }
 0x103   :  { %3753 = vmatprep.subr.bf16.mxu0 %v5118_v41  ;;  %3794 = vmatprep.subr.bf16.mxu1 %v5120_v42  ;;  %v4799_v42 = vcombine.low %v164_v28, %v196_v30  ;;  %v325_v26 = vld [vmem:[%s7090_s1 + $0x990] sm:$0xff] }
 0x105   :  { %v3213_v53 = vpop.f32.mrf.mxu0  ;;  %3704 = vmatmul.mubr.bf16.vlgmr.msra.gmra.mxu0 %v5948_v29  ;;  %v3254_v57 = vpop.f32.mrf.mxu1  ;;  %3745 = vmatmul.mubr.bf16.vlgmr.msra.gmra.mxu1 %v5948_v29 }
 0x106   :  { %v3214_v56 = vadd.f32 %v3213_v53, %v6044_v27  ;;  %3754 = vmatpush1.bf16.msra.mxu0 %v5117_v47  ;;  %v3255_v59 = vadd.f32 %v3254_v57, %v6044_v27  ;;  %3795 = vmatpush1.bf16.msra.mxu1 %v5119_v48  ;;  %v35_v47 = vld [vmem:[%s7090_s1 + $0x80] sm:$0xff]  ;;  %v4735_v53 = vcombine.low %v100_v37, %v132_v38  ;;  %v517_v57 = vld [vmem:[%s7090_s1 + $0xf90] sm:$0xff] }
 0x107   :  { %v3215_v60 = vpop.f32.mrf.mxu0  ;;  %3755 = vmatprep.subr.bf16.mxu0 %v5054_v49  ;;  %v3256_v0 = vpop.f32.mrf.mxu1  ;;  %3796 = vmatprep.subr.bf16.mxu1 %v5056_v50  ;;  %v67_v48 = vld [vmem:[%s7090_s1 + $0x180] sm:$0xff]  ;;  %v36_v50 = vld [vmem:[%s7090_s1 + $0x88] sm:$0xff] }
 0x108   :  { %5159 = vtanh.f32 %v3214_v56  ;;  %v3216_v63 = vadd.f32 %v3215_v60, %v6044_v27  ;;  %3785 = vmatprep.mubr.bf16.mxu0 %v5282_v3  ;;  %v3257_v5 = vadd.f32 %v3256_v0, %v6044_v27  ;;  %3826 = vmatprep.mubr.bf16.mxu1 %v5282_v3  ;;  %v4670_v54 = vcombine.high %v35_v47, %v67_v48  ;;  %v485_v56 = vld [vmem:[%s7090_s1 + $0xe90] sm:$0xff] }
 0x109   :  { %5161 = vtanh.f32 %v3255_v59  ;;  %v3217_v6 = vpop.f32.mrf.mxu0  ;;  %v3258_v9 = vpop.f32.mrf.mxu1  ;;  %v4672_v55 = vcombine.high %v36_v50, %v68_v51  ;;  %v518_v59 = vld [vmem:[%s7090_s1 + $0xf98] sm:$0xff]  ;;  %v4669_v60 = vcombine.low %v35_v47, %v67_v48  ;;  %v421_v0 = vld [vmem:[%s7090_s1 + $0xc90] sm:$0xff] }
 0x10a   :  { %5163 = vtanh.f32 %v3216_v63  ;;  %3756 = vmatpush1.bf16.msra.mxu0 %v5053_v58  ;;  %3797 = vmatpush1.bf16.msra.mxu1 %v5055_v61  ;;  %v486_v58 = vld [vmem:[%s7090_s1 + $0xe98] sm:$0xff]  ;;  %v4671_v61 = vcombine.low %v36_v50, %v68_v51  ;;  %v357_v9 = vld [vmem:[%s7090_s1 + $0xa90] sm:$0xff] }
 0x10b   :  { %5165 = vtanh.f32 %v3257_v5  ;;  %v3218_v11 = vpop.f32.mrf.mxu0  ;;  %3757 = vmatprep.subr.bf16.mxu0 %v4990_v62  ;;  %v3259_v15 = vpop.f32.mrf.mxu1  ;;  %3798 = vmatprep.subr.bf16.mxu1 %v4992_v1  ;;  %v5122_v62 = vcombine.high %v485_v56, %v517_v57  ;;  %v5124_v63 = vcombine.high %v486_v58, %v518_v59  ;;  %v453_v1 = vld [vmem:[%s7090_s1 + $0xd90] sm:$0xff]  ;;  %v5121_v5 = vcombine.low %v485_v56, %v517_v57  ;;  %v198_v50 = vld [vmem:[%s7090_s1 + $0x598] sm:$0xff] }
 0x10c   :  { %v5123_v6 = vcombine.low %v486_v58, %v518_v59  ;;  %v5058_v7 = vcombine.high %v421_v0, %v453_v1  ;;  %v5057_v17 = vcombine.low %v421_v0, %v453_v1  ;;  %v165_v47 = vld [vmem:[%s7090_s1 + $0x490] sm:$0xff]  ;;  %v102_v58 = vld [vmem:[%s7090_s1 + $0x298] sm:$0xff] }
 0x10d   :  { %v197_v48 = vld [vmem:[%s7090_s1 + $0x590] sm:$0xff]  ;;  %v134_v59 = vld [vmem:[%s7090_s1 + $0x398] sm:$0xff] }
 0x10e   :  { %3758 = vmatpush1.bf16.msra.mxu0 %v4989_v10  ;;  %3799 = vmatpush1.bf16.msra.mxu1 %v4991_v13  ;;  %v389_v10 = vld [vmem:[%s7090_s1 + $0xb90] sm:$0xff]  ;;  %v358_v13 = vld [vmem:[%s7090_s1 + $0xa98] sm:$0xff]  ;;  %v4740_v4 = vcombine.high %v102_v58, %v134_v59 }
 0x10f   :  { %3759 = vmatprep.subr.bf16.mxu0 %v4926_v14  ;;  %3800 = vmatprep.subr.bf16.mxu1 %v4928_v16  ;;  %v390_v14 = vld [vmem:[%s7090_s1 + $0xb98] sm:$0xff]  ;;  %v133_v56 = vld [vmem:[%s7090_s1 + $0x390] sm:$0xff] }
 0x110   :  { %v4995_v12 = vcombine.low %v358_v13, %v390_v14 }
 0x112   :  { %3760 = vmatpush1.bf16.msra.mxu0 %v4925_v21  ;;  %3801 = vmatpush1.bf16.msra.mxu1 %v4927_v22  ;;  %v4994_v21 = vcombine.high %v357_v9, %v389_v10 }
 0x113   :  { %3761 = vmatprep.subr.bf16.mxu0 %v4862_v23  ;;  %3802 = vmatprep.subr.bf16.mxu1 %v4864_v24  ;;  %v4996_v24 = vcombine.high %v358_v13, %v390_v14 }
 0x115   :  { %v5160_v36 = vpop.eup %5159 }
 0x116   :  { %v5162_v39 = vpop.eup %5161  ;;  %3762 = vmatpush1.bf16.msra.mxu0 %v4861_v31  ;;  %3803 = vmatpush1.bf16.msra.mxu1 %v4863_v32  ;;  %v294_v31 = vld [vmem:[%s7090_s1 + $0x898] sm:$0xff] }
 0x117   :  { %v5164_v41 = vpop.eup %5163  ;;  %3763 = vmatprep.subr.bf16.mxu0 %v4798_v33  ;;  %3804 = vmatprep.subr.bf16.mxu1 %v4800_v34  ;;  %v326_v32 = vld [vmem:[%s7090_s1 + $0x998] sm:$0xff]  ;;  %v4993_v34 = vcombine.low %v357_v9, %v389_v10 }
 0x118   :  { %v5166_v44 = vpop.eup %5165  ;;  %v4539_v45 = vcombine.low %v5160_v36, %v5164_v41  ;;  %v4930_v36 = vcombine.high %v293_v25, %v325_v26  ;;  %v4932_v38 = vcombine.high %v294_v31, %v326_v32  ;;  %v230_v41 = vld [vmem:[%s7090_s1 + $0x698] sm:$0xff] }
 0x119   :  { %v4540_v49 = vcombine.low %v5162_v39, %v5166_v44  ;;  %v229_v39 = vld [vmem:[%s7090_s1 + $0x690] sm:$0xff]  ;;  %v4931_v44 = vcombine.low %v294_v31, %v326_v32  ;;  %v70_v9 = vld [vmem:[%s7090_s1 + $0x198] sm:$0xff] }
 0x11a   :  { %4603 = vst [vmem:[%s7094_s4 + $0x10] sm:$0x77] %v4539_v45  ;;  %3764 = vmatpush1.bf16.msra.mxu0 %v4797_v40  ;;  %3805 = vmatpush1.bf16.msra.mxu1 %v4799_v42  ;;  %v261_v40 = vld [vmem:[%s7090_s1 + $0x790] sm:$0xff]  ;;  %v262_v42 = vld [vmem:[%s7090_s1 + $0x798] sm:$0xff] }
 0x11b   :  { %4604 = vst [vmem:[%s7094_s4 + $0x18] sm:$0x77] %v4540_v49  ;;  %3765 = vmatprep.subr.bf16.mxu0 %v4734_v43  ;;  %3806 = vmatprep.subr.bf16.mxu1 %v4736_v46  ;;  %v4929_v43 = vcombine.low %v293_v25, %v325_v26  ;;  %v4866_v45 = vcombine.high %v229_v39, %v261_v40  ;;  %v166_v49 = vld [vmem:[%s7090_s1 + $0x498] sm:$0xff]  ;;  %v424_v25 = vld [vmem:[%s7090_s1 + $0xca8] sm:$0xff] }
 0x11c   :  { %v4868_v46 = vcombine.high %v230_v41, %v262_v42  ;;  %v4865_v51 = vcombine.low %v229_v39, %v261_v40  ;;  %v456_v26 = vld [vmem:[%s7090_s1 + $0xda8] sm:$0xff] }
 0x11d   :  { %v5064_v32 = vcombine.high %v424_v25, %v456_v26 }
 0x11e   :  { %3766 = vmatpush1.bf16.msra.mxu0 %v4733_v52  ;;  %3807 = vmatpush1.bf16.msra.mxu1 %v4735_v53  ;;  %v4867_v52 = vcombine.low %v230_v41, %v262_v42  ;;  %v4802_v53 = vcombine.high %v165_v47, %v197_v48  ;;  %v5063_v42 = vcombine.low %v424_v25, %v456_v26  ;;  %v39_v26 = vld [vmem:[%s7090_s1 + $0xa0] sm:$0xff] }
 0x11f   :  { %3767 = vmatprep.subr.bf16.mxu0 %v4670_v54  ;;  %3808 = vmatprep.subr.bf16.mxu1 %v4672_v55  ;;  %v4804_v54 = vcombine.high %v166_v49, %v198_v50  ;;  %v101_v55 = vld [vmem:[%s7090_s1 + $0x290] sm:$0xff] }
 0x120   :  { %v4738_v0 = vcombine.high %v101_v55, %v133_v56  ;;  %v4737_v10 = vcombine.low %v101_v55, %v133_v56 }
 0x122   :  { %3768 = vmatpush1.bf16.msra.mxu0 %v4669_v60  ;;  %3809 = vmatpush1.bf16.msra.mxu1 %v4671_v61  ;;  %v4801_v61 = vcombine.low %v165_v47, %v197_v48  ;;  %v295_v47 = vld [vmem:[%s7090_s1 + $0x8a0] sm:$0xff] }
 0x123   :  { %3835 = vmatprep.subr.bf16.mxu0 %v5122_v62  ;;  %3876 = vmatprep.subr.bf16.mxu1 %v5124_v63  ;;  %v4803_v63 = vcombine.low %v166_v49, %v198_v50  ;;  %v296_v50 = vld [vmem:[%s7090_s1 + $0x8a8] sm:$0xff] }
 0x125   :  { %v3295_v11 = vpop.f32.mrf.mxu0  ;;  %3786 = vmatmul.mubr.bf16.vlgmr.msra.gmra.mxu0 %v5948_v29  ;;  %v3336_v16 = vpop.f32.mrf.mxu1  ;;  %3827 = vmatmul.mubr.bf16.vlgmr.msra.gmra.mxu1 %v5948_v29 }
 0x126   :  { %v3296_v15 = vadd.f32 %v3295_v11, %v6044_v27  ;;  %3836 = vmatpush1.bf16.msra.mxu0 %v5121_v5  ;;  %v3337_v18 = vadd.f32 %v3336_v16, %v6044_v27  ;;  %3877 = vmatpush1.bf16.msra.mxu1 %v5123_v6  ;;  %v37_v5 = vld [vmem:[%s7090_s1 + $0x90] sm:$0xff]  ;;  %v4739_v11 = vcombine.low %v102_v58, %v134_v59  ;;  %v519_v16 = vld [vmem:[%s7090_s1 + $0xfa0] sm:$0xff] }
 0x127   :  { %v3297_v19 = vpop.f32.mrf.mxu0  ;;  %3837 = vmatprep.subr.bf16.mxu0 %v5058_v7  ;;  %v3338_v23 = vpop.f32.mrf.mxu1  ;;  %3878 = vmatprep.subr.bf16.mxu1 %v5060_v8  ;;  %v69_v6 = vld [vmem:[%s7090_s1 + $0x190] sm:$0xff]  ;;  %v38_v8 = vld [vmem:[%s7090_s1 + $0x98] sm:$0xff]  ;;  %v231_v59 = vld [vmem:[%s7090_s1 + $0x6a0] sm:$0xff] }
 0x128   :  { %5167 = vtanh.f32 %v3296_v15  ;;  %v3298_v22 = vadd.f32 %v3297_v19, %v6044_v27  ;;  %3867 = vmatprep.mubr.bf16.mxu0 %v5282_v3  ;;  %v3339_v28 = vadd.f32 %v3338_v23, %v6044_v27  ;;  %3908 = vmatprep.mubr.bf16.mxu1 %v5282_v3  ;;  %v4674_v13 = vcombine.high %v37_v5, %v69_v6  ;;  %v487_v15 = vld [vmem:[%s7090_s1 + $0xea0] sm:$0xff] }
 0x129   :  { %5169 = vtanh.f32 %v3337_v18  ;;  %v3299_v30 = vpop.f32.mrf.mxu0  ;;  %v3340_v33 = vpop.f32.mrf.mxu1  ;;  %v4676_v14 = vcombine.high %v38_v8, %v70_v9  ;;  %v520_v18 = vld [vmem:[%s7090_s1 + $0xfa8] sm:$0xff]  ;;  %v4673_v19 = vcombine.low %v37_v5, %v69_v6  ;;  %v423_v23 = vld [vmem:[%s7090_s1 + $0xca0] sm:$0xff] }
 0x12a   :  { %5171 = vtanh.f32 %v3298_v22  ;;  %3838 = vmatpush1.bf16.msra.mxu0 %v5057_v17  ;;  %3879 = vmatpush1.bf16.msra.mxu1 %v5059_v20  ;;  %v488_v17 = vld [vmem:[%s7090_s1 + $0xea8] sm:$0xff]  ;;  %v4675_v20 = vcombine.low %v38_v8, %v70_v9  ;;  %v359_v33 = vld [vmem:[%s7090_s1 + $0xaa0] sm:$0xff] }
 0x12b   :  { %5173 = vtanh.f32 %v3339_v28  ;;  %v3300_v35 = vpop.f32.mrf.mxu0  ;;  %3839 = vmatprep.subr.bf16.mxu0 %v4994_v21  ;;  %v3341_v37 = vpop.f32.mrf.mxu1  ;;  %3880 = vmatprep.subr.bf16.mxu1 %v4996_v24  ;;  %v5126_v21 = vcombine.high %v487_v15, %v519_v16  ;;  %v5128_v22 = vcombine.high %v488_v17, %v520_v18  ;;  %v455_v24 = vld [vmem:[%s7090_s1 + $0xda0] sm:$0xff]  ;;  %v5125_v28 = vcombine.low %v487_v15, %v519_v16  ;;  %v168_v6 = vld [vmem:[%s7090_s1 + $0x4a8] sm:$0xff] }
 0x12c   :  { %v5127_v30 = vcombine.low %v488_v17, %v520_v18  ;;  %v5062_v31 = vcombine.high %v423_v23, %v455_v24  ;;  %v5061_v39 = vcombine.low %v423_v23, %v455_v24  ;;  %v199_v5 = vld [vmem:[%s7090_s1 + $0x5a0] sm:$0xff]  ;;  %v104_v16 = vld [vmem:[%s7090_s1 + $0x2a8] sm:$0xff] }
 0x12d   :  { %v136_v17 = vld [vmem:[%s7090_s1 + $0x3a8] sm:$0xff] }
 0x12e   :  { %3840 = vmatpush1.bf16.msra.mxu0 %v4993_v34  ;;  %3881 = vmatpush1.bf16.msra.mxu1 %v4995_v12  ;;  %v391_v34 = vld [vmem:[%s7090_s1 + $0xba0] sm:$0xff]  ;;  %v360_v12 = vld [vmem:[%s7090_s1 + $0xaa8] sm:$0xff]  ;;  %v4744_v25 = vcombine.high %v104_v16, %v136_v17 }
 0x12f   :  { %3841 = vmatprep.subr.bf16.mxu0 %v4930_v36  ;;  %3882 = vmatprep.subr.bf16.mxu1 %v4932_v38  ;;  %v392_v36 = vld [vmem:[%s7090_s1 + $0xba8] sm:$0xff] }
 0x130   :  { %v4999_v55 = vcombine.low %v360_v12, %v392_v36 }
 0x132   :  { %3842 = vmatpush1.bf16.msra.mxu0 %v4929_v43  ;;  %3883 = vmatpush1.bf16.msra.mxu1 %v4931_v44  ;;  %v4998_v43 = vcombine.high %v359_v33, %v391_v34 }
 0x133   :  { %3843 = vmatprep.subr.bf16.mxu0 %v4866_v45  ;;  %3884 = vmatprep.subr.bf16.mxu1 %v4868_v46  ;;  %v5000_v46 = vcombine.high %v360_v12, %v392_v36  ;;  %v489_v36 = vld [vmem:[%s7090_s1 + $0xeb0] sm:$0xff] }
 0x135   :  { %v5168_v57 = vpop.eup %5167 }
 0x136   :  { %v5170_v60 = vpop.eup %5169  ;;  %3844 = vmatpush1.bf16.msra.mxu0 %v4865_v51  ;;  %3885 = vmatpush1.bf16.msra.mxu1 %v4867_v52  ;;  %v328_v51 = vld [vmem:[%s7090_s1 + $0x9a8] sm:$0xff] }
 0x137   :  { %v5172_v62 = vpop.eup %5171  ;;  %3845 = vmatprep.subr.bf16.mxu0 %v4802_v53  ;;  %3886 = vmatprep.subr.bf16.mxu1 %v4804_v54  ;;  %v4997_v53 = vcombine.low %v359_v33, %v391_v34  ;;  %v4936_v58 = vcombine.high %v296_v50, %v328_v51  ;;  %v4743_v34 = vcombine.low %v104_v16, %v136_v17 }
 0x138   :  { %v5174_v1 = vpop.eup %5173  ;;  %v4541_v2 = vcombine.low %v5168_v57, %v5172_v62  ;;  %v264_v62 = vld [vmem:[%s7090_s1 + $0x7a8] sm:$0xff] }
 0x139   :  { %v4542_v7 = vcombine.low %v5170_v60, %v5174_v1  ;;  %v263_v60 = vld [vmem:[%s7090_s1 + $0x7a0] sm:$0xff] }
 0x13a   :  { %4605 = vst [vmem:[%s7094_s4 + $0x20] sm:$0x77] %v4541_v2  ;;  %3846 = vmatpush1.bf16.msra.mxu0 %v4801_v61  ;;  %3887 = vmatpush1.bf16.msra.mxu1 %v4803_v63  ;;  %v232_v61 = vld [vmem:[%s7090_s1 + $0x6a8] sm:$0xff]  ;;  %v4870_v1 = vcombine.high %v231_v59, %v263_v60  ;;  %v4869_v8 = vcombine.low %v231_v59, %v263_v60 }
 0x13b   :  { %4606 = vst [vmem:[%s7094_s4 + $0x28] sm:$0x77] %v4542_v7  ;;  %3847 = vmatprep.subr.bf16.mxu0 %v4738_v0  ;;  %3888 = vmatprep.subr.bf16.mxu1 %v4740_v4  ;;  %v4935_v0 = vcombine.low %v296_v50, %v328_v51  ;;  %v4872_v2 = vcombine.high %v232_v61, %v264_v62  ;;  %v167_v4 = vld [vmem:[%s7090_s1 + $0x4a0] sm:$0xff]  ;;  %v200_v7 = vld [vmem:[%s7090_s1 + $0x5a8] sm:$0xff]  ;;  %v361_v51 = vld [vmem:[%s7090_s1 + $0xab0] sm:$0xff] }
 0x13c   :  { %v4871_v9 = vcombine.low %v232_v61, %v264_v62 }
 0x13e   :  { %3848 = vmatpush1.bf16.msra.mxu0 %v4737_v10  ;;  %3889 = vmatpush1.bf16.msra.mxu1 %v4739_v11  ;;  %v4806_v10 = vcombine.high %v167_v4, %v199_v5  ;;  %v4808_v11 = vcombine.high %v168_v6, %v200_v7 }
 0x13f   :  { %3849 = vmatprep.subr.bf16.mxu0 %v4674_v13  ;;  %3890 = vmatprep.subr.bf16.mxu1 %v4676_v14  ;;  %v103_v13 = vld [vmem:[%s7090_s1 + $0x2a0] sm:$0xff] }
 0x140   :  { %v135_v14 = vld [vmem:[%s7090_s1 + $0x3a0] sm:$0xff] }
 0x141   :  { %v4741_v33 = vcombine.low %v103_v13, %v135_v14 }
 0x142   :  { %3850 = vmatpush1.bf16.msra.mxu0 %v4673_v19  ;;  %3891 = vmatpush1.bf16.msra.mxu1 %v4675_v20  ;;  %v4805_v19 = vcombine.low %v167_v4, %v199_v5  ;;  %v297_v4 = vld [vmem:[%s7090_s1 + $0x8b0] sm:$0xff] }
 0x143   :  { %3917 = vmatprep.subr.bf16.mxu0 %v5126_v21  ;;  %3958 = vmatprep.subr.bf16.mxu1 %v5128_v22  ;;  %v4807_v21 = vcombine.low %v168_v6, %v200_v7  ;;  %v4742_v22 = vcombine.high %v103_v13, %v135_v14  ;;  %v329_v5 = vld [vmem:[%s7090_s1 + $0x9b0] sm:$0xff] }
 0x145   :  { %v3377_v35 = vpop.f32.mrf.mxu0  ;;  %3868 = vmatmul.mubr.bf16.vlgmr.msra.gmra.mxu0 %v5948_v29  ;;  %v3418_v38 = vpop.f32.mrf.mxu1  ;;  %3909 = vmatmul.mubr.bf16.vlgmr.msra.gmra.mxu1 %v5948_v29  ;;  %v327_v29 = vld [vmem:[%s7090_s1 + $0x9a0] sm:$0xff] }
 0x146   :  { %v3378_v37 = vadd.f32 %v3377_v35, %v6044_v27  ;;  %3918 = vmatpush1.bf16.msra.mxu0 %v5125_v28  ;;  %v3419_v40 = vadd.f32 %v3418_v38, %v6044_v27  ;;  %3959 = vmatpush1.bf16.msra.mxu1 %v5127_v30  ;;  %v4934_v56 = vcombine.high %v295_v47, %v327_v29  ;;  %v71_v28 = vld [vmem:[%s7090_s1 + $0x1a0] sm:$0xff]  ;;  %v490_v38 = vld [vmem:[%s7090_s1 + $0xeb8] sm:$0xff] }
 0x147   :  { %v3379_v41 = vpop.f32.mrf.mxu0  ;;  %3919 = vmatprep.subr.bf16.mxu0 %v5062_v31  ;;  %v3420_v45 = vpop.f32.mrf.mxu1  ;;  %3960 = vmatprep.subr.bf16.mxu1 %v5064_v32  ;;  %v4933_v63 = vcombine.low %v295_v47, %v327_v29  ;;  %v40_v31 = vld [vmem:[%s7090_s1 + $0xa8] sm:$0xff]  ;;  %v4678_v35 = vcombine.high %v39_v26, %v71_v28  ;;  %v458_v47 = vld [vmem:[%s7090_s1 + $0xdb8] sm:$0xff] }
 0x148   :  { %5175 = vtanh.f32 %v3378_v37  ;;  %v3380_v44 = vadd.f32 %v3379_v41, %v6044_v27  ;;  %3949 = vmatprep.mubr.bf16.mxu0 %v5282_v3  ;;  %v3421_v48 = vadd.f32 %v3420_v45, %v6044_v27  ;;  %3990 = vmatprep.mubr.bf16.mxu1 %v5282_v3  ;;  %v72_v32 = vld [vmem:[%s7090_s1 + $0x1a8] sm:$0xff]  ;;  %v521_v37 = vld [vmem:[%s7090_s1 + $0xfb0] sm:$0xff] }
 0x149   :  { %5177 = vtanh.f32 %v3419_v40  ;;  %v3381_v49 = vpop.f32.mrf.mxu0  ;;  %v3422_v52 = vpop.f32.mrf.mxu1  ;;  %v4680_v12 = vcombine.high %v40_v31, %v72_v32  ;;  %v4677_v40 = vcombine.low %v39_v26, %v71_v28  ;;  %v4679_v41 = vcombine.low %v40_v31, %v72_v32  ;;  %v457_v45 = vld [vmem:[%s7090_s1 + $0xdb0] sm:$0xff]  ;;  %v202_v31 = vld [vmem:[%s7090_s1 + $0x5b8] sm:$0xff] }
 0x14a   :  { %5179 = vtanh.f32 %v3380_v44  ;;  %3920 = vmatpush1.bf16.msra.mxu0 %v5061_v39  ;;  %3961 = vmatpush1.bf16.msra.mxu1 %v5063_v42  ;;  %v522_v39 = vld [vmem:[%s7090_s1 + $0xfb8] sm:$0xff]  ;;  %v5130_v42 = vcombine.high %v489_v36, %v521_v37  ;;  %v425_v44 = vld [vmem:[%s7090_s1 + $0xcb0] sm:$0xff]  ;;  %v5129_v29 = vcombine.low %v489_v36, %v521_v37 }
 0x14b   :  { %5181 = vtanh.f32 %v3421_v48  ;;  %v3382_v54 = vpop.f32.mrf.mxu0  ;;  %3921 = vmatprep.subr.bf16.mxu0 %v4998_v43  ;;  %v3423_v57 = vpop.f32.mrf.mxu1  ;;  %3962 = vmatprep.subr.bf16.mxu1 %v5000_v46  ;;  %v5132_v43 = vcombine.high %v490_v38, %v522_v39  ;;  %v426_v46 = vld [vmem:[%s7090_s1 + $0xcb8] sm:$0xff]  ;;  %v5131_v48 = vcombine.low %v490_v38, %v522_v39  ;;  %v5066_v49 = vcombine.high %v425_v44, %v457_v45  ;;  %v393_v52 = vld [vmem:[%s7090_s1 + $0xbb0] sm:$0xff] }
 0x14c   :  { %v5068_v50 = vcombine.high %v426_v46, %v458_v47  ;;  %v6495_v54 = vld [vmem:[%s7092_s0] sm:$0x3]  ;;  %v5065_v59 = vcombine.low %v425_v44, %v457_v45  ;;  %v5067_v62 = vcombine.low %v426_v46, %v458_v47  ;;  %v169_v26 = vld [vmem:[%s7090_s1 + $0x4b0] sm:$0xff]  ;;  %v106_v38 = vld [vmem:[%s7090_s1 + $0x2b8] sm:$0xff] }
 0x14d   :  { %v201_v28 = vld [vmem:[%s7090_s1 + $0x5b0] sm:$0xff]  ;;  %v138_v39 = vld [vmem:[%s7090_s1 + $0x3b8] sm:$0xff] }
 0x14e   :  { %3922 = vmatpush1.bf16.msra.mxu0 %v4997_v53  ;;  %3963 = vmatpush1.bf16.msra.mxu1 %v4999_v55  ;;  %v362_v55 = vld [vmem:[%s7090_s1 + $0xab8] sm:$0xff]  ;;  %v137_v36 = vld [vmem:[%s7090_s1 + $0x3b0] sm:$0xff]  ;;  %v4748_v47 = vcombine.high %v106_v38, %v138_v39 }
 0x14f   :  { %3923 = vmatprep.subr.bf16.mxu0 %v4934_v56  ;;  %3964 = vmatprep.subr.bf16.mxu1 %v4936_v58  ;;  %v394_v56 = vld [vmem:[%s7090_s1 + $0xbb8] sm:$0xff] }
 0x150   :  { %v5003_v14 = vcombine.low %v362_v55, %v394_v56 }
 0x152   :  { %3924 = vmatpush1.bf16.msra.mxu0 %v4933_v63  ;;  %3965 = vmatpush1.bf16.msra.mxu1 %v4935_v0  ;;  %v5002_v63 = vcombine.high %v361_v51, %v393_v52 }
 0x153   :  { %3925 = vmatprep.subr.bf16.mxu0 %v4870_v1  ;;  %3966 = vmatprep.subr.bf16.mxu1 %v4872_v2  ;;  %v5004_v2 = vcombine.high %v362_v55, %v394_v56 }
 0x155   :  { %v5176_v15 = vpop.eup %5175 }
 0x156   :  { %v5178_v18 = vpop.eup %5177  ;;  %3926 = vmatpush1.bf16.msra.mxu0 %v4869_v8  ;;  %3967 = vmatpush1.bf16.msra.mxu1 %v4871_v9  ;;  %v298_v8 = vld [vmem:[%s7090_s1 + $0x8b8] sm:$0xff] }
 0x157   :  { %v5180_v20 = vpop.eup %5179  ;;  %3927 = vmatprep.subr.bf16.mxu0 %v4806_v10  ;;  %3968 = vmatprep.subr.bf16.mxu1 %v4808_v11  ;;  %v330_v9 = vld [vmem:[%s7090_s1 + $0x9b8] sm:$0xff]  ;;  %v5001_v11 = vcombine.low %v361_v51, %v393_v52 }
 0x158   :  { %v5182_v23 = vpop.eup %5181  ;;  %v4543_v24 = vcombine.low %v5176_v15, %v5180_v20  ;;  %v4938_v15 = vcombine.high %v297_v4, %v329_v5  ;;  %v4940_v17 = vcombine.high %v298_v8, %v330_v9  ;;  %v234_v20 = vld [vmem:[%s7090_s1 + $0x6b8] sm:$0xff] }
 0x159   :  { %v4544_v30 = vcombine.low %v5178_v18, %v5182_v23  ;;  %v233_v18 = vld [vmem:[%s7090_s1 + $0x6b0] sm:$0xff]  ;;  %v4939_v23 = vcombine.low %v298_v8, %v330_v9  ;;  %v74_v51 = vld [vmem:[%s7090_s1 + $0x1b8] sm:$0xff] }
 0x15a   :  { %4607 = vst [vmem:[%s7094_s4 + $0x30] sm:$0x77] %v4543_v24  ;;  %3928 = vmatpush1.bf16.msra.mxu0 %v4805_v19  ;;  %3969 = vmatpush1.bf16.msra.mxu1 %v4807_v21  ;;  %v265_v19 = vld [vmem:[%s7090_s1 + $0x7b0] sm:$0xff]  ;;  %v266_v21 = vld [vmem:[%s7090_s1 + $0x7b8] sm:$0xff] }
 0x15b   :  { %4608 = vst [vmem:[%s7094_s4 + $0x38] sm:$0x77] %v4544_v30  ;;  %3929 = vmatprep.subr.bf16.mxu0 %v4742_v22  ;;  %3970 = vmatprep.subr.bf16.mxu1 %v4744_v25  ;;  %v4937_v22 = vcombine.low %v297_v4, %v329_v5  ;;  %v4874_v24 = vcombine.high %v233_v18, %v265_v19  ;;  %v170_v30 = vld [vmem:[%s7090_s1 + $0x4b8] sm:$0xff]  ;;  %v428_v4 = vld [vmem:[%s7090_s1 + $0xcc8] sm:$0xff] }
 0x15c   :  { %v4876_v25 = vcombine.high %v234_v20, %v266_v21  ;;  %v4873_v32 = vcombine.low %v233_v18, %v265_v19  ;;  %v460_v5 = vld [vmem:[%s7090_s1 + $0xdc8] sm:$0xff] }
 0x15d   :  { %v5072_v9 = vcombine.high %v428_v4, %v460_v5 }
 0x15e   :  { %3930 = vmatpush1.bf16.msra.mxu0 %v4741_v33  ;;  %3971 = vmatpush1.bf16.msra.mxu1 %v4743_v34  ;;  %v4875_v33 = vcombine.low %v234_v20, %v266_v21  ;;  %v4810_v34 = vcombine.high %v169_v26, %v201_v28  ;;  %v5071_v21 = vcombine.low %v428_v4, %v460_v5 }
 0x15f   :  { %3931 = vmatprep.subr.bf16.mxu0 %v4678_v35  ;;  %3972 = vmatprep.subr.bf16.mxu1 %v4680_v12  ;;  %v4812_v35 = vcombine.high %v170_v30, %v202_v31  ;;  %v105_v12 = vld [vmem:[%s7090_s1 + $0x2b0] sm:$0xff] }
 0x160   :  { %v4746_v44 = vcombine.high %v105_v12, %v137_v36  ;;  %v4745_v52 = vcombine.low %v105_v12, %v137_v36 }
 0x162   :  { %3932 = vmatpush1.bf16.msra.mxu0 %v4677_v40  ;;  %3973 = vmatpush1.bf16.msra.mxu1 %v4679_v41  ;;  %v4809_v41 = vcombine.low %v169_v26, %v201_v28  ;;  %v299_v26 = vld [vmem:[%s7090_s1 + $0x8c0] sm:$0xff] }
 0x163   :  { %3999 = vmatprep.subr.bf16.mxu0 %v5130_v42  ;;  %4040 = vmatprep.subr.bf16.mxu1 %v5132_v43  ;;  %v4811_v43 = vcombine.low %v170_v30, %v202_v31  ;;  %v331_v28 = vld [vmem:[%s7090_s1 + $0x9c0] sm:$0xff] }
 0x165   :  { %v3459_v53 = vpop.f32.mrf.mxu0  ;;  %3950 = vmatmul.mubr.bf16.vlgmr.msra.gmra.mxu0 %v6495_v54  ;;  %v3500_v58 = vpop.f32.mrf.mxu1  ;;  %3991 = vmatmul.mubr.bf16.vlgmr.msra.gmra.mxu1 %v6495_v54 }
 0x166   :  { %v3460_v57 = vadd.f32 %v3459_v53, %v6044_v27  ;;  %4000 = vmatpush1.bf16.msra.mxu0 %v5129_v29  ;;  %v3501_v60 = vadd.f32 %v3500_v58, %v6044_v27  ;;  %4041 = vmatpush1.bf16.msra.mxu1 %v5131_v48  ;;  %v41_v29 = vld [vmem:[%s7090_s1 + $0xb0] sm:$0xff]  ;;  %v4747_v53 = vcombine.low %v106_v38, %v138_v39  ;;  %v523_v58 = vld [vmem:[%s7090_s1 + $0xfc0] sm:$0xff] }
 0x167   :  { %v3461_v61 = vpop.f32.mrf.mxu0  ;;  %4001 = vmatprep.subr.bf16.mxu0 %v5066_v49  ;;  %v3502_v1 = vpop.f32.mrf.mxu1  ;;  %4042 = vmatprep.subr.bf16.mxu1 %v5068_v50  ;;  %v73_v48 = vld [vmem:[%s7090_s1 + $0x1b0] sm:$0xff]  ;;  %v42_v50 = vld [vmem:[%s7090_s1 + $0xb8] sm:$0xff] }
 0x168   :  { %5183 = vtanh.f32 %v3460_v57  ;;  %v3462_v0 = vadd.f32 %v3461_v61, %v6044_v27  ;;  %4031 = vmatprep.mubr.bf16.mxu0 %v5282_v3  ;;  %v3503_v6 = vadd.f32 %v3502_v1, %v6044_v27  ;;  %4072 = vmatprep.mubr.bf16.mxu1 %v5282_v3  ;;  %v4682_v55 = vcombine.high %v41_v29, %v73_v48  ;;  %v491_v57 = vld [vmem:[%s7090_s1 + $0xec0] sm:$0xff] }
 0x169   :  { %5185 = vtanh.f32 %v3501_v60  ;;  %v3463_v7 = vpop.f32.mrf.mxu0  ;;  %v3504_v10 = vpop.f32.mrf.mxu1  ;;  %v4684_v56 = vcombine.high %v42_v50, %v74_v51  ;;  %v524_v60 = vld [vmem:[%s7090_s1 + $0xfc8] sm:$0xff]  ;;  %v4681_v61 = vcombine.low %v41_v29, %v73_v48  ;;  %v427_v1 = vld [vmem:[%s7090_s1 + $0xcc0] sm:$0xff] }
 0x16a   :  { %5187 = vtanh.f32 %v3462_v0  ;;  %4002 = vmatpush1.bf16.msra.mxu0 %v5065_v59  ;;  %4043 = vmatpush1.bf16.msra.mxu1 %v5067_v62  ;;  %v492_v59 = vld [vmem:[%s7090_s1 + $0xec8] sm:$0xff]  ;;  %v4683_v62 = vcombine.low %v42_v50, %v74_v51  ;;  %v363_v10 = vld [vmem:[%s7090_s1 + $0xac0] sm:$0xff] }
 0x16b   :  { %5189 = vtanh.f32 %v3503_v6  ;;  %v3464_v13 = vpop.f32.mrf.mxu0  ;;  %4003 = vmatprep.subr.bf16.mxu0 %v5002_v63  ;;  %v3505_v16 = vpop.f32.mrf.mxu1  ;;  %4044 = vmatprep.subr.bf16.mxu1 %v5004_v2  ;;  %v5134_v63 = vcombine.high %v491_v57, %v523_v58  ;;  %v5136_v0 = vcombine.high %v492_v59, %v524_v60  ;;  %v459_v2 = vld [vmem:[%s7090_s1 + $0xdc0] sm:$0xff]  ;;  %v5133_v6 = vcombine.low %v491_v57, %v523_v58  ;;  %v204_v50 = vld [vmem:[%s7090_s1 + $0x5c8] sm:$0xff] }
 0x16c   :  { %v5135_v7 = vcombine.low %v492_v59, %v524_v60  ;;  %v5070_v8 = vcombine.high %v427_v1, %v459_v2  ;;  %v5069_v18 = vcombine.low %v427_v1, %v459_v2  ;;  %v171_v29 = vld [vmem:[%s7090_s1 + $0x4c0] sm:$0xff]  ;;  %v108_v59 = vld [vmem:[%s7090_s1 + $0x2c8] sm:$0xff] }
 0x16d   :  { %v203_v48 = vld [vmem:[%s7090_s1 + $0x5c0] sm:$0xff]  ;;  %v140_v60 = vld [vmem:[%s7090_s1 + $0x3c8] sm:$0xff] }
 0x16e   :  { %4004 = vmatpush1.bf16.msra.mxu0 %v5001_v11  ;;  %4045 = vmatpush1.bf16.msra.mxu1 %v5003_v14  ;;  %v395_v11 = vld [vmem:[%s7090_s1 + $0xbc0] sm:$0xff]  ;;  %v364_v14 = vld [vmem:[%s7090_s1 + $0xac8] sm:$0xff]  ;;  %v4752_v5 = vcombine.high %v108_v59, %v140_v60 }
 0x16f   :  { %4005 = vmatprep.subr.bf16.mxu0 %v4938_v15  ;;  %4046 = vmatprep.subr.bf16.mxu1 %v4940_v17  ;;  %v396_v15 = vld [vmem:[%s7090_s1 + $0xbc8] sm:$0xff]  ;;  %v139_v57 = vld [vmem:[%s7090_s1 + $0x3c0] sm:$0xff] }
 0x170   :  { %v5007_v36 = vcombine.low %v364_v14, %v396_v15 }
 0x172   :  { %4006 = vmatpush1.bf16.msra.mxu0 %v4937_v22  ;;  %4047 = vmatpush1.bf16.msra.mxu1 %v4939_v23  ;;  %v5006_v22 = vcombine.high %v363_v10, %v395_v11 }
 0x173   :  { %4007 = vmatprep.subr.bf16.mxu0 %v4874_v24  ;;  %4048 = vmatprep.subr.bf16.mxu1 %v4876_v25  ;;  %v5008_v25 = vcombine.high %v364_v14, %v396_v15 }
 0x175   :  { %v5184_v37 = vpop.eup %5183 }
 0x176   :  { %v5186_v40 = vpop.eup %5185  ;;  %4008 = vmatpush1.bf16.msra.mxu0 %v4873_v32  ;;  %4049 = vmatpush1.bf16.msra.mxu1 %v4875_v33  ;;  %v300_v32 = vld [vmem:[%s7090_s1 + $0x8c8] sm:$0xff] }
 0x177   :  { %v5188_v42 = vpop.eup %5187  ;;  %4009 = vmatprep.subr.bf16.mxu0 %v4810_v34  ;;  %4050 = vmatprep.subr.bf16.mxu1 %v4812_v35  ;;  %v332_v33 = vld [vmem:[%s7090_s1 + $0x9c8] sm:$0xff]  ;;  %v5005_v35 = vcombine.low %v363_v10, %v395_v11 }
 0x178   :  { %v5190_v45 = vpop.eup %5189  ;;  %v4545_v46 = vcombine.low %v5184_v37, %v5188_v42  ;;  %v4942_v37 = vcombine.high %v299_v26, %v331_v28  ;;  %v4944_v39 = vcombine.high %v300_v32, %v332_v33  ;;  %v236_v42 = vld [vmem:[%s7090_s1 + $0x6c8] sm:$0xff] }
 0x179   :  { %v4546_v49 = vcombine.low %v5186_v40, %v5190_v45  ;;  %v235_v40 = vld [vmem:[%s7090_s1 + $0x6c0] sm:$0xff]  ;;  %v4943_v45 = vcombine.low %v300_v32, %v332_v33  ;;  %v76_v10 = vld [vmem:[%s7090_s1 + $0x1c8] sm:$0xff] }
 0x17a   :  { %4609 = vst [vmem:[%s7094_s4 + $0x40] sm:$0x77] %v4545_v46  ;;  %4010 = vmatpush1.bf16.msra.mxu0 %v4809_v41  ;;  %4051 = vmatpush1.bf16.msra.mxu1 %v4811_v43  ;;  %v267_v41 = vld [vmem:[%s7090_s1 + $0x7c0] sm:$0xff]  ;;  %v268_v43 = vld [vmem:[%s7090_s1 + $0x7c8] sm:$0xff] }
 0x17b   :  { %4610 = vst [vmem:[%s7094_s4 + $0x48] sm:$0x77] %v4546_v49  ;;  %4011 = vmatprep.subr.bf16.mxu0 %v4746_v44  ;;  %4052 = vmatprep.subr.bf16.mxu1 %v4748_v47  ;;  %v4941_v44 = vcombine.low %v299_v26, %v331_v28  ;;  %v4878_v46 = vcombine.high %v235_v40, %v267_v41  ;;  %v172_v49 = vld [vmem:[%s7090_s1 + $0x4c8] sm:$0xff]  ;;  %v430_v26 = vld [vmem:[%s7090_s1 + $0xcd8] sm:$0xff] }
 0x17c   :  { %v4880_v47 = vcombine.high %v236_v42, %v268_v43  ;;  %v4877_v51 = vcombine.low %v235_v40, %v267_v41  ;;  %v462_v28 = vld [vmem:[%s7090_s1 + $0xdd8] sm:$0xff] }
 0x17d   :  { %v5076_v33 = vcombine.high %v430_v26, %v462_v28 }
 0x17e   :  { %4012 = vmatpush1.bf16.msra.mxu0 %v4745_v52  ;;  %4053 = vmatpush1.bf16.msra.mxu1 %v4747_v53  ;;  %v4879_v52 = vcombine.low %v236_v42, %v268_v43  ;;  %v4814_v53 = vcombine.high %v171_v29, %v203_v48  ;;  %v5075_v43 = vcombine.low %v430_v26, %v462_v28 }
 0x17f   :  { %4013 = vmatprep.subr.bf16.mxu0 %v4682_v55  ;;  %4054 = vmatprep.subr.bf16.mxu1 %v4684_v56  ;;  %v4816_v55 = vcombine.high %v172_v49, %v204_v50  ;;  %v107_v56 = vld [vmem:[%s7090_s1 + $0x2c0] sm:$0xff] }
 0x180   :  { %v4750_v1 = vcombine.high %v107_v56, %v139_v57  ;;  %v4749_v11 = vcombine.low %v107_v56, %v139_v57 }
 0x182   :  { %4014 = vmatpush1.bf16.msra.mxu0 %v4681_v61  ;;  %4055 = vmatpush1.bf16.msra.mxu1 %v4683_v62  ;;  %v4813_v62 = vcombine.low %v171_v29, %v203_v48  ;;  %v301_v29 = vld [vmem:[%s7090_s1 + $0x8d0] sm:$0xff] }
 0x183   :  { %4081 = vmatprep.subr.bf16.mxu0 %v5134_v63  ;;  %4122 = vmatprep.subr.bf16.mxu1 %v5136_v0  ;;  %v4815_v0 = vcombine.low %v172_v49, %v204_v50  ;;  %v333_v48 = vld [vmem:[%s7090_s1 + $0x9d0] sm:$0xff] }
 0x185   :  { %v3541_v13 = vpop.f32.mrf.mxu0  ;;  %4032 = vmatmul.mubr.bf16.vlgmr.msra.gmra.mxu0 %v6495_v54  ;;  %v3582_v17 = vpop.f32.mrf.mxu1  ;;  %4073 = vmatmul.mubr.bf16.vlgmr.msra.gmra.mxu1 %v6495_v54 }
 0x186   :  { %v3542_v16 = vadd.f32 %v3541_v13, %v6044_v27  ;;  %4082 = vmatpush1.bf16.msra.mxu0 %v5133_v6  ;;  %v3583_v19 = vadd.f32 %v3582_v17, %v6044_v27  ;;  %4123 = vmatpush1.bf16.msra.mxu1 %v5135_v7  ;;  %v43_v6 = vld [vmem:[%s7090_s1 + $0xc0] sm:$0xff]  ;;  %v4751_v13 = vcombine.low %v108_v59, %v140_v60  ;;  %v525_v17 = vld [vmem:[%s7090_s1 + $0xfd0] sm:$0xff] }
 0x187   :  { %v3543_v20 = vpop.f32.mrf.mxu0  ;;  %4083 = vmatprep.subr.bf16.mxu0 %v5070_v8  ;;  %v3584_v24 = vpop.f32.mrf.mxu1  ;;  %4124 = vmatprep.subr.bf16.mxu1 %v5072_v9  ;;  %v75_v7 = vld [vmem:[%s7090_s1 + $0x1c0] sm:$0xff]  ;;  %v44_v9 = vld [vmem:[%s7090_s1 + $0xc8] sm:$0xff] }
 0x188   :  { %5191 = vtanh.f32 %v3542_v16  ;;  %v3544_v23 = vadd.f32 %v3543_v20, %v6044_v27  ;;  %4113 = vmatprep.mubr.bf16.mxu0 %v5282_v3  ;;  %v3585_v30 = vadd.f32 %v3584_v24, %v6044_v27  ;;  %4154 = vmatprep.mubr.bf16.mxu1 %v5282_v3  ;;  %v4686_v14 = vcombine.high %v43_v6, %v75_v7  ;;  %v493_v16 = vld [vmem:[%s7090_s1 + $0xed0] sm:$0xff] }
 0x189   :  { %5193 = vtanh.f32 %v3583_v19  ;;  %v3545_v31 = vpop.f32.mrf.mxu0  ;;  %v3586_v34 = vpop.f32.mrf.mxu1  ;;  %v4688_v15 = vcombine.high %v44_v9, %v76_v10  ;;  %v526_v19 = vld [vmem:[%s7090_s1 + $0xfd8] sm:$0xff]  ;;  %v4685_v20 = vcombine.low %v43_v6, %v75_v7  ;;  %v429_v24 = vld [vmem:[%s7090_s1 + $0xcd0] sm:$0xff] }
 0x18a   :  { %5195 = vtanh.f32 %v3544_v23  ;;  %4084 = vmatpush1.bf16.msra.mxu0 %v5069_v18  ;;  %4125 = vmatpush1.bf16.msra.mxu1 %v5071_v21  ;;  %v494_v18 = vld [vmem:[%s7090_s1 + $0xed8] sm:$0xff]  ;;  %v4687_v21 = vcombine.low %v44_v9, %v76_v10  ;;  %v365_v34 = vld [vmem:[%s7090_s1 + $0xad0] sm:$0xff] }
 0x18b   :  { %5197 = vtanh.f32 %v3585_v30  ;;  %v3546_v12 = vpop.f32.mrf.mxu0  ;;  %4085 = vmatprep.subr.bf16.mxu0 %v5006_v22  ;;  %v3587_v38 = vpop.f32.mrf.mxu1  ;;  %4126 = vmatprep.subr.bf16.mxu1 %v5008_v25  ;;  %v5138_v22 = vcombine.high %v493_v16, %v525_v17  ;;  %v5140_v23 = vcombine.high %v494_v18, %v526_v19  ;;  %v461_v25 = vld [vmem:[%s7090_s1 + $0xdd0] sm:$0xff]  ;;  %v5137_v30 = vcombine.low %v493_v16, %v525_v17  ;;  %v206_v9 = vld [vmem:[%s7090_s1 + $0x5d8] sm:$0xff] }
 0x18c   :  { %v5139_v31 = vcombine.low %v494_v18, %v526_v19  ;;  %v5074_v32 = vcombine.high %v429_v24, %v461_v25  ;;  %v5073_v40 = vcombine.low %v429_v24, %v461_v25  ;;  %v173_v6 = vld [vmem:[%s7090_s1 + $0x4d0] sm:$0xff]  ;;  %v110_v18 = vld [vmem:[%s7090_s1 + $0x2d8] sm:$0xff] }
 0x18d   :  { %v205_v7 = vld [vmem:[%s7090_s1 + $0x5d0] sm:$0xff]  ;;  %v142_v19 = vld [vmem:[%s7090_s1 + $0x3d8] sm:$0xff] }
 0x18e   :  { %4086 = vmatpush1.bf16.msra.mxu0 %v5005_v35  ;;  %4127 = vmatpush1.bf16.msra.mxu1 %v5007_v36  ;;  %v397_v35 = vld [vmem:[%s7090_s1 + $0xbd0] sm:$0xff]  ;;  %v366_v36 = vld [vmem:[%s7090_s1 + $0xad8] sm:$0xff]  ;;  %v4756_v28 = vcombine.high %v110_v18, %v142_v19 }
 0x18f   :  { %4087 = vmatprep.subr.bf16.mxu0 %v4942_v37  ;;  %4128 = vmatprep.subr.bf16.mxu1 %v4944_v39  ;;  %v398_v37 = vld [vmem:[%s7090_s1 + $0xbd8] sm:$0xff]  ;;  %v141_v16 = vld [vmem:[%s7090_s1 + $0x3d0] sm:$0xff] }
 0x190   :  { %v5011_v57 = vcombine.low %v366_v36, %v398_v37 }
 0x192   :  { %4088 = vmatpush1.bf16.msra.mxu0 %v4941_v44  ;;  %4129 = vmatpush1.bf16.msra.mxu1 %v4943_v45  ;;  %v5010_v44 = vcombine.high %v365_v34, %v397_v35 }
 0x193   :  { %4089 = vmatprep.subr.bf16.mxu0 %v4878_v46  ;;  %4130 = vmatprep.subr.bf16.mxu1 %v4880_v47  ;;  %v5012_v47 = vcombine.high %v366_v36, %v398_v37 }
 0x195   :  { %v5192_v58 = vpop.eup %5191 }
 0x196   :  { %v5194_v61 = vpop.eup %5193  ;;  %4090 = vmatpush1.bf16.msra.mxu0 %v4877_v51  ;;  %4131 = vmatpush1.bf16.msra.mxu1 %v4879_v52  ;;  %v302_v51 = vld [vmem:[%s7090_s1 + $0x8d8] sm:$0xff] }
 0x197   :  { %v5196_v63 = vpop.eup %5195  ;;  %4091 = vmatprep.subr.bf16.mxu0 %v4814_v53  ;;  %4132 = vmatprep.subr.bf16.mxu1 %v4816_v55  ;;  %v334_v52 = vld [vmem:[%s7090_s1 + $0x9d8] sm:$0xff]  ;;  %v5009_v55 = vcombine.low %v365_v34, %v397_v35 }
 0x198   :  { %v5198_v2 = vpop.eup %5197  ;;  %v4547_v4 = vcombine.low %v5192_v58, %v5196_v63  ;;  %v4946_v58 = vcombine.high %v301_v29, %v333_v48  ;;  %v4948_v60 = vcombine.high %v302_v51, %v334_v52  ;;  %v238_v63 = vld [vmem:[%s7090_s1 + $0x6d8] sm:$0xff] }
 0x199   :  { %v4548_v8 = vcombine.low %v5194_v61, %v5198_v2  ;;  %v237_v61 = vld [vmem:[%s7090_s1 + $0x6d0] sm:$0xff]  ;;  %v4947_v2 = vcombine.low %v302_v51, %v334_v52  ;;  %v78_v34 = vld [vmem:[%s7090_s1 + $0x1d8] sm:$0xff] }
 0x19a   :  { %4611 = vst [vmem:[%s7094_s4 + $0x50] sm:$0x77] %v4547_v4  ;;  %4092 = vmatpush1.bf16.msra.mxu0 %v4813_v62  ;;  %4133 = vmatpush1.bf16.msra.mxu1 %v4815_v0  ;;  %v269_v62 = vld [vmem:[%s7090_s1 + $0x7d0] sm:$0xff]  ;;  %v270_v0 = vld [vmem:[%s7090_s1 + $0x7d8] sm:$0xff] }
 0x19b   :  { %4612 = vst [vmem:[%s7094_s4 + $0x58] sm:$0x77] %v4548_v8  ;;  %4093 = vmatprep.subr.bf16.mxu0 %v4750_v1  ;;  %4134 = vmatprep.subr.bf16.mxu1 %v4752_v5  ;;  %v4945_v1 = vcombine.low %v301_v29, %v333_v48  ;;  %v4882_v4 = vcombine.high %v237_v61, %v269_v62  ;;  %v174_v8 = vld [vmem:[%s7090_s1 + $0x4d8] sm:$0xff]  ;;  %v432_v29 = vld [vmem:[%s7090_s1 + $0xce8] sm:$0xff] }
 0x19c   :  { %v4884_v5 = vcombine.high %v238_v63, %v270_v0  ;;  %v4881_v10 = vcombine.low %v237_v61, %v269_v62  ;;  %v464_v48 = vld [vmem:[%s7090_s1 + $0xde8] sm:$0xff] }
 0x19d   :  { %v5080_v52 = vcombine.high %v432_v29, %v464_v48 }
 0x19e   :  { %4094 = vmatpush1.bf16.msra.mxu0 %v4749_v11  ;;  %4135 = vmatpush1.bf16.msra.mxu1 %v4751_v13  ;;  %v4883_v11 = vcombine.low %v238_v63, %v270_v0  ;;  %v4818_v13 = vcombine.high %v173_v6, %v205_v7  ;;  %v5079_v0 = vcombine.low %v432_v29, %v464_v48 }
 0x19f   :  { %4095 = vmatprep.subr.bf16.mxu0 %v4686_v14  ;;  %4136 = vmatprep.subr.bf16.mxu1 %v4688_v15  ;;  %v4820_v14 = vcombine.high %v174_v8, %v206_v9  ;;  %v109_v15 = vld [vmem:[%s7090_s1 + $0x2d0] sm:$0xff] }
 0x1a0   :  { %v4754_v24 = vcombine.high %v109_v15, %v141_v16  ;;  %v4753_v35 = vcombine.low %v109_v15, %v141_v16 }
 0x1a2   :  { %4096 = vmatpush1.bf16.msra.mxu0 %v4685_v20  ;;  %4137 = vmatpush1.bf16.msra.mxu1 %v4687_v21  ;;  %v4817_v21 = vcombine.low %v173_v6, %v205_v7  ;;  %v303_v6 = vld [vmem:[%s7090_s1 + $0x8e0] sm:$0xff] }
 0x1a3   :  { %4163 = vmatprep.subr.bf16.mxu0 %v5138_v22  ;;  %4204 = vmatprep.subr.bf16.mxu1 %v5140_v23  ;;  %v4819_v23 = vcombine.low %v174_v8, %v206_v9  ;;  %v335_v7 = vld [vmem:[%s7090_s1 + $0x9e0] sm:$0xff] }
 0x1a5   :  { %v3623_v12 = vpop.f32.mrf.mxu0  ;;  %4114 = vmatmul.mubr.bf16.vlgmr.msra.gmra.mxu0 %v6495_v54  ;;  %v3664_v39 = vpop.f32.mrf.mxu1  ;;  %4155 = vmatmul.mubr.bf16.vlgmr.msra.gmra.mxu1 %v6495_v54 }
 0x1a6   :  { %v3624_v38 = vadd.f32 %v3623_v12, %v6044_v27  ;;  %4164 = vmatpush1.bf16.msra.mxu0 %v5137_v30  ;;  %v3665_v41 = vadd.f32 %v3664_v39, %v6044_v27  ;;  %4205 = vmatpush1.bf16.msra.mxu1 %v5139_v31  ;;  %v45_v30 = vld [vmem:[%s7090_s1 + $0xd0] sm:$0xff]  ;;  %v4755_v12 = vcombine.low %v110_v18, %v142_v19  ;;  %v527_v39 = vld [vmem:[%s7090_s1 + $0xfe0] sm:$0xff] }
 0x1a7   :  { %v3625_v42 = vpop.f32.mrf.mxu0  ;;  %4165 = vmatprep.subr.bf16.mxu0 %v5074_v32  ;;  %v3666_v46 = vpop.f32.mrf.mxu1  ;;  %4206 = vmatprep.subr.bf16.mxu1 %v5076_v33  ;;  %v77_v31 = vld [vmem:[%s7090_s1 + $0x1d0] sm:$0xff]  ;;  %v46_v33 = vld [vmem:[%s7090_s1 + $0xd8] sm:$0xff] }
 0x1a8   :  { %5199 = vtanh.f32 %v3624_v38  ;;  %v3626_v45 = vadd.f32 %v3625_v42, %v6044_v27  ;;  %4195 = vmatprep.mubr.bf16.mxu0 %v5282_v3  ;;  %v3667_v49 = vadd.f32 %v3666_v46, %v6044_v27  ;;  %4236 = vmatprep.mubr.bf16.mxu1 %v5282_v3  ;;  %v4690_v36 = vcombine.high %v45_v30, %v77_v31  ;;  %v495_v38 = vld [vmem:[%s7090_s1 + $0xee0] sm:$0xff] }
 0x1a9   :  { %5201 = vtanh.f32 %v3665_v41  ;;  %v3627_v50 = vpop.f32.mrf.mxu0  ;;  %v3668_v53 = vpop.f32.mrf.mxu1  ;;  %v4692_v37 = vcombine.high %v46_v33, %v78_v34  ;;  %v528_v41 = vld [vmem:[%s7090_s1 + $0xfe8] sm:$0xff]  ;;  %v4689_v42 = vcombine.low %v45_v30, %v77_v31  ;;  %v431_v46 = vld [vmem:[%s7090_s1 + $0xce0] sm:$0xff] }
 0x1aa   :  { %5203 = vtanh.f32 %v3626_v45  ;;  %4166 = vmatpush1.bf16.msra.mxu0 %v5073_v40  ;;  %4207 = vmatpush1.bf16.msra.mxu1 %v5075_v43  ;;  %v496_v40 = vld [vmem:[%s7090_s1 + $0xee8] sm:$0xff]  ;;  %v4691_v43 = vcombine.low %v46_v33, %v78_v34  ;;  %v367_v53 = vld [vmem:[%s7090_s1 + $0xae0] sm:$0xff] }
 0x1ab   :  { %5205 = vtanh.f32 %v3667_v49  ;;  %v3628_v56 = vpop.f32.mrf.mxu0  ;;  %4167 = vmatprep.subr.bf16.mxu0 %v5010_v44  ;;  %v3669_v59 = vpop.f32.mrf.mxu1  ;;  %4208 = vmatprep.subr.bf16.mxu1 %v5012_v47  ;;  %v5142_v44 = vcombine.high %v495_v38, %v527_v39  ;;  %v5144_v45 = vcombine.high %v496_v40, %v528_v41  ;;  %v463_v47 = vld [vmem:[%s7090_s1 + $0xde0] sm:$0xff]  ;;  %v5141_v49 = vcombine.low %v495_v38, %v527_v39  ;;  %v208_v33 = vld [vmem:[%s7090_s1 + $0x5e8] sm:$0xff] }
 0x1ac   :  { %v5143_v50 = vcombine.low %v496_v40, %v528_v41  ;;  %v5078_v51 = vcombine.high %v431_v46, %v463_v47  ;;  %v5077_v61 = vcombine.low %v431_v46, %v463_v47  ;;  %v175_v30 = vld [vmem:[%s7090_s1 + $0x4e0] sm:$0xff]  ;;  %v112_v40 = vld [vmem:[%s7090_s1 + $0x2e8] sm:$0xff] }
 0x1ad   :  { %v207_v31 = vld [vmem:[%s7090_s1 + $0x5e0] sm:$0xff]  ;;  %v144_v41 = vld [vmem:[%s7090_s1 + $0x3e8] sm:$0xff] }
 0x1ae   :  { %4168 = vmatpush1.bf16.msra.mxu0 %v5009_v55  ;;  %4209 = vmatpush1.bf16.msra.mxu1 %v5011_v57  ;;  %v399_v55 = vld [vmem:[%s7090_s1 + $0xbe0] sm:$0xff]  ;;  %v368_v57 = vld [vmem:[%s7090_s1 + $0xae8] sm:$0xff]  ;;  %v4760_v48 = vcombine.high %v112_v40, %v144_v41 }
 0x1af   :  { %4169 = vmatprep.subr.bf16.mxu0 %v4946_v58  ;;  %4210 = vmatprep.subr.bf16.mxu1 %v4948_v60  ;;  %v400_v58 = vld [vmem:[%s7090_s1 + $0xbe8] sm:$0xff]  ;;  %v143_v38 = vld [vmem:[%s7090_s1 + $0x3e0] sm:$0xff] }
 0x1b0   :  { %v5015_v16 = vcombine.low %v368_v57, %v400_v58 }
 0x1b2   :  { %4170 = vmatpush1.bf16.msra.mxu0 %v4945_v1  ;;  %4211 = vmatpush1.bf16.msra.mxu1 %v4947_v2  ;;  %v5014_v1 = vcombine.high %v367_v53, %v399_v55 }
 0x1b3   :  { %4171 = vmatprep.subr.bf16.mxu0 %v4882_v4  ;;  %4212 = vmatprep.subr.bf16.mxu1 %v4884_v5  ;;  %v5016_v5 = vcombine.high %v368_v57, %v400_v58 }
 0x1b5   :  { %v5200_v17 = vpop.eup %5199 }
 0x1b6   :  { %v5202_v20 = vpop.eup %5201  ;;  %4172 = vmatpush1.bf16.msra.mxu0 %v4881_v10  ;;  %4213 = vmatpush1.bf16.msra.mxu1 %v4883_v11  ;;  %v304_v10 = vld [vmem:[%s7090_s1 + $0x8e8] sm:$0xff] }
 0x1b7   :  { %v5204_v22 = vpop.eup %5203  ;;  %4173 = vmatprep.subr.bf16.mxu0 %v4818_v13  ;;  %4214 = vmatprep.subr.bf16.mxu1 %v4820_v14  ;;  %v336_v11 = vld [vmem:[%s7090_s1 + $0x9e8] sm:$0xff]  ;;  %v5013_v14 = vcombine.low %v367_v53, %v399_v55 }
 0x1b8   :  { %v5206_v25 = vpop.eup %5205  ;;  %v4549_v26 = vcombine.low %v5200_v17, %v5204_v22  ;;  %v4950_v17 = vcombine.high %v303_v6, %v335_v7  ;;  %v4952_v19 = vcombine.high %v304_v10, %v336_v11  ;;  %v240_v22 = vld [vmem:[%s7090_s1 + $0x6e8] sm:$0xff] }
 0x1b9   :  { %v4550_v32 = vcombine.low %v5202_v20, %v5206_v25  ;;  %v239_v20 = vld [vmem:[%s7090_s1 + $0x6e0] sm:$0xff]  ;;  %v4951_v25 = vcombine.low %v304_v10, %v336_v11  ;;  %v80_v53 = vld [vmem:[%s7090_s1 + $0x1e8] sm:$0xff] }
 0x1ba   :  { %4613 = vst [vmem:[%s7094_s4 + $0x60] sm:$0x77] %v4549_v26  ;;  %4174 = vmatpush1.bf16.msra.mxu0 %v4817_v21  ;;  %4215 = vmatpush1.bf16.msra.mxu1 %v4819_v23  ;;  %v271_v21 = vld [vmem:[%s7090_s1 + $0x7e0] sm:$0xff]  ;;  %v272_v23 = vld [vmem:[%s7090_s1 + $0x7e8] sm:$0xff] }
 0x1bb   :  { %4614 = vst [vmem:[%s7094_s4 + $0x68] sm:$0x77] %v4550_v32  ;;  %4175 = vmatprep.subr.bf16.mxu0 %v4754_v24  ;;  %4216 = vmatprep.subr.bf16.mxu1 %v4756_v28  ;;  %v4949_v24 = vcombine.low %v303_v6, %v335_v7  ;;  %v4886_v26 = vcombine.high %v239_v20, %v271_v21  ;;  %v176_v32 = vld [vmem:[%s7090_s1 + $0x4e8] sm:$0xff]  ;;  %v434_v6 = vld [vmem:[%s7090_s1 + $0xcf8] sm:$0xff] }
 0x1bc   :  { %v4888_v28 = vcombine.high %v240_v22, %v272_v23  ;;  %v4885_v34 = vcombine.low %v239_v20, %v271_v21  ;;  %v466_v7 = vld [vmem:[%s7090_s1 + $0xdf8] sm:$0xff] }
 0x1bd   :  { %v5084_v11 = vcombine.high %v434_v6, %v466_v7 }
 0x1be   :  { %4176 = vmatpush1.bf16.msra.mxu0 %v4753_v35  ;;  %4217 = vmatpush1.bf16.msra.mxu1 %v4755_v12  ;;  %v4887_v35 = vcombine.low %v240_v22, %v272_v23  ;;  %v4822_v12 = vcombine.high %v175_v30, %v207_v31  ;;  %v5083_v23 = vcombine.low %v434_v6, %v466_v7  ;;  %v49_v6 = vld [vmem:[%s7090_s1 + $0xf0] sm:$0xff] }
 0x1bf   :  { %4177 = vmatprep.subr.bf16.mxu0 %v4690_v36  ;;  %4218 = vmatprep.subr.bf16.mxu1 %v4692_v37  ;;  %v4824_v36 = vcombine.high %v176_v32, %v208_v33  ;;  %v111_v37 = vld [vmem:[%s7090_s1 + $0x2e0] sm:$0xff]  ;;  %v81_v7 = vld [vmem:[%s7090_s1 + $0x1f0] sm:$0xff] }
 0x1c0   :  { %v4758_v46 = vcombine.high %v111_v37, %v143_v38  ;;  %v4757_v55 = vcombine.low %v111_v37, %v143_v38 }
 0x1c2   :  { %4178 = vmatpush1.bf16.msra.mxu0 %v4689_v42  ;;  %4219 = vmatpush1.bf16.msra.mxu1 %v4691_v43  ;;  %v4821_v43 = vcombine.low %v175_v30, %v207_v31  ;;  %v305_v30 = vld [vmem:[%s7090_s1 + $0x8f0] sm:$0xff] }
 0x1c3   :  { %4245 = vmatprep.subr.bf16.mxu0 %v5142_v44  ;;  %4286 = vmatprep.subr.bf16.mxu1 %v5144_v45  ;;  %v4823_v45 = vcombine.low %v176_v32, %v208_v33  ;;  %v306_v33 = vld [vmem:[%s7090_s1 + $0x8f8] sm:$0xff] }
 0x1c5   :  { %v3705_v56 = vpop.f32.mrf.mxu0  ;;  %4196 = vmatmul.mubr.bf16.vlgmr.msra.gmra.mxu0 %v6495_v54  ;;  %v3746_v60 = vpop.f32.mrf.mxu1  ;;  %4237 = vmatmul.mubr.bf16.vlgmr.msra.gmra.mxu1 %v6495_v54 }
 0x1c6   :  { %v3706_v59 = vadd.f32 %v3705_v56, %v6044_v27  ;;  %4246 = vmatpush1.bf16.msra.mxu0 %v5141_v49  ;;  %v3747_v62 = vadd.f32 %v3746_v60, %v6044_v27  ;;  %4287 = vmatpush1.bf16.msra.mxu1 %v5143_v50  ;;  %v47_v49 = vld [vmem:[%s7090_s1 + $0xe0] sm:$0xff]  ;;  %v4759_v56 = vcombine.low %v112_v40, %v144_v41  ;;  %v529_v60 = vld [vmem:[%s7090_s1 + $0xff0] sm:$0xff] }
 0x1c7   :  { %v3707_v63 = vpop.f32.mrf.mxu0  ;;  %4247 = vmatprep.subr.bf16.mxu0 %v5078_v51  ;;  %v3748_v4 = vpop.f32.mrf.mxu1  ;;  %4288 = vmatprep.subr.bf16.mxu1 %v5080_v52  ;;  %v79_v50 = vld [vmem:[%s7090_s1 + $0x1e0] sm:$0xff]  ;;  %v48_v52 = vld [vmem:[%s7090_s1 + $0xe8] sm:$0xff]  ;;  %v241_v41 = vld [vmem:[%s7090_s1 + $0x6f0] sm:$0xff] }
 0x1c8   :  { %5207 = vtanh.f32 %v3706_v59  ;;  %v3708_v2 = vadd.f32 %v3707_v63, %v6044_v27  ;;  %4277 = vmatprep.mubr.bf16.mxu0 %v5282_v3  ;;  %v3749_v8 = vadd.f32 %v3748_v4, %v6044_v27  ;;  %4318 = vmatprep.mubr.bf16.mxu1 %v5282_v3  ;;  %v4694_v57 = vcombine.high %v47_v49, %v79_v50  ;;  %v497_v59 = vld [vmem:[%s7090_s1 + $0xef0] sm:$0xff] }
 0x1c9   :  { %5209 = vtanh.f32 %v3747_v62  ;;  %v3709_v9 = vpop.f32.mrf.mxu0  ;;  %v3750_v13 = vpop.f32.mrf.mxu1  ;;  %v4696_v58 = vcombine.high %v48_v52, %v80_v53  ;;  %v530_v62 = vld [vmem:[%s7090_s1 + $0xff8] sm:$0xff]  ;;  %v4693_v63 = vcombine.low %v47_v49, %v79_v50  ;;  %v433_v4 = vld [vmem:[%s7090_s1 + $0xcf0] sm:$0xff] }
 0x1ca   :  { %5211 = vtanh.f32 %v3708_v2  ;;  %4248 = vmatpush1.bf16.msra.mxu0 %v5077_v61  ;;  %4289 = vmatpush1.bf16.msra.mxu1 %v5079_v0  ;;  %v498_v61 = vld [vmem:[%s7090_s1 + $0xef8] sm:$0xff]  ;;  %v4695_v0 = vcombine.low %v48_v52, %v80_v53  ;;  %v369_v13 = vld [vmem:[%s7090_s1 + $0xaf0] sm:$0xff] }
 0x1cb   :  { %5213 = vtanh.f32 %v3749_v8  ;;  %v3710_v15 = vpop.f32.mrf.mxu0  ;;  %4249 = vmatprep.subr.bf16.mxu0 %v5014_v1  ;;  %v3751_v18 = vpop.f32.mrf.mxu1  ;;  %4290 = vmatprep.subr.bf16.mxu1 %v5016_v5  ;;  %v5146_v1 = vcombine.high %v497_v59, %v529_v60  ;;  %v5148_v2 = vcombine.high %v498_v61, %v530_v62  ;;  %v465_v5 = vld [vmem:[%s7090_s1 + $0xdf0] sm:$0xff]  ;;  %v5145_v8 = vcombine.low %v497_v59, %v529_v60  ;;  %v178_v49 = vld [vmem:[%s7090_s1 + $0x4f8] sm:$0xff] }
 0x1cc   :  { %v5147_v9 = vcombine.low %v498_v61, %v530_v62  ;;  %v5082_v10 = vcombine.high %v433_v4, %v465_v5  ;;  %v5081_v20 = vcombine.low %v433_v4, %v465_v5  ;;  %v210_v50 = vld [vmem:[%s7090_s1 + $0x5f8] sm:$0xff] }
 0x1cd   :  { %v114_v59 = vld [vmem:[%s7090_s1 + $0x2f8] sm:$0xff] }
 0x1ce   :  { %4250 = vmatpush1.bf16.msra.mxu0 %v5013_v14  ;;  %4291 = vmatpush1.bf16.msra.mxu1 %v5015_v16  ;;  %v401_v14 = vld [vmem:[%s7090_s1 + $0xbf0] sm:$0xff]  ;;  %v370_v16 = vld [vmem:[%s7090_s1 + $0xaf8] sm:$0xff] }
 0x1cf   :  { %4251 = vmatprep.subr.bf16.mxu0 %v4950_v17  ;;  %4292 = vmatprep.subr.bf16.mxu1 %v4952_v19  ;;  %v402_v17 = vld [vmem:[%s7090_s1 + $0xbf8] sm:$0xff] }
 0x1d0   :  { %v5019_v37 = vcombine.low %v370_v16, %v402_v17  ;;  %v146_v60 = vld [vmem:[%s7090_s1 + $0x3f8] sm:$0xff] }
 0x1d1   :  { %v4764_v5 = vcombine.high %v114_v59, %v146_v60 }
 0x1d2   :  { %4252 = vmatpush1.bf16.msra.mxu0 %v4949_v24  ;;  %4293 = vmatpush1.bf16.msra.mxu1 %v4951_v25  ;;  %v5018_v24 = vcombine.high %v369_v13, %v401_v14 }
 0x1d3   :  { %4253 = vmatprep.subr.bf16.mxu0 %v4886_v26  ;;  %4294 = vmatprep.subr.bf16.mxu1 %v4888_v28  ;;  %v5020_v28 = vcombine.high %v370_v16, %v402_v17  ;;  %v4697_v16 = vcombine.low %v49_v6, %v81_v7 }
 0x1d5   :  { %v5208_v39 = vpop.eup %5207 }
 0x1d6   :  { %v5210_v42 = vpop.eup %5209  ;;  %4254 = vmatpush1.bf16.msra.mxu0 %v4885_v34  ;;  %4295 = vmatpush1.bf16.msra.mxu1 %v4887_v35  ;;  %v338_v34 = vld [vmem:[%s7090_s1 + $0x9f8] sm:$0xff] }
 0x1d7   :  { %v5212_v44 = vpop.eup %5211  ;;  %4255 = vmatprep.subr.bf16.mxu0 %v4822_v12  ;;  %4296 = vmatprep.subr.bf16.mxu1 %v4824_v36  ;;  %v5017_v12 = vcombine.low %v369_v13, %v401_v14  ;;  %v4956_v40 = vcombine.high %v306_v33, %v338_v34  ;;  %v4763_v13 = vcombine.low %v114_v59, %v146_v60 }
 0x1d8   :  { %v5214_v47 = vpop.eup %5213  ;;  %v4551_v29 = vcombine.low %v5208_v39, %v5212_v44  ;;  %v4698_v14 = vcombine.high %v49_v6, %v81_v7 }
 0x1d9   :  { %v4552_v51 = vcombine.low %v5210_v42, %v5214_v47  ;;  %v242_v42 = vld [vmem:[%s7090_s1 + $0x6f8] sm:$0xff] }
 0x1da   :  { %4615 = vst [vmem:[%s7094_s4 + $0x70] sm:$0x77] %v4551_v29  ;;  %4256 = vmatpush1.bf16.msra.mxu0 %v4821_v43  ;;  %4297 = vmatpush1.bf16.msra.mxu1 %v4823_v45  ;;  %v274_v43 = vld [vmem:[%s7090_s1 + $0x7f8] sm:$0xff]  ;;  %v4955_v45 = vcombine.low %v306_v33, %v338_v34  ;;  %v177_v29 = vld [vmem:[%s7090_s1 + $0x4f0] sm:$0xff] }
 0x1db   :  { %4616 = vst [vmem:[%s7094_s4 + $0x78] sm:$0x77] %v4552_v51  ;;  %4257 = vmatprep.subr.bf16.mxu0 %v4758_v46  ;;  %4298 = vmatprep.subr.bf16.mxu1 %v4760_v48  ;;  %v4892_v47 = vcombine.high %v242_v42, %v274_v43  ;;  %v209_v48 = vld [vmem:[%s7090_s1 + $0x5f0] sm:$0xff]  ;;  %v4891_v52 = vcombine.low %v242_v42, %v274_v43 }
 0x1dc   :  { %v4826_v53 = vcombine.high %v177_v29, %v209_v48  ;;  %v4825_v62 = vcombine.low %v177_v29, %v209_v48 }
 0x1de   :  { %4258 = vmatpush1.bf16.msra.mxu0 %v4757_v55  ;;  %4299 = vmatpush1.bf16.msra.mxu1 %v4759_v56  ;;  %v4828_v55 = vcombine.high %v178_v49, %v210_v50  ;;  %v113_v56 = vld [vmem:[%s7090_s1 + $0x2f0] sm:$0xff] }
 0x1df   :  { %4259 = vmatprep.subr.bf16.mxu0 %v4694_v57  ;;  %4300 = vmatprep.subr.bf16.mxu1 %v4696_v58  ;;  %v145_v57 = vld [vmem:[%s7090_s1 + $0x3f0] sm:$0xff] }
 0x1e2   :  { %4260 = vmatpush1.bf16.msra.mxu0 %v4693_v63  ;;  %4301 = vmatpush1.bf16.msra.mxu1 %v4695_v0  ;;  %v4827_v0 = vcombine.low %v178_v49, %v210_v50 }
 0x1e3   :  { %4327 = vmatprep.subr.bf16.mxu0 %v5146_v1  ;;  %4368 = vmatprep.subr.bf16.mxu1 %v5148_v2  ;;  %v4762_v1 = vcombine.high %v113_v56, %v145_v57 }
 0x1e5   :  { %v3787_v15 = vpop.f32.mrf.mxu0  ;;  %4278 = vmatmul.mubr.bf16.vlgmr.msra.gmra.mxu0 %v6495_v54  ;;  %v3828_v19 = vpop.f32.mrf.mxu1  ;;  %4319 = vmatmul.mubr.bf16.vlgmr.msra.gmra.mxu1 %v6495_v54  ;;  %v337_v54 = vld [vmem:[%s7090_s1 + $0x9f0] sm:$0xff] }
 0x1e6   :  { %v3788_v18 = vadd.f32 %v3787_v15, %v6044_v27  ;;  %4328 = vmatpush1.bf16.msra.mxu0 %v5145_v8  ;;  %v3829_v21 = vadd.f32 %v3828_v19, %v6044_v27  ;;  %4369 = vmatpush1.bf16.msra.mxu1 %v5147_v9  ;;  %v4954_v38 = vcombine.high %v305_v30, %v337_v54  ;;  %v50_v9 = vld [vmem:[%s7090_s1 + $0xf8] sm:$0xff]  ;;  %v5281_v19 = vld [vmem:[%s7092_s0] sm:$0x3] }
 0x1e7   :  { %v3789_v22 = vpop.f32.mrf.mxu0  ;;  %4329 = vmatprep.subr.bf16.mxu0 %v5082_v10  ;;  %v3830_v26 = vpop.f32.mrf.mxu1  ;;  %4370 = vmatprep.subr.bf16.mxu1 %v5084_v11  ;;  %v4953_v44 = vcombine.low %v305_v30, %v337_v54  ;;  %v82_v10 = vld [vmem:[%s7090_s1 + $0x1f8] sm:$0xff]  ;;  %v4761_v11 = vcombine.low %v113_v56, %v145_v57 }
 0x1e8   :  { %5215 = vtanh.f32 %v3788_v18  ;;  %v3790_v25 = vadd.f32 %v3789_v22, %v6044_v27  ;;  %4359 = vmatprep.mubr.bf16.mxu0 %v5282_v3  ;;  %v3831_v31 = vadd.f32 %v3830_v26, %v6044_v27  ;;  %4400 = vmatprep.mubr.bf16.mxu1 %v5282_v3  ;;  %v273_v3 = vld [vmem:[%s7090_s1 + $0x7f0] sm:$0xff]  ;;  %v4700_v15 = vcombine.high %v50_v9, %v82_v10 }
 0x1e9   :  { %5217 = vtanh.f32 %v3829_v21  ;;  %v3791_v32 = vpop.f32.mrf.mxu0  ;;  %v3832_v35 = vpop.f32.mrf.mxu1  ;;  %v4890_v46 = vcombine.high %v241_v41, %v273_v3  ;;  %v4889_v51 = vcombine.low %v241_v41, %v273_v3  ;;  %v4699_v17 = vcombine.low %v50_v9, %v82_v10 }
 0x1ea   :  { %5219 = vtanh.f32 %v3790_v25  ;;  %4330 = vmatpush1.bf16.msra.mxu0 %v5081_v20  ;;  %4371 = vmatpush1.bf16.msra.mxu1 %v5083_v23 }
 0x1eb   :  { %5221 = vtanh.f32 %v3831_v31  ;;  %v3792_v36 = vpop.f32.mrf.mxu0  ;;  %4331 = vmatprep.subr.bf16.mxu0 %v5018_v24  ;;  %v3833_v39 = vpop.f32.mrf.mxu1  ;;  %4372 = vmatprep.subr.bf16.mxu1 %v5020_v28 }
 0x1ee   :  { %4332 = vmatpush1.bf16.msra.mxu0 %v5017_v12  ;;  %4373 = vmatpush1.bf16.msra.mxu1 %v5019_v37 }
 0x1ef   :  { %4333 = vmatprep.subr.bf16.mxu0 %v4954_v38  ;;  %4374 = vmatprep.subr.bf16.mxu1 %v4956_v40 }
 0x1f2   :  { %4334 = vmatpush1.bf16.msra.mxu0 %v4953_v44  ;;  %4375 = vmatpush1.bf16.msra.mxu1 %v4955_v45 }
 0x1f3   :  { %4335 = vmatprep.subr.bf16.mxu0 %v4890_v46  ;;  %4376 = vmatprep.subr.bf16.mxu1 %v4892_v47 }
 0x1f5   :  { %v5216_v58 = vpop.eup %5215 }
 0x1f6   :  { %v5218_v61 = vpop.eup %5217  ;;  %4336 = vmatpush1.bf16.msra.mxu0 %v4889_v51  ;;  %4377 = vmatpush1.bf16.msra.mxu1 %v4891_v52 }
 0x1f7   :  { %v5220_v63 = vpop.eup %5219  ;;  %4337 = vmatprep.subr.bf16.mxu0 %v4826_v53  ;;  %4378 = vmatprep.subr.bf16.mxu1 %v4828_v55 }
 0x1f8   :  { %v5222_v2 = vpop.eup %5221  ;;  %v4553_v4 = vcombine.low %v5216_v58, %v5220_v63 }
 0x1f9   :  { %v4554_v8 = vcombine.low %v5218_v61, %v5222_v2 }
 0x1fa   :  { %4617 = vst [vmem:[%s7094_s4 + $0x80] sm:$0x77] %v4553_v4  ;;  %4338 = vmatpush1.bf16.msra.mxu0 %v4825_v62  ;;  %4379 = vmatpush1.bf16.msra.mxu1 %v4827_v0 }
 0x1fb   :  { %4618 = vst [vmem:[%s7094_s4 + $0x88] sm:$0x77] %v4554_v8  ;;  %4339 = vmatprep.subr.bf16.mxu0 %v4762_v1  ;;  %4380 = vmatprep.subr.bf16.mxu1 %v4764_v5 }
 0x1fe   :  { %4340 = vmatpush1.bf16.msra.mxu0 %v4761_v11  ;;  %4381 = vmatpush1.bf16.msra.mxu1 %v4763_v13 }
 0x1ff   :  { %4341 = vmatprep.subr.bf16.mxu0 %v4698_v14  ;;  %4382 = vmatprep.subr.bf16.mxu1 %v4700_v15 }
 0x202   :  { %4342 = vmatpush1.bf16.msra.mxu0 %v4697_v16  ;;  %4383 = vmatpush1.bf16.msra.mxu1 %v4699_v17 }
 0x205   :  { %v3869_v18 = vpop.f32.mrf.mxu0  ;;  %4360 = vmatmul.mubr.bf16.vlgmr.msra.gmra.mxu0 %v5281_v19  ;;  %v3910_v21 = vpop.f32.mrf.mxu1  ;;  %4401 = vmatmul.mubr.bf16.vlgmr.msra.gmra.mxu1 %v5281_v19 }
 0x206   :  { %v3870_v20 = vadd.f32 %v3869_v18, %v6044_v27  ;;  %v3911_v22 = vadd.f32 %v3910_v21, %v6044_v27 }
 0x207   :  { %v3871_v23 = vpop.f32.mrf.mxu0  ;;  %v3912_v25 = vpop.f32.mrf.mxu1 }
 0x208   :  { %5223 = vtanh.f32 %v3870_v20  ;;  %v3872_v24 = vadd.f32 %v3871_v23, %v6044_v27  ;;  %v3913_v26 = vadd.f32 %v3912_v25, %v6044_v27 }
 0x209   :  { %5225 = vtanh.f32 %v3911_v22  ;;  %v3873_v28 = vpop.f32.mrf.mxu0  ;;  %v3914_v30 = vpop.f32.mrf.mxu1 }
 0x20a   :  { %5227 = vtanh.f32 %v3872_v24 }
 0x20b   :  { %5229 = vtanh.f32 %v3913_v26  ;;  %v3874_v54 = vpop.f32.mrf.mxu0  ;;  %v3915_v31 = vpop.f32.mrf.mxu1 }
 0x215   :  { %v5224_v32 = vpop.eup %5223 }
 0x216   :  { %v5226_v33 = vpop.eup %5225 }
 0x217   :  { %v5228_v34 = vpop.eup %5227 }
 0x218   :  { %v5230_v35 = vpop.eup %5229  ;;  %v4555_v12 = vcombine.low %v5224_v32, %v5228_v34 }
 0x219   :  { %v4556_v36 = vcombine.low %v5226_v33, %v5230_v35 }
 0x21a   :  { %4619 = vst [vmem:[%s7094_s4 + $0x90] sm:$0x77] %v4555_v12 }
 0x21b   :  { %4620 = vst [vmem:[%s7094_s4 + $0x98] sm:$0x77] %v4556_v36 }
 0x225   :  { %v3951_v37 = vpop.f32.mrf.mxu0  ;;  %v3992_v39 = vpop.f32.mrf.mxu1 }
 0x226   :  { %v3952_v38 = vadd.f32 %v3951_v37, %v6044_v27  ;;  %v3993_v40 = vadd.f32 %v3992_v39, %v6044_v27 }
 0x227   :  { %v3953_v41 = vpop.f32.mrf.mxu0  ;;  %v3994_v42 = vpop.f32.mrf.mxu1 }
 0x228   :  { %5231 = vtanh.f32 %v3952_v38  ;;  %v3954_v3 = vadd.f32 %v3953_v41, %v6044_v27  ;;  %v3995_v43 = vadd.f32 %v3994_v42, %v6044_v27 }
 0x229   :  { %5233 = vtanh.f32 %v3993_v40  ;;  %v3955_v44 = vpop.f32.mrf.mxu0  ;;  %v3996_v45 = vpop.f32.mrf.mxu1 }
 0x22a   :  { %5235 = vtanh.f32 %v3954_v3 }
 0x22b   :  { %5237 = vtanh.f32 %v3995_v43  ;;  %v3956_v46 = vpop.f32.mrf.mxu0  ;;  %v3997_v47 = vpop.f32.mrf.mxu1 }
 0x235   :  { %v5232_v29 = vpop.eup %5231 }
 0x236   :  { %v5234_v48 = vpop.eup %5233 }
 0x237   :  { %v5236_v49 = vpop.eup %5235 }
 0x238   :  { %v5238_v50 = vpop.eup %5237  ;;  %v4557_v51 = vcombine.low %v5232_v29, %v5236_v49 }
 0x239   :  { %v4558_v52 = vcombine.low %v5234_v48, %v5238_v50 }
 0x23a   :  { %4621 = vst [vmem:[%s7094_s4 + $0xa0] sm:$0x77] %v4557_v51 }
 0x23b   :  { %4622 = vst [vmem:[%s7094_s4 + $0xa8] sm:$0x77] %v4558_v52 }
 0x245   :  { %v4033_v53 = vpop.f32.mrf.mxu0  ;;  %v4074_v56 = vpop.f32.mrf.mxu1 }
 0x246   :  { %v4034_v55 = vadd.f32 %v4033_v53, %v6044_v27  ;;  %v4075_v57 = vadd.f32 %v4074_v56, %v6044_v27 }
 0x247   :  { %v4035_v58 = vpop.f32.mrf.mxu0  ;;  %v4076_v60 = vpop.f32.mrf.mxu1 }
 0x248   :  { %5239 = vtanh.f32 %v4034_v55  ;;  %v4036_v59 = vadd.f32 %v4035_v58, %v6044_v27  ;;  %v4077_v61 = vadd.f32 %v4076_v60, %v6044_v27 }
 0x249   :  { %5241 = vtanh.f32 %v4075_v57  ;;  %v4037_v62 = vpop.f32.mrf.mxu0  ;;  %v4078_v63 = vpop.f32.mrf.mxu1 }
 0x24a   :  { %5243 = vtanh.f32 %v4036_v59 }
 0x24b   :  { %5245 = vtanh.f32 %v4077_v61  ;;  %v4038_v0 = vpop.f32.mrf.mxu0  ;;  %v4079_v1 = vpop.f32.mrf.mxu1 }
 0x255   :  { %v5240_v2 = vpop.eup %5239 }
 0x256   :  { %v5242_v4 = vpop.eup %5241 }
 0x257   :  { %v5244_v5 = vpop.eup %5243 }
 0x258   :  { %v5246_v6 = vpop.eup %5245  ;;  %v4559_v7 = vcombine.low %v5240_v2, %v5244_v5 }
 0x259   :  { %v4560_v8 = vcombine.low %v5242_v4, %v5246_v6 }
 0x25a   :  { %4623 = vst [vmem:[%s7094_s4 + $0xb0] sm:$0x77] %v4559_v7 }
 0x25b   :  { %4624 = vst [vmem:[%s7094_s4 + $0xb8] sm:$0x77] %v4560_v8 }
 0x265   :  { %v4115_v9 = vpop.f32.mrf.mxu0  ;;  %v4156_v11 = vpop.f32.mrf.mxu1 }
 0x266   :  { %v4116_v10 = vadd.f32 %v4115_v9, %v6044_v27  ;;  %v4157_v13 = vadd.f32 %v4156_v11, %v6044_v27 }
 0x267   :  { %v4117_v14 = vpop.f32.mrf.mxu0  ;;  %v4158_v16 = vpop.f32.mrf.mxu1 }
 0x268   :  { %5247 = vtanh.f32 %v4116_v10  ;;  %v4118_v15 = vadd.f32 %v4117_v14, %v6044_v27  ;;  %v4159_v17 = vadd.f32 %v4158_v16, %v6044_v27 }
 0x269   :  { %5249 = vtanh.f32 %v4157_v13  ;;  %v4119_v18 = vpop.f32.mrf.mxu0  ;;  %v4160_v19 = vpop.f32.mrf.mxu1 }
 0x26a   :  { %5251 = vtanh.f32 %v4118_v15 }
 0x26b   :  { %5253 = vtanh.f32 %v4159_v17  ;;  %v4120_v20 = vpop.f32.mrf.mxu0  ;;  %v4161_v21 = vpop.f32.mrf.mxu1 }
 0x275   :  { %v5248_v22 = vpop.eup %5247 }
 0x276   :  { %v5250_v23 = vpop.eup %5249 }
 0x277   :  { %v5252_v24 = vpop.eup %5251 }
 0x278   :  { %v5254_v25 = vpop.eup %5253  ;;  %v4561_v26 = vcombine.low %v5248_v22, %v5252_v24 }
 0x279   :  { %v4562_v28 = vcombine.low %v5250_v23, %v5254_v25 }
 0x27a   :  { %4625 = vst [vmem:[%s7094_s4 + $0xc0] sm:$0x77] %v4561_v26 }
 0x27b   :  { %4626 = vst [vmem:[%s7094_s4 + $0xc8] sm:$0x77] %v4562_v28 }
 0x285   :  { %v4197_v30 = vpop.f32.mrf.mxu0  ;;  %v4238_v31 = vpop.f32.mrf.mxu1 }
 0x286   :  { %v4198_v54 = vadd.f32 %v4197_v30, %v6044_v27  ;;  %v4239_v32 = vadd.f32 %v4238_v31, %v6044_v27 }
 0x287   :  { %v4199_v33 = vpop.f32.mrf.mxu0  ;;  %v4240_v35 = vpop.f32.mrf.mxu1 }
 0x288   :  { %5255 = vtanh.f32 %v4198_v54  ;;  %v4200_v34 = vadd.f32 %v4199_v33, %v6044_v27  ;;  %v4241_v12 = vadd.f32 %v4240_v35, %v6044_v27 }
 0x289   :  { %5257 = vtanh.f32 %v4239_v32  ;;  %v4201_v36 = vpop.f32.mrf.mxu0  ;;  %v4242_v37 = vpop.f32.mrf.mxu1 }
 0x28a   :  { %5259 = vtanh.f32 %v4200_v34 }
 0x28b   :  { %5261 = vtanh.f32 %v4241_v12  ;;  %v4202_v38 = vpop.f32.mrf.mxu0  ;;  %v4243_v39 = vpop.f32.mrf.mxu1 }
 0x295   :  { %v5256_v40 = vpop.eup %5255 }
 0x296   :  { %v5258_v41 = vpop.eup %5257 }
 0x297   :  { %v5260_v3 = vpop.eup %5259 }
 0x298   :  { %v5262_v42 = vpop.eup %5261  ;;  %v4563_v43 = vcombine.low %v5256_v40, %v5260_v3 }
 0x299   :  { %v4564_v44 = vcombine.low %v5258_v41, %v5262_v42 }
 0x29a   :  { %4627 = vst [vmem:[%s7094_s4 + $0xd0] sm:$0x77] %v4563_v43 }
 0x29b   :  { %4628 = vst [vmem:[%s7094_s4 + $0xd8] sm:$0x77] %v4564_v44 }
 0x2a5   :  { %v4279_v45 = vpop.f32.mrf.mxu0  ;;  %v4320_v47 = vpop.f32.mrf.mxu1 }
 0x2a6   :  { %v4280_v46 = vadd.f32 %v4279_v45, %v6044_v27  ;;  %v4321_v29 = vadd.f32 %v4320_v47, %v6044_v27 }
 0x2a7   :  { %v4281_v48 = vpop.f32.mrf.mxu0  ;;  %v4322_v50 = vpop.f32.mrf.mxu1 }
 0x2a8   :  { %5263 = vtanh.f32 %v4280_v46  ;;  %v4282_v49 = vadd.f32 %v4281_v48, %v6044_v27  ;;  %v4323_v51 = vadd.f32 %v4322_v50, %v6044_v27 }
 0x2a9   :  { %5265 = vtanh.f32 %v4321_v29  ;;  %v4283_v52 = vpop.f32.mrf.mxu0  ;;  %v4324_v53 = vpop.f32.mrf.mxu1 }
 0x2aa   :  { %5267 = vtanh.f32 %v4282_v49 }
 0x2ab   :  { %5269 = vtanh.f32 %v4323_v51  ;;  %v4284_v55 = vpop.f32.mrf.mxu0  ;;  %v4325_v56 = vpop.f32.mrf.mxu1 }
 0x2b5   :  { %v5264_v57 = vpop.eup %5263 }
 0x2b6   :  { %v5266_v58 = vpop.eup %5265 }
 0x2b7   :  { %v5268_v59 = vpop.eup %5267 }
 0x2b8   :  { %v5270_v60 = vpop.eup %5269  ;;  %v4565_v61 = vcombine.low %v5264_v57, %v5268_v59 }
 0x2b9   :  { %v4566_v62 = vcombine.low %v5266_v58, %v5270_v60 }
 0x2ba   :  { %4629 = vst [vmem:[%s7094_s4 + $0xe0] sm:$0x77] %v4565_v61 }
 0x2bb   :  { %4630 = vst [vmem:[%s7094_s4 + $0xe8] sm:$0x77] %v4566_v62 }
 0x2c5   :  { %v4361_v63 = vpop.f32.mrf.mxu0  ;;  %v4402_v1 = vpop.f32.mrf.mxu1 }
 0x2c6   :  { %v4362_v0 = vadd.f32 %v4361_v63, %v6044_v27  ;;  %v4403_v2 = vadd.f32 %v4402_v1, %v6044_v27 }
 0x2c7   :  { %v4363_v4 = vpop.f32.mrf.mxu0  ;;  %v4404_v6 = vpop.f32.mrf.mxu1 }
 0x2c8   :  { %5271 = vtanh.f32 %v4362_v0  ;;  %v4364_v5 = vadd.f32 %v4363_v4, %v6044_v27  ;;  %v4405_v7 = vadd.f32 %v4404_v6, %v6044_v27 }
 0x2c9   :  { %5273 = vtanh.f32 %v4403_v2  ;;  %v4365_v8 = vpop.f32.mrf.mxu0  ;;  %v4406_v9 = vpop.f32.mrf.mxu1 }
 0x2ca   :  { %5275 = vtanh.f32 %v4364_v5 }
 0x2cb   :  { %5277 = vtanh.f32 %v4405_v7  ;;  %v4366_v10 = vpop.f32.mrf.mxu0  ;;  %v4407_v11 = vpop.f32.mrf.mxu1 }
 0x2d5   :  { %v5272_v13 = vpop.eup %5271 }
 0x2d6   :  { %v5274_v14 = vpop.eup %5273 }
 0x2d7   :  { %v5276_v15 = vpop.eup %5275 }
 0x2d8   :  { %v5278_v16 = vpop.eup %5277  ;;  %v4567_v17 = vcombine.low %v5272_v13, %v5276_v15 }
 0x2d9   :  { %v4568_v18 = vcombine.low %v5274_v14, %v5278_v16 }
 0x2da   :  { %4631 = vst [vmem:[%s7094_s4 + $0xf0] sm:$0x77] %v4567_v17 }
 0x2db   :  { %4632 = vst [vmem:[%s7094_s4 + $0xf8] sm:$0x77] %v4568_v18 }

</bundles_post_ra>
